<compile_context>
chip_gen: v5e
topology: v5e:2x2
jax: 0.10.0
libtpu: 0.0.40
codegen_flags: <defaults>
</compile_context>

<pallas_src>
import functools

import jax
import jax.numpy as jnp
from jax.experimental import pallas as pl
from jax.experimental.pallas import tpu as pltpu

NEG_SLOPE = 0.01   # nn.LeakyReLU() default negative_slope
BN_EPS = 1e-5      # nn.BatchNorm2d default eps
LANE = 128


def _round_up(x, m):
    return (x + m - 1) // m * m


# ---------------------------------------------------------------------------
# VMEM budgeting / strip-height selection (per-generation sizing).
# ---------------------------------------------------------------------------
def _vmem_budget_bytes():
    cap = 64 * 1024 * 1024                      # conservative default (v7x per-TC VMEM)
    try:
        cap = int(pltpu.get_tpu_info().vmem_capacity_bytes)
    except Exception:
        pass
    # ~48 MiB on v7x (64 MiB physical), ~96 MiB on v5e/v6e (128 MiB physical).
    return min(cap * 3 // 4, 100 * 1024 * 1024)


def _vmem_per_step_bytes(sr, wp, k1, c1p, c2p):
    r_in = (sr + 4) * wp
    r1 = (sr + 2) * wp
    r2 = sr * wp
    bpe = 2                                      # bf16
    est = 0
    est += 2 * r_in * k1 * bpe                   # input strip (double-buffered)
    est += 2 * r1 * 4                            # interior mask (f32, double-buffered)
    est += 2 * r2 * c2p * bpe                    # output strip (double-buffered)
    est += r_in * 3 * c1p * bpe                  # staggered staging scratch
    est += 2 * (3 * k1 * c1p + 9 * c1p * c2p) * bpe + 2 * (c1p + c2p) * 4  # weights/shifts
    est += r1 * c1p * 4 + r2 * c2p * 4           # live f32 accumulators
    est += r2 * 3 * c1p * bpe                    # one layer-2 slab load in flight
    return est


def _pick_strip_rows(hp0, wp, k1, c1p, c2p, budget_bytes):
    cap = _round_up(hp0, 8)
    cands = [r for r in range(8, cap + 1, 8)
             if _vmem_per_step_bytes(r, wp, k1, c1p, c2p) <= budget_bytes]
    if not cands:
        cands = [8]
    waste_cap = max(8, hp0 // 8)
    # Largest strip that still gives >=2 strips (pipeline overlap / v7x TC balance)
    # without wasting too many alignment-padding rows.
    for sr in reversed(cands):
        hp_pad = _round_up(hp0, sr)
        if hp_pad // sr >= 2 and hp_pad - hp0 <= waste_cap:
            return sr
    return cands[0]


# ---------------------------------------------------------------------------
# Fused kernel: (conv3x3 + BN + LeakyReLU) x 2 for one row-strip per grid step.
#
# x_ref:  (1, 1, (sr+4)*wp, 3*Cin)  kw-concatenated padded input rows (bf16)
# m_ref:  (1, (sr+2)*wp, 1)         interior mask (0 = layer-2 zero padding ring)
# w1_ref: (3, 3*Cin, C1p)           layer-1 taps per kh, BN scale folded (bf16)
# s1_ref: (1, C1p)                  layer-1 shift = (bias-mean)*scale + beta (f32)
# w2_ref: (3, 3*C1p, C2p)           layer-2 taps per kh, BN scale folded (bf16)
# s2_ref: (1, C2p)                  layer-2 shift (f32)
# o_ref:  (1, 1, sr*wp, C2p)        strip output (bf16, lane-dense)
# h_ref:  ((sr+4)*wp, 3*C1p)        VMEM scratch: staggered layer-1 activation
# ---------------------------------------------------------------------------
def _fused_convblock_kernel(x_ref, m_ref, w1_ref, s1_ref, w2_ref, s2_ref,
                            o_ref, h_ref, *, sr, wp, c1p):
    r1 = (sr + 2) * wp          # layer-1 activation rows (strip + 1-row halo each side)
    r2 = sr * wp                # layer-2 output rows (the strip itself)

    # ---------------- layer 1: 3 matmuls, K = 3*Cin -------------------------
    x_all = x_ref[0, 0]                                        # ((sr+4)*wp, 3*Cin)
    acc = None
    for kh in range(3):                                        # static, 8-aligned starts
        xs = x_all[kh * wp:kh * wp + r1, :]
        d = jnp.dot(xs, w1_ref[kh], preferred_element_type=jnp.float32)
        acc = d if acc is None else acc + d
    y = acc + s1_ref[...]
    y = jnp.where(y >= 0, y, NEG_SLOPE * y)
    # Zero everything outside the global interior: this IS layer-2's zero-padding
    # ring (and it kills values computed over the alignment-padding rows/cols).
    # The mask is host-precomputed -> no per-step iota / integer div / mod.
    y = y * m_ref[0]
    yb = y.astype(h_ref.dtype)

    # Stagger-stage the activation: lane block j holds the kw = j column shift,
    # so each layer-2 tap becomes one aligned (r2, 3*C1p) load + one deep-K dot.
    # The one-row margins at the top/bottom of the scratch are only ever read by
    # outputs in the discarded padding ring, so the scratch is never zeroed.
    for j in range(3):
        h_ref[pl.ds(wp + 1 - j, r1), pl.ds(j * c1p, c1p)] = yb

    # ---------------- layer 2: 3 matmuls, K = 3*C1p --------------------------
    acc2 = None
    for kh in range(3):
        hs = h_ref[pl.ds((kh + 1) * wp, r2), :]                # (r2, 3*C1p), aligned
        d = jnp.dot(hs, w2_ref[kh], preferred_element_type=jnp.float32)
        acc2 = d if acc2 is None else acc2 + d
    y2 = acc2 + s2_ref[...]
    y2 = jnp.where(y2 >= 0, y2, NEG_SLOPE * y2)
    o_ref[0, 0] = y2.astype(o_ref.dtype)                       # bf16, lane-dense store


# ---------------------------------------------------------------------------
# Parameter folding: BN(eval) into the conv + kw-concatenated tap matrices.
# Returns (3, 3*cin_pad, cout_pad) taps (row blocks = kw 0/1/2) and (1, cout_pad) shift.
# ---------------------------------------------------------------------------
def _fold_layer(w_oihw, bias, gamma, beta, mean, var, cin_pad, cout_pad, dtype):
    cout, cin = w_oihw.shape[0], w_oihw.shape[1]
    scale = gamma / jnp.sqrt(var + BN_EPS)                         # (Cout,)
    wt = jnp.transpose(w_oihw, (2, 3, 1, 0)) * scale[None, None, None, :]  # (3,3,Cin,Cout)
    wt = jnp.pad(wt, ((0, 0), (0, 0), (0, cin_pad - cin), (0, cout_pad - cout)))
    wcat = wt.reshape(3, 3 * cin_pad, cout_pad)
    shift = (bias - mean) * scale + beta
    shift = jnp.pad(shift, (0, cout_pad - cout)).reshape(1, cout_pad)
    return wcat.astype(dtype), shift.astype(jnp.float32)


# ---------------------------------------------------------------------------
# Wrapper: layout plumbing + pallas_call.
# ---------------------------------------------------------------------------
def conv_block_forward(x_nchw, params, *, compute_dtype=jnp.bfloat16):
    """ConvBlock forward (eval mode), fused into a single Pallas kernel."""
    n, cin, h, w = x_nchw.shape
    hp0 = h + 2                               # padded-grid rows (1-px conv ring)
    wp = _round_up(w + 2, 8)                  # padded-grid cols, sublane-aligned
    (w1, b1, g1, be1, m1, v1), (w2, b2, g2, be2, m2, v2) = params
    c1, c2 = w1.shape[0], w2.shape[0]
    c1p = _round_up(c1, LANE)
    c2p = _round_up(c2, LANE)
    k1 = 3 * cin                              # layer-1 contracting dim (kw folded in)

    vmem_limit = _vmem_budget_bytes()
    sr = _pick_strip_rows(hp0, wp, k1, c1p, c2p, (vmem_limit * 3) // 5)
    hp_pad = _round_up(hp0, sr)
    n_strips = hp_pad // sr
    r_in, r1, r2 = (sr + 4) * wp, (sr + 2) * wp, sr * wp

    w1cat, s1 = _fold_layer(w1, b1, g1, be1, m1, v1, cin, c1p, compute_dtype)
    w2cat, s2 = _fold_layer(w2, b2, g2, be2, m2, v2, c1p, c2p, compute_dtype)

    # NCHW -> NHWC, pad the conv ring + alignment rows/cols, fold kw into lanes.
    x = jnp.transpose(x_nchw, (0, 2, 3, 1)).astype(compute_dtype)
    xp = jnp.pad(x, ((0, 0), (1, hp_pad - h - 1), (1, wp - w - 1), (0, 0)))
    xq = jnp.pad(xp, ((0, 0), (0, 0), (1, 1), (0, 0)))
    xcat = jnp.concatenate([xq[:, :, j:j + wp, :] for j in range(3)], axis=-1)  # (n,hp_pad,wp,3*cin)
    # 2-row zero halos + overlapping row strips of sr+4 rows each.
    xe = jnp.pad(xcat, ((0, 0), (2, 2), (0, 0), (0, 0)))
    xstrips = jnp.stack([xe[:, s * sr:s * sr + sr + 4] for s in range(n_strips)], axis=1)
    xstrips = xstrips.reshape(n, n_strips, r_in, k1)
    # TODO(synk): for large Cin build this kw slab inside the kernel (1x input
    # traffic) instead of materializing the 3x-Cin slab in HBM.

    # Per-strip interior mask over the layer-1 activation rows (strip + halos).
    rows = jnp.arange(-1, hp_pad + 1)
    cols = jnp.arange(wp)
    full_mask = ((rows[:, None] >= 1) & (rows[:, None] <= h) &
                 (cols[None, :] >= 1) & (cols[None, :] <= w)).astype(jnp.float32)
    mstrips = jnp.stack([full_mask[s * sr:s * sr + sr + 2] for s in range(n_strips)], axis=0)
    mstrips = mstrips.reshape(n_strips, r1, 1)

    kernel = functools.partial(_fused_convblock_kernel, sr=sr, wp=wp, c1p=c1p)
    out = pl.pallas_call(
        kernel,
        out_shape=jax.ShapeDtypeStruct((n, n_strips, r2, c2p), compute_dtype),
        grid_spec=pltpu.PrefetchScalarGridSpec(
            num_scalar_prefetch=0,
            grid=(n, n_strips),
            in_specs=[
                pl.BlockSpec((1, 1, r_in, k1), lambda i, s: (i, s, 0, 0)),
                pl.BlockSpec((1, r1, 1), lambda i, s: (s, 0, 0)),
                # Grid-invariant weights / shifts (constant index maps).
                # TODO(synk): pipeline_mode=pl.Buffered(1) here for v7x VMEM headroom
                # once single-buffered pipeline_mode is available on the target jax.
                pl.BlockSpec((3, k1, c1p), lambda i, s: (0, 0, 0)),
                pl.BlockSpec((1, c1p), lambda i, s: (0, 0)),
                pl.BlockSpec((3, 3 * c1p, c2p), lambda i, s: (0, 0, 0)),
                pl.BlockSpec((1, c2p), lambda i, s: (0, 0)),
            ],
            out_specs=pl.BlockSpec((1, 1, r2, c2p), lambda i, s: (i, s, 0, 0)),
            scratch_shapes=[pltpu.VMEM((r_in, 3 * c1p), compute_dtype)],
        ),
        compiler_params=pltpu.CompilerParams(
            dimension_semantics=("parallel", "parallel"),
            vmem_limit_bytes=int(vmem_limit),
        ),
    )(xstrips, mstrips, w1cat, s1, w2cat, s2)

    # Keep only the interior of the padded grid and the real output channels.
    out = out.reshape(n, hp_pad, wp, c2p)[:, 1:h + 1, 1:w + 1, :c2]
    # TODO(synk): for small c2, pack a spatial chunk into the lane dim instead of
    # c2p=128 channel padding; and accept/emit NHWC to drop the wrapper transposes.
    # TODO(synk): nn.Dropout is identity in eval mode; training-mode dropout
    # (random mask between the two layers) is intentionally not applied here.
    return jnp.transpose(out, (0, 3, 1, 2)).astype(x_nchw.dtype)


# ---------------------------------------------------------------------------
# Deterministic parameter construction + pure-JAX reference
# ---------------------------------------------------------------------------
def make_params(key, in_channels, out_channels):
    def layer(k, cin, cout):
        k1, k2, k3, k4, k5, k6 = jax.random.split(k, 6)
        wgt = 0.1 * jax.random.normal(k1, (cout, cin, 3, 3), jnp.float32)  # OIHW
        b = 0.1 * jax.random.normal(k2, (cout,), jnp.float32)
        gamma = 1.0 + 0.1 * jax.random.normal(k3, (cout,), jnp.float32)
        beta = 0.1 * jax.random.normal(k4, (cout,), jnp.float32)
        mean = 0.1 * jax.random.normal(k5, (cout,), jnp.float32)
        var = jax.random.uniform(k6, (cout,), jnp.float32, 0.5, 1.5)
        return (wgt, b, gamma, beta, mean, var)

    ka, kb = jax.random.split(key)
    return (layer(ka, in_channels, out_channels),
            layer(kb, out_channels, out_channels))


def reference_forward(x_nchw, params):
    def step(x, w, b, g, bt, m, v):
        y = jax.lax.conv_general_dilated(
            x, w, window_strides=(1, 1), padding="SAME",
            dimension_numbers=("NCHW", "OIHW", "NCHW"))
        y = y + b[None, :, None, None]
        y = (y - m[None, :, None, None]) / jnp.sqrt(v[None, :, None, None] + BN_EPS)
        y = y * g[None, :, None, None] + bt[None, :, None, None]
        return jnp.where(y >= 0, y, NEG_SLOPE * y)

    y = step(x_nchw, *params[0])
    y = step(y, *params[1])
    return y


if __name__ == "__main__":
    key = jax.random.PRNGKey(0)
    kx, kp = jax.random.split(key)

    N, C_IN, C_OUT, H, W = 2, 4, 8, 16, 16
    x = jax.random.normal(kx, (N, C_IN, H, W), jnp.float32)   # NCHW like PyTorch
    params = make_params(kp, C_IN, C_OUT)

    out = jax.block_until_ready(conv_block_forward(x, params))
    assert out.shape == (N, C_OUT, H, W), out.shape

    ref = jax.block_until_ready(reference_forward(x, params))
    if not jnp.allclose(out, ref, rtol=2e-2, atol=2e-2):
        err = float(jnp.max(jnp.abs(out - ref)))
        raise AssertionError(f"Pallas ConvBlock mismatch vs reference (max abs err {err})")

    print("KERNEL_OK")
</pallas_src>

<mosaic_0001>
module attributes {stable_mosaic.version = 11 : i64} {
  func.func @_fused_convblock_kernel(%arg0: i32, %arg1: i32, %arg2: memref<1x1x288x12xbf16, #tpu.memory_space<vmem>>, %arg3: memref<1x240x1xf32, #tpu.memory_space<vmem>>, %arg4: memref<3x12x128xbf16, #tpu.memory_space<vmem>>, %arg5: memref<1x128xf32, #tpu.memory_space<vmem>>, %arg6: memref<3x384x128xbf16, #tpu.memory_space<vmem>>, %arg7: memref<1x128xf32, #tpu.memory_space<vmem>>, %arg8: memref<1x1x192x128xbf16, #tpu.memory_space<vmem>>, %arg9: memref<288x384xbf16, #tpu.memory_space<vmem>>) attributes {dimension_semantics = [#tpu.dimension_semantics<parallel>, #tpu.dimension_semantics<parallel>], iteration_bounds = array<i64: 2, 3>, scalar_prefetch = 0 : i64, scratch_operands = 1 : i64, tpu.core_type = #tpu.core_type<tc>, window_params = [{transform_indices = @transform_0, window_bounds = array<i64: 1, 1, 288, 12>}, {transform_indices = @transform_1, window_bounds = array<i64: 1, 240, 1>}, {pipeline_mode = #tpu.pipeline_mode<synchronous>, transform_indices = @transform_2, window_bounds = array<i64: 3, 12, 128>}, {pipeline_mode = #tpu.pipeline_mode<synchronous>, transform_indices = @transform_3, window_bounds = array<i64: 1, 128>}, {pipeline_mode = #tpu.pipeline_mode<synchronous>, transform_indices = @transform_4, window_bounds = array<i64: 3, 384, 128>}, {pipeline_mode = #tpu.pipeline_mode<synchronous>, transform_indices = @transform_5, window_bounds = array<i64: 1, 128>}, {transform_indices = @transform_6, window_bounds = array<i64: 1, 1, 192, 128>}]} {
    %c0 = arith.constant 0 : index
    %c0_0 = arith.constant 0 : index
    %c0_1 = arith.constant 0 : index
    %c0_2 = arith.constant 0 : index
    %0 = vector.load %arg2[%c0, %c0_0, %c0_1, %c0_2] : memref<1x1x288x12xbf16, #tpu.memory_space<vmem>>, vector<1x1x288x12xbf16>
    %1 = vector.shape_cast %0 : vector<1x1x288x12xbf16> to vector<288x12xbf16>
    %2 = vector.extract_strided_slice %1 {offsets = [0, 0], sizes = [240, 12], strides = [1, 1]} : vector<288x12xbf16> to vector<240x12xbf16>
    %c0_3 = arith.constant 0 : index
    %c0_4 = arith.constant 0 : index
    %c0_5 = arith.constant 0 : index
    %3 = vector.load %arg4[%c0_3, %c0_4, %c0_5] : memref<3x12x128xbf16, #tpu.memory_space<vmem>>, vector<1x12x128xbf16>
    %4 = vector.shape_cast %3 : vector<1x12x128xbf16> to vector<12x128xbf16>
    %cst = arith.constant dense<0.000000e+00> : vector<240x128xf32>
    %5 = tpu.matmul %2, %4, %cst {dimension_numbers = #tpu.dot_dimension_numbers<[1], [0], [0], [1], [0, 0, 1, 1], [], []>} : vector<240x12xbf16>, vector<12x128xbf16>, vector<240x128xf32> -> vector<240x128xf32>
    %6 = vector.extract_strided_slice %1 {offsets = [24, 0], sizes = [240, 12], strides = [1, 1]} : vector<288x12xbf16> to vector<240x12xbf16>
    %c1 = arith.constant 1 : index
    %c0_6 = arith.constant 0 : index
    %c0_7 = arith.constant 0 : index
    %7 = vector.load %arg4[%c1, %c0_6, %c0_7] : memref<3x12x128xbf16, #tpu.memory_space<vmem>>, vector<1x12x128xbf16>
    %8 = vector.shape_cast %7 : vector<1x12x128xbf16> to vector<12x128xbf16>
    %cst_8 = arith.constant dense<0.000000e+00> : vector<240x128xf32>
    %9 = tpu.matmul %6, %8, %cst_8 {dimension_numbers = #tpu.dot_dimension_numbers<[1], [0], [0], [1], [0, 0, 1, 1], [], []>} : vector<240x12xbf16>, vector<12x128xbf16>, vector<240x128xf32> -> vector<240x128xf32>
    %10 = arith.addf %5, %9 : vector<240x128xf32>
    %11 = vector.extract_strided_slice %1 {offsets = [48, 0], sizes = [240, 12], strides = [1, 1]} : vector<288x12xbf16> to vector<240x12xbf16>
    %c2 = arith.constant 2 : index
    %c0_9 = arith.constant 0 : index
    %c0_10 = arith.constant 0 : index
    %12 = vector.load %arg4[%c2, %c0_9, %c0_10] : memref<3x12x128xbf16, #tpu.memory_space<vmem>>, vector<1x12x128xbf16>
    %13 = vector.shape_cast %12 : vector<1x12x128xbf16> to vector<12x128xbf16>
    %cst_11 = arith.constant dense<0.000000e+00> : vector<240x128xf32>
    %14 = tpu.matmul %11, %13, %cst_11 {dimension_numbers = #tpu.dot_dimension_numbers<[1], [0], [0], [1], [0, 0, 1, 1], [], []>} : vector<240x12xbf16>, vector<12x128xbf16>, vector<240x128xf32> -> vector<240x128xf32>
    %15 = arith.addf %10, %14 : vector<240x128xf32>
    %c0_12 = arith.constant 0 : index
    %c0_13 = arith.constant 0 : index
    %16 = vector.load %arg5[%c0_12, %c0_13] : memref<1x128xf32, #tpu.memory_space<vmem>>, vector<1x128xf32>
    %17 = vector.broadcast %16 : vector<1x128xf32> to vector<240x128xf32>
    %18 = arith.addf %15, %17 : vector<240x128xf32>
    %cst_14 = arith.constant 0.000000e+00 : f32
    %19 = vector.broadcast %cst_14 : f32 to vector<240x128xf32>
    %20 = arith.cmpf oge, %18, %19 : vector<240x128xf32>
    %cst_15 = arith.constant 0.00999999977 : f32
    %21 = vector.broadcast %cst_15 : f32 to vector<240x128xf32>
    %22 = arith.mulf %21, %18 : vector<240x128xf32>
    %23 = arith.select %20, %18, %22 : vector<240x128xi1>, vector<240x128xf32>
    %c0_16 = arith.constant 0 : index
    %c0_17 = arith.constant 0 : index
    %c0_18 = arith.constant 0 : index
    %24 = vector.load %arg3[%c0_16, %c0_17, %c0_18] : memref<1x240x1xf32, #tpu.memory_space<vmem>>, vector<1x240x1xf32>
    %25 = vector.shape_cast %24 : vector<1x240x1xf32> to vector<240x1xf32>
    %26 = vector.broadcast %25 : vector<240x1xf32> to vector<240x128xf32>
    %27 = arith.mulf %23, %26 : vector<240x128xf32>
    %28 = arith.truncf %27 : vector<240x128xf32> to vector<240x128xbf16>
    %c25 = arith.constant 25 : index
    %c0_19 = arith.constant 0 : index
    %29 = vector.load %arg9[%c25, %c0_19] : memref<288x384xbf16, #tpu.memory_space<vmem>>, vector<240x128xbf16>
    tpu.vector_store %arg9[%c25, %c0_19], %28 {strides = array<i32>} : memref<288x384xbf16, #tpu.memory_space<vmem>>, vector<240x128xbf16>,
    %c24 = arith.constant 24 : index
    %c128 = arith.constant 128 : index
    %30 = vector.load %arg9[%c24, %c128] : memref<288x384xbf16, #tpu.memory_space<vmem>>, vector<240x128xbf16>
    tpu.vector_store %arg9[%c24, %c128], %28 {strides = array<i32>} : memref<288x384xbf16, #tpu.memory_space<vmem>>, vector<240x128xbf16>,
    %c23 = arith.constant 23 : index
    %c256 = arith.constant 256 : index
    %31 = vector.load %arg9[%c23, %c256] : memref<288x384xbf16, #tpu.memory_space<vmem>>, vector<240x128xbf16>
    tpu.vector_store %arg9[%c23, %c256], %28 {strides = array<i32>} : memref<288x384xbf16, #tpu.memory_space<vmem>>, vector<240x128xbf16>,
    %c24_20 = arith.constant 24 : index
    %c0_21 = arith.constant 0 : index
    %32 = vector.load %arg9[%c24_20, %c0_21] : memref<288x384xbf16, #tpu.memory_space<vmem>>, vector<192x384xbf16>
    %c0_22 = arith.constant 0 : index
    %c0_23 = arith.constant 0 : index
    %c0_24 = arith.constant 0 : index
    %33 = vector.load %arg6[%c0_22, %c0_23, %c0_24] : memref<3x384x128xbf16, #tpu.memory_space<vmem>>, vector<1x384x128xbf16>
    %34 = vector.shape_cast %33 : vector<1x384x128xbf16> to vector<384x128xbf16>
    %cst_25 = arith.constant dense<0.000000e+00> : vector<192x128xf32>
    %35 = tpu.matmul %32, %34, %cst_25 {dimension_numbers = #tpu.dot_dimension_numbers<[1], [0], [0], [1], [0, 0, 1, 1], [], []>} : vector<192x384xbf16>, vector<384x128xbf16>, vector<192x128xf32> -> vector<192x128xf32>
    %c48 = arith.constant 48 : index
    %c0_26 = arith.constant 0 : index
    %36 = vector.load %arg9[%c48, %c0_26] : memref<288x384xbf16, #tpu.memory_space<vmem>>, vector<192x384xbf16>
    %c1_27 = arith.constant 1 : index
    %c0_28 = arith.constant 0 : index
    %c0_29 = arith.constant 0 : index
    %37 = vector.load %arg6[%c1_27, %c0_28, %c0_29] : memref<3x384x128xbf16, #tpu.memory_space<vmem>>, vector<1x384x128xbf16>
    %38 = vector.shape_cast %37 : vector<1x384x128xbf16> to vector<384x128xbf16>
    %cst_30 = arith.constant dense<0.000000e+00> : vector<192x128xf32>
    %39 = tpu.matmul %36, %38, %cst_30 {dimension_numbers = #tpu.dot_dimension_numbers<[1], [0], [0], [1], [0, 0, 1, 1], [], []>} : vector<192x384xbf16>, vector<384x128xbf16>, vector<192x128xf32> -> vector<192x128xf32>
    %40 = arith.addf %35, %39 : vector<192x128xf32>
    %c72 = arith.constant 72 : index
    %c0_31 = arith.constant 0 : index
    %41 = vector.load %arg9[%c72, %c0_31] : memref<288x384xbf16, #tpu.memory_space<vmem>>, vector<192x384xbf16>
    %c2_32 = arith.constant 2 : index
    %c0_33 = arith.constant 0 : index
    %c0_34 = arith.constant 0 : index
    %42 = vector.load %arg6[%c2_32, %c0_33, %c0_34] : memref<3x384x128xbf16, #tpu.memory_space<vmem>>, vector<1x384x128xbf16>
    %43 = vector.shape_cast %42 : vector<1x384x128xbf16> to vector<384x128xbf16>
    %cst_35 = arith.constant dense<0.000000e+00> : vector<192x128xf32>
    %44 = tpu.matmul %41, %43, %cst_35 {dimension_numbers = #tpu.dot_dimension_numbers<[1], [0], [0], [1], [0, 0, 1, 1], [], []>} : vector<192x384xbf16>, vector<384x128xbf16>, vector<192x128xf32> -> vector<192x128xf32>
    %45 = arith.addf %40, %44 : vector<192x128xf32>
    %c0_36 = arith.constant 0 : index
    %c0_37 = arith.constant 0 : index
    %46 = vector.load %arg7[%c0_36, %c0_37] : memref<1x128xf32, #tpu.memory_space<vmem>>, vector<1x128xf32>
    %47 = vector.broadcast %46 : vector<1x128xf32> to vector<192x128xf32>
    %48 = arith.addf %45, %47 : vector<192x128xf32>
    %cst_38 = arith.constant 0.000000e+00 : f32
    %49 = vector.broadcast %cst_38 : f32 to vector<192x128xf32>
    %50 = arith.cmpf oge, %48, %49 : vector<192x128xf32>
    %cst_39 = arith.constant 0.00999999977 : f32
    %51 = vector.broadcast %cst_39 : f32 to vector<192x128xf32>
    %52 = arith.mulf %51, %48 : vector<192x128xf32>
    %53 = arith.select %50, %48, %52 : vector<192x128xi1>, vector<192x128xf32>
    %54 = arith.truncf %53 : vector<192x128xf32> to vector<192x128xbf16>
    %c0_40 = arith.constant 0 : index
    %c0_41 = arith.constant 0 : index
    %c0_42 = arith.constant 0 : index
    %c0_43 = arith.constant 0 : index
    %55 = vector.load %arg8[%c0_40, %c0_41, %c0_42, %c0_43] : memref<1x1x192x128xbf16, #tpu.memory_space<vmem>>, vector<1x1x192x128xbf16>
    %56 = vector.shape_cast %55 : vector<1x1x192x128xbf16> to vector<192x128xbf16>
    %57 = vector.shape_cast %54 : vector<192x128xbf16> to vector<1x1x192x128xbf16>
    tpu.vector_store %arg8[%c0_40, %c0_41, %c0_42, %c0_43], %57 {strides = array<i32>} : memref<1x1x192x128xbf16, #tpu.memory_space<vmem>>, vector<1x1x192x128xbf16>,
    return
  }
  func.func @transform_0(%arg0: i32, %arg1: i32) -> (i32, i32, i32, i32) {
    %c0_i32 = arith.constant 0 : i32
    %c0_i32_0 = arith.constant 0 : i32
    %c0_i32_1 = arith.constant 0 : i32
    return %arg0, %arg1, %c0_i32, %c0_i32_0 : i32, i32, i32, i32
  }
  func.func @transform_1(%arg0: i32, %arg1: i32) -> (i32, i32, i32) {
    %c0_i32 = arith.constant 0 : i32
    %c0_i32_0 = arith.constant 0 : i32
    %c0_i32_1 = arith.constant 0 : i32
    return %arg1, %c0_i32, %c0_i32_0 : i32, i32, i32
  }
  func.func @transform_2(%arg0: i32, %arg1: i32) -> (i32, i32, i32) {
    %c0_i32 = arith.constant 0 : i32
    %c0_i32_0 = arith.constant 0 : i32
    %c0_i32_1 = arith.constant 0 : i32
    %c0_i32_2 = arith.constant 0 : i32
    return %c0_i32, %c0_i32_0, %c0_i32_1 : i32, i32, i32
  }
  func.func @transform_3(%arg0: i32, %arg1: i32) -> (i32, i32) {
    %c0_i32 = arith.constant 0 : i32
    %c0_i32_0 = arith.constant 0 : i32
    %c0_i32_1 = arith.constant 0 : i32
    return %c0_i32, %c0_i32_0 : i32, i32
  }
  func.func @transform_4(%arg0: i32, %arg1: i32) -> (i32, i32, i32) {
    %c0_i32 = arith.constant 0 : i32
    %c0_i32_0 = arith.constant 0 : i32
    %c0_i32_1 = arith.constant 0 : i32
    %c0_i32_2 = arith.constant 0 : i32
    return %c0_i32, %c0_i32_0, %c0_i32_1 : i32, i32, i32
  }
  func.func @transform_5(%arg0: i32, %arg1: i32) -> (i32, i32) {
    %c0_i32 = arith.constant 0 : i32
    %c0_i32_0 = arith.constant 0 : i32
    %c0_i32_1 = arith.constant 0 : i32
    return %c0_i32, %c0_i32_0 : i32, i32
  }
  func.func @transform_6(%arg0: i32, %arg1: i32) -> (i32, i32, i32, i32) {
    %c0_i32 = arith.constant 0 : i32
    %c0_i32_0 = arith.constant 0 : i32
    %c0_i32_1 = arith.constant 0 : i32
    return %arg0, %arg1, %c0_i32, %c0_i32_0 : i32, i32, i32, i32
  }
}

</mosaic_0001>

<bundles_post_ra>
// kernel: tpu_custom_call.1
= control target key start
LH: loop header
LB: loop body
LE: loop exit
PB: predicated region body
PF: predicated region fallthrough
CT: control target
= control target key end

     0   :  { %11 = vsyncpa [#allocation4], 0  ;;  %s6853_s0 = inlined_call_operand.vmem [shape: bf16[2,3,288,12], index: 0, kind: input, shape index: {}]   ;;  %s6854_s1 = inlined_call_operand.vmem [shape: f32[3,240,1], index: 1, kind: input, shape index: {}]   ;;  %s6855_s2 = inlined_call_operand.vmem [shape: bf16[3,12,128], index: 2, kind: input, shape index: {}]   ;;  %s6856_s3 = inlined_call_operand.vmem [shape: f32[1,128], index: 3, kind: input, shape index: {}]   ;;  %s6857_s4 = inlined_call_operand.vmem [shape: bf16[3,384,128], index: 4, kind: input, shape index: {}]   ;;  %s6858_s5 = inlined_call_operand.vmem [shape: f32[1,128], index: 5, kind: input, shape index: {}]   ;;  %s6859_s6 = inlined_call_operand.hbm [shape: bf16[2,3,192,128], index: 6, kind: output, shape index: {}]  }
   0x1   :  { %13 = vsyncpa [#allocation4 + $0x1], 0  ;;  %s5100_s21 = smov 0   ;;  %s5102_s22 = smov 0  }
   0x2   :  { %s5104_s23 = smov 0   ;;  %s5106_s24 = smov 0  }
   0x3   :  { %s5108_s25 = smov 0   ;;  %s5110_s26 = smov 0  }
   0x4   :  { %s5112_s27 = smov 0   ;;  %s5114_s28 = smov 0  }
   0x5 LB: > { %s3873_s29 = sadd.s32 4294967295, %s5060_s28   ;;  %s3874_s30 = sadd.s32 4294967294, %s5060_s28   ;;  %s5060_s28 = sphi %s5114_s28, %s19_s28   ;;  %s5056_s27 = sphi %s5112_s27, %s7146_s27   ;;  %s5052_s26 = sphi %s5110_s26, %s7145_s26   ;;  %s5048_s25 = sphi %s5108_s25, %s7144_s25   ;;  %s5044_s24 = sphi %s5106_s24, %s7143_s24   ;;  %s5040_s23 = sphi %s5104_s23, %s7142_s23   ;;  %s5036_s22 = sphi %s5102_s22, %s7141_s22   ;;  %s5032_s21 = sphi %s5100_s21, %s7140_s21  }
   0x6   : > { %s28_s7 = sadd.s32 1, %s5052_s26  ;;  %s31_s8 = sadd.s32 1, %s5056_s27 }
   0x7   : > { %p29_p0 = scmp.ge.s32.totalorder %s28_s7, 3  ;;  %p188_p1 = scmp.ne.s32.totalorder %s5040_s23, %s5036_s22 }
   0x8   : > { %p189_p2 = scmp.eq.s32.totalorder %s3873_s29, 5  ;;  %p194_p5 = scmp.ne.s32.totalorder %s5036_s22, %s5032_s21 }
   0x9   : > { %s7148_s7 = smov (%p29_p0, %s28_s7), 0  ;;  %s7150_s8 = smov (!%p29_p0, %s31_s8), %s5056_s27 }
   0xa   : > { %s174_s9 = ssub.s32 %s5052_s26, %s7148_s7  ;;  %p5151_p3 = por %p189_p2, %p188_p1 }
   0xb   : > { %p33_p4 = scmp.ge.s32.totalorder %s7150_s8, 2  ;;  %p195_p6 = scmp.eq.s32.totalorder %s3874_s30, 5 }
   0xc   : > { %p3877_p7 = scmp.ge.s32.totalorder %s5060_s28, 1  ;;  %p245_p9 = scmp.lt.s32.totalorder %s5060_s28, 7 }
   0xd   : > { %s7152_s8 = smov (%p33_p4, %s7150_s8), 0  ;;  %p5160_p8 = por %p195_p6, %p194_p5 }
   0xe   : > { %s173_s12 = ssub.s32 %s5056_s27, %s7152_s8  ;;  %s178_s13 = sadd.s32 1, %s5040_s23 }
   0xf   : > { %s175_s14 = sor.u32 %s174_s9, %s173_s12  ;;  %p246_p10 = pnand %p3877_p7, %p245_p9 }
  0x10   : > { %p176_p11 = scmp.eq.s32.totalorder %s175_s14, 0 }
  0x11   : > { %249 = sbr.rel (%p246_p10) target bundleno = 946 (0x3b2), region = 44 }
  0x12   : > { %s5169_s15 = scalar_select %p176_p11, %s5040_s23, %s178_s13  }
  0x16   : > { %vm466_vm0 = vcmask 1045504   ;;  %v3932_v0 = vld [vmem:[%s6855_s2 + $0x10] sm:$0xf]  ;;  %v4508_v1 = vld [vmem:[%s6855_s2 + $0x10] sm:$0x30]  ;;  %v5062_v2 = vmov 0  }
  0x17   : > { %4961 = vset.pattern.permute.xlu2 %v5062_v2  ;;  %4960 = vset.pattern.permute.xlu1 %v5062_v2  ;;  %v3933_v3 = vor.u32 %v4508_v1, %v3932_v0  ;;  %p286_p12 = scmp.lt.s32.totalorder %s5044_s24, 2  ;;  %p284_p13 = scmp.lt.s32.totalorder %s5048_s25, 1  ;;  %v3884_v4 = vld [vmem:[%s6855_s2 + $0x8] sm:$0xf]  ;;  %v4507_v5 = vld [vmem:[%s6855_s2 + $0x8] sm:$0x30] }
  0x18   : > { %4959 = vset.pattern.permute.xlu0 %v5062_v2  ;;  %v3885_v6 = vor.u32 %v4507_v5, %v3884_v4  ;;  %v3907_v7 = vld [vmem:[%s6855_s2] sm:$0xf]  ;;  %v4506_v8 = vld [vmem:[%s6855_s2] sm:$0x30]  ;;  %vm420_vm1 = vcmask 97280   ;;  %vm1522_vm10 = vcmask 1043456  }
  0x19   : > { %v739_v9 = vsel %vm466_vm0, %v3933_v3, 0  ;;  %s287_s17 = scalar_select %p286_p12, %s5044_s24, 2  ;;  %v3908_v10 = vor.u32 %v4506_v8, %v3907_v7  ;;  %v4527_v3 = vld [vmem:[%s6857_s4 + $0x78] sm:$0xff]  ;;  %vm1219_vm4 = vsmask.f32 256  ;;  %vm1775_vm15 = vcmask 1043459  }
  0x1a   : > { %748 = vmatpush.bf16.msra.mxu2 %v739_v9  ;;  %s285_s18 = scalar_select %p284_p13, %s5048_s25, 1  ;;  %v468_v11 = vsel %vm466_vm0, %v3885_v6, 0  ;;  %vm1592_vm5 = vsmask.f32 3328  ;;  %vm1593_vm6 = vsmask.f32 7440 }
  0x1b   : > { %s4882_s19 = smul.u32 240, %s287_s17  ;;  %477 = vmatpush.bf16.msra.mxu0 %v468_v11  ;;  %v626_v12 = vsel %vm466_vm0, %v3908_v10, 0  ;;  %vm1220_vm7 = vsmask.f32 4368  ;;  %vm5390_vm8 = vmor %vm1592_vm5, %vm1593_vm6 }
  0x1c   : > { %s4880_s20 = smul.u32 36, %s287_s17  ;;  %635 = vmatpush.bf16.msra.mxu1 %v626_v12  ;;  %vm5408_vm11 = vmand %vm1522_vm10, %vm1592_vm5 }
  0x1d   : > { %s5199_s9 = scalar_lea.vmem %s6854_s1, %s4882_s19  ;;  %s4881_s12 = smul.u32 108, %s285_s18  ;;  %vm5414_vm12 = vmor %vm1219_vm4, %vm1220_vm7 }
  0x1e   : > { %v985_v13 = vld [vmem:[%s5199_s9 + $0x30] sm:$0xff]  ;;  %v983_v14 = vld [vmem:[%s5199_s9 + $0x20] sm:$0xff]  ;;  %v986_v19 = vld [vmem:[%s5199_s9 + $0x38] sm:$0xff]  ;;  %2808 = vmatpush.bf16.msrb.mxu2 %v4527_v3  ;;  %s4884_s16 = smul.u32 72, %s5048_s25 }
  0x1f   : > { %v981_v15 = vld [vmem:[%s5199_s9 + $0x10] sm:$0xff]  ;;  %1041 = vperm.xlu2 %4961, %v985_v13   ;;  %s290_s13 = sadd.s32 %s4881_s12, %s4880_s20  ;;  %1031 = vperm.xlu1 %4960, %v983_v14   ;;  %v984_v20 = vld [vmem:[%s5199_s9 + $0x28] sm:$0xff]  ;;  %v982_v21 = vld [vmem:[%s5199_s9 + $0x18] sm:$0xff] }
  0x20   : > { %s3878_s14 = sshll.u32 %s290_s13, 2  ;;  %1021 = vperm.xlu0 %4959, %v981_v15   ;;  %v989_v22 = vld [vmem:[%s5199_s9 + $0x50] sm:$0xff]  ;;  %v988_v23 = vld [vmem:[%s5199_s9 + $0x48] sm:$0xff]  ;;  %v987_v24 = vld [vmem:[%s5199_s9 + $0x40] sm:$0xff] }
  0x21   : > { %s5207_s19 = scalar_lea.vmem %s6853_s0, %s3878_s14  ;;  %v992_v28 = vld [vmem:[%s5199_s9 + $0x68] sm:$0xff]  ;;  %v991_v29 = vld [vmem:[%s5199_s9 + $0x60] sm:$0xff]  ;;  %v990_v30 = vld [vmem:[%s5199_s9 + $0x58] sm:$0xff]  ;;  %s4883_s14 = smul.u32 24, %s5044_s24 }
  0x22   : > { %v4749_v16 = vld [vmem:[%s5207_s19 + $0x18] sm:$0xff]   ;;  %v4851_v17 = vld [vmem:[%s5207_s19 + $0xc] sm:$0xff]   ;;  %v4504_v18 = vld [vmem:[%s5207_s19] sm:$0xff] }
  0x23   : > { %3934 = vmatmul.msk.bf16.vlgmr.msra.gmra.mxu2 %vm420_vm1, %v4749_v16  ;;  %3886 = vmatmul.msk.bf16.vlgmr.msra.gmra.mxu0 %vm420_vm1, %v4851_v17  ;;  %v4750_v25 = vld [vmem:[%s5207_s19 + $0x20] sm:$0xff]   ;;  %v4853_v26 = vld [vmem:[%s5207_s19 + $0x14] sm:$0xff]   ;;  %v4747_v27 = vld [vmem:[%s5207_s19 + $0x8] sm:$0xff]   ;;  %s3770_s17 = sadd.s32 %s4884_s16, %s4883_s14 }
  0x24   : > { %3909 = vmatmul.msk.bf16.vlgmr.msra.gmra.mxu1 %vm420_vm1, %v4504_v18  ;;  %v995_v31 = vld [vmem:[%s5199_s9 + $0x80] sm:$0xff]  ;;  %v994_v32 = vld [vmem:[%s5199_s9 + $0x78] sm:$0xff]  ;;  %v993_v33 = vld [vmem:[%s5199_s9 + $0x70] sm:$0xff]  ;;  %s4501_s24 = sshll.u32 %s3770_s17, 2 }
  0x25   : > { %v4751_v34 = vld [vmem:[%s5207_s19 + $0x28] sm:$0xff]   ;;  %v4855_v35 = vld [vmem:[%s5207_s19 + $0x1c] sm:$0xff]   ;;  %v4748_v36 = vld [vmem:[%s5207_s19 + $0x10] sm:$0xff]   ;;  %s3772_s20 = scalar_lea.hbm %s6859_s6, %s4501_s24  ;;  %s4986_s24 = scalar_lea.hbm %s6859_s6, 576 }
  0x26   : > { %v998_v37 = vld [vmem:[%s5199_s9 + $0x98] sm:$0xff]  ;;  %v997_v38 = vld [vmem:[%s5199_s9 + $0x90] sm:$0xff]  ;;  %v996_v39 = vld [vmem:[%s5199_s9 + $0x88] sm:$0xff]  ;;  %s3775_s29 = sshll.u32 %s3772_s20, 4  ;;  %s3776_s29 = int_to_ptr.hbm [resolvable:$true] %s3775_s29 }
  0x27   : > { %1046 = vperm.xlu2 %4961, %v986_v19   ;;  %1036 = vperm.xlu1 %4960, %v984_v20   ;;  %v1001_v40 = vld [vmem:[%s5199_s9 + $0xb0] sm:$0xff]  ;;  %v1000_v41 = vld [vmem:[%s5199_s9 + $0xa8] sm:$0xff]  ;;  %v999_v42 = vld [vmem:[%s5199_s9 + $0xa0] sm:$0xff] }
  0x28   : > { %1026 = vperm.xlu0 %4959, %v982_v21   ;;  %v4752_v43 = vld [vmem:[%s5207_s19 + $0x30] sm:$0xff]   ;;  %v4857_v44 = vld [vmem:[%s5207_s19 + $0x24] sm:$0xff]   ;;  %v1002_v47 = vld [vmem:[%s5199_s9 + $0xb8] sm:$0xff] }
  0x29   : > { %v1004_v45 = vld [vmem:[%s5199_s9 + $0xc8] sm:$0xff]  ;;  %v1003_v46 = vld [vmem:[%s5199_s9 + $0xc0] sm:$0xff]  ;;  %v1005_v50 = vld [vmem:[%s5199_s9 + $0xd0] sm:$0xff] }
  0x2a   : > { %v980_v48 = vld [vmem:[%s5199_s9 + $0x8] sm:$0xff]  ;;  %v979_v49 = vld [vmem:[%s5199_s9] sm:$0xff]  ;;  %v4753_v51 = vld [vmem:[%s5207_s19 + $0x38] sm:$0xff]  }
  0x2b   : > { %v4859_v52 = vld [vmem:[%s5207_s19 + $0x2c] sm:$0xff]   ;;  %v1007_v53 = vld [vmem:[%s5199_s9 + $0xe0] sm:$0xff]  ;;  %v1006_v55 = vld [vmem:[%s5199_s9 + $0xd8] sm:$0xff] }
  0x2c   : > { %v1008_v54 = vld [vmem:[%s5199_s9 + $0xe8] sm:$0xff]  ;;  %v4754_v56 = vld [vmem:[%s5207_s19 + $0x40] sm:$0xff]   ;;  %v4861_v57 = vld [vmem:[%s5207_s19 + $0x34] sm:$0xff]   ;;  %s281_s9 = sand.u32 1, %s5036_s22  }
  0x2d   : > { %v4755_v59 = vld [vmem:[%s5207_s19 + $0x48] sm:$0xff]   ;;  %v4863_v60 = vld [vmem:[%s5207_s19 + $0x3c] sm:$0xff]   ;;  %v5281_v63 = vld [vmem:[%s5207_s19 + $0x50] sm:$0xff]   ;;  %s4879_s12 = smul.u32 96, %s281_s9  ;;  %s3759_s30 = scalar_lea.sflag [#allocation4], %s281_s9 }
  0x2e   : > { %v4865_v0 = vld [vmem:[%s5207_s19 + $0x44] sm:$0xff]   ;;  %v5300_v6 = vld [vmem:[%s5207_s19 + $0x58] sm:$0xff]   ;;  %v4867_v7 = vld [vmem:[%s5207_s19 + $0x4c] sm:$0xff]  }
  0x2f   : > { %1061 = vperm.xlu2 %4961, %v989_v22   ;;  %1056 = vperm.xlu1 %4960, %v988_v23   ;;  %v4546_v13 = vld [vmem:[%s6857_s4 + $0xf8] sm:$0xff]  ;;  %v4545_v20 = vld [vmem:[%s6857_s4 + $0xf0] sm:$0xff]  ;;  %s6629_s13 = scalar_lea.vmem [#allocation3], %s4879_s12  ;;  %s4980_s12 = sshra.s32 %s3776_s29, 4  ;;  %s4981_s12 = int_to_ptr.hbm [resolvable:$true] %s4980_s12 }
  0x30   : > { %1051 = vperm.xlu0 %4959, %v987_v24   ;;  %v4562_v14 = vld [vmem:[%s6857_s4 + $0x178] sm:$0xff]  ;;  %2301 = vmatpush.bf16.msra.mxu3 %v4546_v13  ;;  %v4544_v24 = vld [vmem:[%s6857_s4 + $0xe8] sm:$0xff]  ;;  %s4982_s14 = scalar_lea.hbm %s4981_s12, 96  ;;  %p4987_p4 = scmp.lt.s32.totalorder %s4981_s12, %s6859_s6 }
  0x31   : > { %v4519_v15 = vld [vmem:[%s6857_s4 + $0x38] sm:$0xff]  ;;  %2439 = vmatpush.bf16.msrb.mxu0 %v4562_v14  ;;  %p4983_p0 = scmp.ne.s32.totalorder %s4981_s12, %s4982_s14  ;;  %p4988_p5 = scmp.lt.s32.totalorder %s4986_s24, %s4982_s14 }
  0x32   : > { %2739 = vmatpush.bf16.msrb.mxu1 %v4519_v15 }
  0x33   : > { %3935 = vmatmul.msk.bf16.gmra.mxu2 %vm420_vm1, %v4750_v25  ;;  %3887 = vmatmul.msk.bf16.gmra.mxu0 %vm420_vm1, %v4853_v26  ;;  %v5342_v26 = vld [vmem:[%s5207_s19 + $0x60] sm:$0xff]   ;;  %p4984_p1 = pnand %p4983_p0, %p5151_p3  ;;  %p4989_p6 = por %p4988_p5, %p4987_p4 }
  0x34   : > { %3910 = vmatmul.msk.bf16.gmra.mxu1 %vm420_vm1, %v4747_v27  ;;  %2302 = vmatpush.bf16.msra.mxu3 %v4545_v20  ;;  %v4869_v27 = vld [vmem:[%s5207_s19 + $0x54] sm:$0xff]  }
  0x35   : > { %p4985_p2 = pneg %p4984_p1 }
  0x37   : > { %1076 = vperm.xlu2 %4961, %v992_v28   ;;  %1071 = vperm.xlu1 %4960, %v991_v29   ;;  %p4990_p7 = pnand %p4989_p6, %p4985_p2 }
  0x38   : > { %1066 = vperm.xlu0 %4959, %v990_v30   ;;  %2303 = vmatpush.bf16.msra.mxu3 %v4544_v24 }
  0x3f   : > { %1091 = vperm.xlu2 %4961, %v995_v31   ;;  %1086 = vperm.xlu1 %4960, %v994_v32  }
  0x40   : > { %1081 = vperm.xlu0 %4959, %v993_v33  }
  0x43   : > { %3936 = vmatmul.msk.bf16.gmra.mxu2 %vm420_vm1, %v4751_v34  ;;  %3888 = vmatmul.msk.bf16.gmra.mxu0 %vm420_vm1, %v4855_v35 }
  0x44   : > { %3911 = vmatmul.msk.bf16.gmra.mxu1 %vm420_vm1, %v4748_v36 }
  0x47   : > { %1106 = vperm.xlu2 %4961, %v998_v37   ;;  %1101 = vperm.xlu1 %4960, %v997_v38   ;;  %v4542_v38 = vld [vmem:[%s6857_s4 + $0xd8] sm:$0xff] }
  0x48   : > { %1096 = vperm.xlu0 %4959, %v996_v39  }
  0x4f   : > { %1121 = vperm.xlu2 %4961, %v1001_v40   ;;  %1116 = vperm.xlu1 %4960, %v1000_v41  }
  0x50   : > { %1111 = vperm.xlu0 %4959, %v999_v42  }
  0x53   : > { %3937 = vmatmul.msk.bf16.gmra.mxu2 %vm420_vm1, %v4752_v43  ;;  %3889 = vmatmul.msk.bf16.gmra.mxu0 %vm420_vm1, %v4857_v44 }
  0x54   : > { %3912 = vmatmul.msk.bf16.gmra.mxu1 %vm420_vm1, %v4749_v16 }
  0x57   : > { %1136 = vperm.xlu2 %4961, %v1004_v45   ;;  %1131 = vperm.xlu1 %4960, %v1003_v46  }
  0x58   : > { %1126 = vperm.xlu0 %4959, %v1002_v47   ;;  %v4541_v47 = vld [vmem:[%s6857_s4 + $0xd0] sm:$0xff] }
  0x5f   : > { %1016 = vperm.xlu2 %4961, %v980_v48   ;;  %1011 = vperm.xlu1 %4960, %v979_v49  }
  0x60   : > { %1141 = vperm.xlu0 %4959, %v1005_v50  }
  0x63   : > { %3938 = vmatmul.msk.bf16.gmra.mxu2 %vm420_vm1, %v4753_v51  ;;  %3890 = vmatmul.msk.bf16.gmra.mxu0 %vm420_vm1, %v4859_v52 }
  0x64   : > { %3913 = vmatmul.msk.bf16.gmra.mxu1 %vm420_vm1, %v4750_v25  ;;  %v5339_v25 = vld [vmem:[%s6856_s3] ss:$0 sm:$0xff] }
  0x67   : > { %1151 = vperm.xlu1 %4960, %v1007_v53   ;;  %1156 = vperm.xlu2 %4961, %v1008_v54   ;;  %v5369_v54 = vld [vmem:[%s5207_s19 + $0x68] sm:$0xff]  }
  0x68   : > { %1146 = vperm.xlu0 %4959, %v1006_v55  }
  0x73   : > { %3939 = vmatmul.msk.bf16.gmra.mxu2 %vm420_vm1, %v4754_v56  ;;  %3891 = vmatmul.msk.bf16.gmra.mxu0 %vm420_vm1, %v4861_v57 }
  0x74   : > { %3914 = vmatmul.msk.bf16.gmra.mxu1 %vm420_vm1, %v4751_v34  ;;  %v4543_v34 = vld [vmem:[%s6857_s4 + $0xe0] sm:$0xff] }
  0x75   : > { %2304 = vmatpush.bf16.msra.mxu3 %v4543_v34 }
  0x79   : > { %v5269_v58 = vpop.permute.xlu2 %1041  ;;  %2305 = vmatpush.bf16.msra.mxu3 %v4542_v38 }
  0x7d   : > { %2306 = vmatpush.bf16.msra.mxu3 %v4541_v47 }
  0x81   : > { %v5273_v61 = vpop.permute.xlu2 %1046 }
  0x83   : > { %3940 = vmatmul.msk.bf16.gmra.mxu2 %vm420_vm1, %v4755_v59  ;;  %3892 = vmatmul.msk.bf16.gmra.mxu0 %vm420_vm1, %v4863_v60  ;;  %v4540_v60 = vld [vmem:[%s6857_s4 + $0xc8] sm:$0xff] }
  0x84   : > { %3915 = vmatmul.msk.bf16.gmra.mxu1 %vm420_vm1, %v4752_v43  ;;  %2307 = vmatpush.bf16.msra.mxu3 %v4540_v60 }
  0x89   : > { %v5278_v62 = vpop.permute.xlu2 %1061 }
  0x91   : > { %v5284_v1 = vpop.permute.xlu2 %1076  ;;  %v5286_v2 = vpop.permute.xlu1 %1031 }
  0x92   : > { %v1022_v48 = vpop.permute.xlu0 %1021 }
  0x93   : > { %3941 = vmatmul.msk.bf16.gmra.mxu2 %vm420_vm1, %v5281_v63  ;;  %3893 = vmatmul.msk.bf16.gmra.mxu0 %vm420_vm1, %v4865_v0 }
  0x94   : > { %3916 = vmatmul.msk.bf16.gmra.mxu1 %vm420_vm1, %v4753_v51 }
  0x99   : > { %v5295_v4 = vpop.permute.xlu2 %1091  ;;  %v5297_v5 = vpop.permute.xlu1 %1036 }
  0xa0   : > { %v5303_v8 = vpop.f32.mrf.mxu0 }
  0xa1   : > { %v5305_v9 = vpop.f32.mrf.mxu1  ;;  %v5307_v10 = vpop.permute.xlu2 %1106 }
  0xa2   : > { %v5309_v11 = vpop.permute.xlu1 %1056 }
  0xa3   : > { %3942 = vmatmul.msk.bf16.gmra.mxu2 %vm420_vm1, %v5300_v6  ;;  %3894 = vmatmul.msk.bf16.gmra.mxu0 %vm420_vm1, %v4867_v7 }
  0xa4   : > { %3917 = vmatmul.msk.bf16.gmra.mxu1 %vm420_vm1, %v4754_v56 }
  0xa6   : > { %v5315_v12 = vpop.f32.mrf.mxu2 }
  0xa8   : > { %v481_v16 = vpop.f32.mrf.mxu0 }
  0xa9   : > { %v639_v17 = vpop.f32.mrf.mxu1  ;;  %v5326_v18 = vpop.permute.xlu2 %1121 }
  0xaa   : > { %v5328_v19 = vpop.permute.xlu1 %1071  ;;  %v640_v21 = vadd.f32 %v639_v17, %v481_v16  ;;  %v638_v16 = vadd.f32 %v5305_v9, %v5303_v8  ;;  %v4539_v8 = vld [vmem:[%s6857_s4 + $0xc0] sm:$0xff] }
  0xab   : > { %2308 = vmatpush.bf16.msra.mxu3 %v4539_v8 }
  0xae   : > { %v752_v22 = vpop.f32.mrf.mxu2 }
  0xaf   : > { %v826_v23 = vadd.f32 %v752_v22, %v640_v21 }
  0xb0   : > { %v484_v28 = vpop.f32.mrf.mxu0 }
  0xb1   : > { %v642_v29 = vpop.f32.mrf.mxu1  ;;  %v860_v30 = vadd.f32 %v5339_v25, %v826_v23  ;;  %v5346_v31 = vpop.permute.xlu2 %1136 }
  0xb2   : > { %v5348_v32 = vpop.permute.xlu1 %1086  ;;  %v643_v33 = vadd.f32 %v642_v29, %v484_v28  ;;  %v4526_v29 = vld [vmem:[%s6857_s4 + $0x70] sm:$0xff] }
  0xb3   : > { %3943 = vmatmul.msk.bf16.gmra.mxu2 %vm420_vm1, %v5342_v26  ;;  %3895 = vmatmul.msk.bf16.gmra.mxu0 %vm420_vm1, %v4869_v27  ;;  %v920_v36 = vmul.f32 0.01, %v860_v30  ;;  %vm890_vm2 = vcmp.ge.f32.partialorder %v860_v30, 0.0 }
  0xb4   : > { %3918 = vmatmul.msk.bf16.gmra.mxu1 %vm420_vm1, %v4755_v59  ;;  %v4871_v59 = vld [vmem:[%s5207_s19 + $0x5c] sm:$0xff]   ;;  %2809 = vmatpush.bf16.msrb.mxu2 %v4526_v29 }
  0xb5   : > { %v950_v44 = vsel %vm890_vm2, %v860_v30, %v920_v36  ;;  %vm1523_vm2 = vsmask.f32 7938  ;;  %v4618_v30 = vld [vmem:[%s6857_s4 + $0x218] sm:$0xff] }
  0xb6   : > { %v755_v35 = vpop.f32.mrf.mxu2  ;;  %vm5476_vm6 = vmand %vm1522_vm10, %vm1523_vm2 }
  0xb7   : > { %v827_v37 = vadd.f32 %v755_v35, %v643_v33  ;;  %v4619_v35 = vld [vmem:[%s6857_s4 + $0x220] sm:$0xff] }
  0xb8   : > { %v486_v40 = vpop.f32.mrf.mxu0 }
  0xb9   : > { %v861_v39 = vadd.f32 %v5339_v25, %v827_v37  ;;  %v644_v41 = vpop.f32.mrf.mxu1  ;;  %v1017_v43 = vpop.permute.xlu2 %1016  ;;  %v825_v37 = vadd.f32 %v5315_v12, %v638_v16 }
  0xba   : > { %v5361_v42 = vpop.permute.xlu1 %1101  ;;  %v1160_v46 = vmul.f32 %v1017_v43, %v950_v44  ;;  %v645_v50 = vadd.f32 %v644_v41, %v486_v40 }
  0xbb   : > { %vm891_vm3 = vcmp.ge.f32.partialorder %v861_v39, 0.0  ;;  %v921_v45 = vmul.f32 0.01, %v861_v39 }
  0xbc   : > { %v5366_v51 = vpack.c.bf16 %v1160_v46, %v1160_v46 }
  0xbd   : > { %v951_v49 = vsel %vm891_vm3, %v861_v39, %v921_v45  ;;  %vm1776_vm3 = vsmask.f32 7950 }
  0xbe   : > { %v1161_v52 = vmul.f32 %v1022_v48, %v951_v49  ;;  %v757_v53 = vpop.f32.mrf.mxu2  ;;  %v1231_v55 = vshrl.u32 %v5366_v51, 16  ;;  %v1234_v56 = vshll.u32 %v5366_v51, 16  ;;  %1563 = vst [vmem:[#allocation2 + $0x34] sm:$0xf] %v5366_v51  ;;  %vm5465_vm5 = vmand %vm1775_vm15, %vm1776_vm3 }
  0xbf   : > { %v828_v57 = vadd.f32 %v757_v53, %v645_v50 }
  0xc0   : > { %v1191_v0 = vpack.c.bf16 %v1161_v52, %v1161_v52  ;;  %v5380_v3 = vrot.slane %v1234_v56, 5  ;;  %v1601_v7 = vrot.slane %v1231_v55, 4  ;;  %v489_v14 = vpop.f32.mrf.mxu0  ;;  %v5385_v21 = vrot.slane %v1231_v55, 7 }
  0xc1   : > { %v862_v13 = vadd.f32 %v5339_v25, %v828_v57  ;;  %v647_v15 = vpop.f32.mrf.mxu1  ;;  %v859_v52 = vadd.f32 %v5339_v25, %v825_v37 }
  0xc2   : > { %v1240_v17 = vshrl.u32 %v1191_v0, 16  ;;  %v1243_v20 = vshll.u32 %v1191_v0, 16  ;;  %1564 = vst [vmem:[#allocation2 + $0x40] sm:$0xf] %v1191_v0  ;;  %v5387_v22 = vpop.permute.xlu1 %1116  ;;  %v1602_v24 = vor.u32 %v1601_v7, %v5380_v3  ;;  %v648_v27 = vadd.f32 %v647_v15, %v489_v14  ;;  %v4518_v0 = vld [vmem:[%s6857_s4 + $0x30] sm:$0xff] }
  0xc3   : > { %vm892_vm9 = vcmp.ge.f32.partialorder %v862_v13, 0.0  ;;  %3944 = vmatmul.msk.bf16.gmra.mxu2 %vm420_vm1, %v5369_v54  ;;  %v922_v28 = vmul.f32 0.01, %v862_v13  ;;  %3896 = vmatmul.msk.bf16.gmra.mxu0 %vm420_vm1, %v4871_v59  ;;  %v1238_v39 = vrot.slane %v5385_v21, 4  ;;  %v4561_v59 = vld [vmem:[%s6857_s4 + $0x170] sm:$0xff]  ;;  %vm889_vm14 = vcmp.ge.f32.partialorder %v859_v52, 0.0 }
  0xc4   : > { %v1242_v9 = vrot.slane %v1240_v17, 7  ;;  %3919 = vmatmul.msk.bf16.gmra.mxu1 %vm420_vm1, %v5281_v63  ;;  %v1604_v33 = vrot.slane %v1243_v20, 5  ;;  %v1606_v34 = vrot.slane %v1240_v17, 4  ;;  %v1603_v36 = vrot.slane %v1602_v24, 4  ;;  %v1027_v63 = vpop.permute.xlu0 %1026  ;;  %2440 = vmatpush.bf16.msrb.mxu0 %v4561_v59 }
  0xc5   : > { %v952_v40 = vsel %vm892_vm9, %v862_v13, %v922_v28  ;;  %v919_v24 = vmul.f32 0.01, %v859_v52  ;;  %2740 = vmatpush.bf16.msrb.mxu1 %v4518_v0 }
  0xc6   : > { %v1245_v38 = vor.u32 %v1243_v20, %v1242_v9  ;;  %v760_v41 = vpop.f32.mrf.mxu2  ;;  %v1605_v43 = vsel %vm5390_vm8, %v1603_v36, %v1604_v33  ;;  %v1162_v44 = vmul.f32 %v1027_v63, %v952_v40  ;;  %v1607_v47 = vor.u32 %v1606_v34, %v1604_v33  ;;  %v5442_v34 = vld [vmem:[%s5207_s19 + $0x70] sm:$0xff]   ;;  %v4873_v36 = vld [vmem:[%s5207_s19 + $0x64] sm:$0xff]  }
  0xc7   : > { %v829_v45 = vadd.f32 %v760_v41, %v648_v27  ;;  %1782 = vst [vmem:[#allocation2 + $0x38] sm:$0xf] %v1605_v43  ;;  %v1247_v27 = vrot.slane %v1242_v9, 4  ;;  %v949_v43 = vsel %vm889_vm14, %v859_v52, %v919_v24 }
  0xc8   : > { %v1246_v46 = vsel %vm5414_vm12, %v1238_v39, %v1245_v38  ;;  %v1192_v48 = vpack.c.bf16 %v1162_v44, %v1162_v44  ;;  %v491_v49 = vpop.f32.mrf.mxu0  ;;  %v1608_v7 = vrot.slane %v1607_v47, 4  ;;  %v4554_v47 = vld [vmem:[%s6857_s4 + $0x138] sm:$0xff] }
  0xc9   : > { %1529 = vst [vmem:[#allocation2 + $0x3c] sm:$0xf] %v1246_v46  ;;  %v863_v12 = vadd.f32 %v5339_v25, %v829_v45  ;;  %v649_v50 = vpop.f32.mrf.mxu1  ;;  %2370 = vmatpush.bf16.msrb.mxu3 %v4554_v47 }
  0xca   : > { %v5427_v53 = vpop.permute.xlu1 %1131  ;;  %v1249_v55 = vshrl.u32 %v1192_v48, 16  ;;  %v1252_v57 = vshll.u32 %v1192_v48, 16  ;;  %1565 = vst [vmem:[#allocation2 + $0x4c] sm:$0xf] %v1192_v48  ;;  %v650_v17 = vadd.f32 %v649_v50, %v491_v49 }
  0xcb   : > { %vm893_vm13 = vcmp.ge.f32.partialorder %v863_v12, 0.0  ;;  %v923_v60 = vmul.f32 0.01, %v863_v12 }
  0xcc   : > { %v5435_v13 = vrot.slane %v1249_v55, 7  ;;  %v1609_v14 = vrot.slane %v1252_v57, 5  ;;  %v1611_v15 = vrot.slane %v1249_v55, 4 }
  0xcd   : > { %v953_v16 = vsel %vm893_vm13, %v863_v12, %v923_v60 }
  0xce   : > { %v762_v20 = vpop.f32.mrf.mxu2  ;;  %v1254_v8 = vor.u32 %v1252_v57, %v5435_v13  ;;  %v1610_v28 = vsel %vm5390_vm8, %v1608_v7, %v1609_v14  ;;  %v1163_v29 = vmul.f32 %v5286_v2, %v953_v16  ;;  %v1612_v9 = vor.u32 %v1611_v15, %v1609_v14  ;;  %v1778_v16 = vld [vmem:[#allocation2 + $0x20] sm:$0x8] }
  0xcf   : > { %1783 = vst [vmem:[#allocation2 + $0x44] sm:$0xf] %v1610_v28  ;;  %v830_v33 = vadd.f32 %v762_v20, %v650_v17  ;;  %v1256_v7 = vrot.slane %v5435_v13, 4 }
  0xd0   : > { %v1255_v63 = vsel %vm5414_vm12, %v1247_v27, %v1254_v8  ;;  %v494_v37 = vpop.f32.mrf.mxu0  ;;  %v1193_v39 = vpack.c.bf16 %v1163_v29, %v1163_v29  ;;  %v1613_v49 = vrot.slane %v1612_v9, 4  ;;  %v1236_v29 = vor.u32 %v1234_v56, %v5385_v21 }
  0xd1   : > { %v652_v38 = vpop.f32.mrf.mxu1  ;;  %1530 = vst [vmem:[#allocation2 + $0x48] sm:$0xf] %v1255_v63  ;;  %v864_v40 = vadd.f32 %v5339_v25, %v830_v33  ;;  %v1525_v63 = vld [vmem:[#allocation2 + $0x24] sm:$0xf] }
  0xd2   : > { %v1012_v41 = vpop.permute.xlu1 %1011  ;;  %v653_v44 = vadd.f32 %v652_v38, %v494_v37  ;;  %v1258_v2 = vshrl.u32 %v1193_v39, 16  ;;  %v1261_v46 = vshll.u32 %v1193_v39, 16  ;;  %1566 = vst [vmem:[#allocation2 + $0x58] sm:$0xf] %v1193_v39 }
  0xd3   : > { %v1159_v45 = vmul.f32 %v1012_v41, %v949_v43  ;;  %3945 = vmatmul.msk.bf16.gmra.mxu2 %vm420_vm1, %v5442_v34  ;;  %vm894_vm0 = vcmp.ge.f32.partialorder %v864_v40, 0.0  ;;  %3897 = vmatmul.msk.bf16.gmra.mxu0 %vm420_vm1, %v4873_v36  ;;  %v924_v48 = vmul.f32 0.01, %v864_v40 }
  0xd4   : > { %3920 = vmatmul.msk.bf16.gmra.mxu1 %vm420_vm1, %v5300_v6  ;;  %v5456_v50 = vrot.slane %v1258_v2, 7  ;;  %v1614_v52 = vrot.slane %v1261_v46, 5  ;;  %v1616_v55 = vrot.slane %v1258_v2, 4 }
  0xd5   : > { %v1189_v12 = vpack.c.bf16 %v1159_v45, %v1159_v45  ;;  %v954_v59 = vsel %vm894_vm0, %v864_v40, %v924_v48 }
  0xd6   : > { %v765_v57 = vpop.f32.mrf.mxu2  ;;  %v1263_v14 = vor.u32 %v1261_v46, %v5456_v50  ;;  %v1615_v15 = vsel %vm5390_vm8, %v1613_v49, %v1614_v52  ;;  %v1164_v17 = vmul.f32 %v5297_v5, %v954_v59  ;;  %v1617_v36 = vor.u32 %v1616_v55, %v1614_v52 }
  0xd7   : > { %v1223_v60 = vshrl.u32 %v1189_v12, 16  ;;  %v1226_v0 = vshll.u32 %v1189_v12, 16  ;;  %1562 = vst [vmem:[#allocation2 + $0x28] sm:$0xf] %v1189_v12  ;;  %v831_v6 = vadd.f32 %v765_v57, %v653_v44  ;;  %v4761_v12 = vld [vmem:[%s5207_s19 + $0x78] sm:$0xff]  }
  0xd8   : > { %1784 = vst [vmem:[#allocation2 + $0x50] sm:$0xf] %v1615_v15  ;;  %v496_v28 = vpop.f32.mrf.mxu0  ;;  %v1264_v33 = vsel %vm5414_vm12, %v1256_v7, %v1263_v14  ;;  %v1194_v38 = vpack.c.bf16 %v1164_v17, %v1164_v17  ;;  %v1618_v45 = vrot.slane %v1617_v36, 4  ;;  %v5488_v49 = vld [vmem:[#allocation2 + $0x48] sm:$0xff] }
  0xd9   : > { %v1225_v24 = vrot.slane %v1223_v60, 7  ;;  %v1595_v27 = vrot.slane %v1226_v0, 5  ;;  %v1596_v8 = vrot.slane %v1223_v60, 4  ;;  %v654_v13 = vpop.f32.mrf.mxu1  ;;  %v865_v37 = vadd.f32 %v5339_v25, %v831_v6  ;;  %1531 = vst [vmem:[#allocation2 + $0x54] sm:$0xf] %v1264_v33  ;;  %v4525_v60 = vld [vmem:[%s6857_s4 + $0x68] sm:$0xff] }
  0xda   : > { %v1267_v40 = vshrl.u32 %v1194_v38, 16  ;;  %v1270_v41 = vshll.u32 %v1194_v38, 16  ;;  %1567 = vst [vmem:[#allocation2 + $0x64] sm:$0xf] %v1194_v38  ;;  %v655_v47 = vadd.f32 %v654_v13, %v496_v28  ;;  %v4875_v14 = vld [vmem:[%s5207_s19 + $0x6c] sm:$0xff]   ;;  %2810 = vmatpush.bf16.msrb.mxu2 %v4525_v60 }
  0xdb   : > { %v1228_v9 = vor.u32 %v1226_v0, %v1225_v24  ;;  %v1229_v39 = vrot.slane %v1225_v24, 4  ;;  %v1597_v51 = vor.u32 %v1596_v8, %v1595_v27  ;;  %v1779_v56 = vsel %vm5465_vm5, %v1595_v27, %v1778_v16  ;;  %v4560_v15 = vld [vmem:[%s6857_s4 + $0x168] sm:$0xff] }
  0xdc   : > { %vm895_vm7 = vcmp.ge.f32.partialorder %v865_v37, 0.0  ;;  %v925_v21 = vmul.f32 0.01, %v865_v37  ;;  %v5490_v52 = vrot.slane %v1267_v40, 7  ;;  %v1619_v55 = vrot.slane %v1270_v41, 5  ;;  %2441 = vmatpush.bf16.msrb.mxu0 %v4560_v15 }
  0xdd   : > { %v1237_v43 = vsel %vm5414_vm12, %v1229_v39, %v1236_v29  ;;  %v1526_v44 = vsel %vm5476_vm6, %v1228_v9, %v1525_v63  ;;  %v1598_v2 = vrot.slane %v1597_v51, 4  ;;  %v1621_v57 = vrot.slane %v1267_v40, 4  ;;  %1780 = vst [vmem:[#allocation2 + $0x20] sm:$0x8] %v1779_v56  ;;  %v4524_v63 = vld [vmem:[%s6857_s4 + $0x60] sm:$0xff] }
  0xde   : > { %1527 = vst [vmem:[#allocation2 + $0x24] sm:$0xf] %v1526_v44  ;;  %v955_v46 = vsel %vm895_vm7, %v865_v37, %v925_v21  ;;  %v767_v48 = vpop.f32.mrf.mxu2  ;;  %v1265_v0 = vrot.slane %v5456_v50, 4  ;;  %v1272_v16 = vor.u32 %v1270_v41, %v5490_v52  ;;  %v1620_v50 = vsel %vm5390_vm8, %v1618_v45, %v1619_v55  ;;  %v4559_v9 = vld [vmem:[%s6857_s4 + $0x160] sm:$0xff]  ;;  %2811 = vmatpush.bf16.msrb.mxu2 %v4524_v63 }
  0xdf   : > { %1528 = vst [vmem:[#allocation2 + $0x30] sm:$0xf] %v1237_v43  ;;  %v1165_v59 = vmul.f32 %v5269_v58, %v955_v46  ;;  %v1600_v6 = vsel %vm5390_vm8, %v1598_v2, %v5380_v3  ;;  %v832_v7 = vadd.f32 %v767_v48, %v655_v47  ;;  %v4517_v58 = vld [vmem:[%s6857_s4 + $0x28] sm:$0xff]  ;;  %v2013_v3 = vunpack.c.l.b16 %v5488_v49  ;;  %v4516_v56 = vld [vmem:[%s6857_s4 + $0x20] sm:$0xff]  ;;  %v4523_v46 = vld [vmem:[%s6857_s4 + $0x58] sm:$0xff] }
  0xe0   : > { %1781 = vst [vmem:[#allocation2 + $0x2c] sm:$0xf] %v1600_v6  ;;  %v499_v17 = vpop.f32.mrf.mxu0  ;;  %v2014_v24 = vunpack.c.h.b16 %v5488_v49  ;;  %v1622_v27 = vor.u32 %v1621_v57, %v1619_v55  ;;  %v5513_v13 = vld [vmem:[#allocation2 + $0x54] sm:$0xff]  ;;  %2741 = vmatpush.bf16.msrb.mxu1 %v4517_v58  ;;  %v1273_v29 = vsel %vm5414_vm12, %v1265_v0, %v1272_v16  ;;  %2442 = vmatpush.bf16.msrb.mxu0 %v4559_v9  ;;  %v1274_v47 = vrot.slane %v5490_v52, 4 }
  0xe1   : > { %v657_v20 = vpop.f32.mrf.mxu1  ;;  %1785 = vst [vmem:[#allocation2 + $0x5c] sm:$0xf] %v1620_v50  ;;  %v1195_v8 = vpack.c.bf16 %v1165_v59, %v1165_v59  ;;  %v866_v28 = vadd.f32 %v5339_v25, %v832_v7  ;;  %v6867_v36 = vunpack.c.l.b16 %v5513_v13  ;;  %v2017_v5 = vunpack.c.h.b16 %v5513_v13  ;;  %v4558_v55 = vld [vmem:[%s6857_s4 + $0x158] sm:$0xff]  ;;  %v4557_v16 = vld [vmem:[%s6857_s4 + $0x150] sm:$0xff] }
  0xe2   : > { %v658_v33 = vadd.f32 %v657_v20, %v499_v17  ;;  %1532 = vst [vmem:[#allocation2 + $0x60] sm:$0xf] %v1273_v29  ;;  %v1623_v21 = vrot.slane %v1622_v27, 4  ;;  %v4515_v57 = vld [vmem:[%s6857_s4 + $0x18] sm:$0xff]  ;;  %2812 = vmatpush.bf16.msrb.mxu2 %v4523_v46  ;;  %v4514_v50 = vld [vmem:[%s6857_s4 + $0x10] sm:$0xff]  ;;  %v1052_v17 = vpop.permute.xlu0 %1051  ;;  %v4513_v46 = vld [vmem:[%s6857_s4 + $0x8] sm:$0xff] }
  0xe3   : > { %3946 = vmatmul.msk.bf16.gmra.mxu2 %vm420_vm1, %v4761_v12  ;;  %v1276_v37 = vshrl.u32 %v1195_v8, 16  ;;  %v1279_v38 = vshll.u32 %v1195_v8, 16  ;;  %vm896_vm9 = vcmp.ge.f32.partialorder %v866_v28, 0.0  ;;  %3898 = vmatmul.msk.bf16.gmra.mxu0 %vm420_vm1, %v4875_v14  ;;  %1568 = vst [vmem:[#allocation2 + $0x70] sm:$0xf] %v1195_v8  ;;  %v2085_v51 = vpack.c.b16 %v6867_v36, %v2013_v3  ;;  %v4553_v14 = vld [vmem:[%s6857_s4 + $0x130] sm:$0xff] }
  0xe4   : > { %3921 = vmatmul.msk.bf16.gmra.mxu1 %vm420_vm1, %v5342_v26  ;;  %v926_v39 = vmul.f32 0.01, %v866_v28  ;;  %v5540_v26 = vpack.c.b16 %v2017_v5, %v2014_v24  ;;  %2443 = vmatpush.bf16.msrb.mxu0 %v4558_v55 }
  0xe5   : > { %v5542_v40 = vrot.slane %v1276_v37, 7  ;;  %v1624_v41 = vrot.slane %v1279_v38, 5  ;;  %v1626_v43 = vrot.slane %v1276_v37, 4  ;;  %2309 = vmatmul.bf16.vlgmr.msra.gmra.mxu3 %v2085_v51  ;;  %2742 = vmatpush.bf16.msrb.mxu1 %v4516_v56  ;;  %v4762_v56 = vld [vmem:[%s5207_s19 + $0x80] sm:$0xff]  }
  0xe6   : > { %v770_v44 = vpop.f32.mrf.mxu2  ;;  %v956_v45 = vsel %vm896_vm9, %v866_v28, %v926_v39  ;;  %2371 = vmatpush.bf16.msrb.mxu3 %v4553_v14 }
  0xe7   : > { %v833_v2 = vadd.f32 %v770_v44, %v658_v33  ;;  %v1281_v48 = vor.u32 %v1279_v38, %v5542_v40  ;;  %v1625_v12 = vsel %vm5390_vm8, %v1623_v21, %v1624_v41  ;;  %v1166_v59 = vmul.f32 %v5273_v61, %v956_v45  ;;  %v4522_v61 = vld [vmem:[%s6857_s4 + $0x50] sm:$0xff]  ;;  %v4521_v21 = vld [vmem:[%s6857_s4 + $0x48] sm:$0xff] }
  0xe8   : > { %1786 = vst [vmem:[#allocation2 + $0x68] sm:$0xf] %v1625_v12  ;;  %v501_v0 = vpop.f32.mrf.mxu0  ;;  %v1627_v7 = vor.u32 %v1626_v43, %v1624_v41  ;;  %2813 = vmatpush.bf16.msrb.mxu2 %v4522_v61  ;;  %2444 = vmatpush.bf16.msrb.mxu0 %v4557_v16  ;;  %v1283_v41 = vrot.slane %v5542_v40, 4  ;;  %v4877_v44 = vld [vmem:[%s5207_s19 + $0x74] sm:$0xff]   ;;  %v4520_v16 = vld [vmem:[%s6857_s4 + $0x40] sm:$0xff] }
  0xe9   : > { %v867_v60 = vadd.f32 %v5339_v25, %v833_v2  ;;  %v659_v52 = vpop.f32.mrf.mxu1  ;;  %v1282_v6 = vsel %vm5414_vm12, %v1274_v47, %v1281_v48  ;;  %v1196_v15 = vpack.c.bf16 %v1166_v59, %v1166_v59  ;;  %2743 = vmatpush.bf16.msrb.mxu1 %v4515_v57  ;;  %v5574_v29 = vld [vmem:[#allocation2 + $0x60] sm:$0xff]  ;;  %v4556_v2 = vld [vmem:[%s6857_s4 + $0x148] sm:$0xff] }
  0xea   : > { %1533 = vst [vmem:[#allocation2 + $0x6c] sm:$0xf] %v1282_v6  ;;  %v660_v28 = vadd.f32 %v659_v52, %v501_v0  ;;  %v1628_v33 = vrot.slane %v1627_v7, 4  ;;  %v6866_v45 = vunpack.c.l.b16 %v5574_v29  ;;  %v2020_v57 = vunpack.c.h.b16 %v5574_v29 }
  0xeb   : > { %vm897_vm10 = vcmp.ge.f32.partialorder %v867_v60, 0.0  ;;  %v927_v58 = vmul.f32 0.01, %v867_v60  ;;  %v1285_v20 = vshrl.u32 %v1196_v15, 16  ;;  %v1288_v27 = vshll.u32 %v1196_v15, 16 }
  0xec   : > { %1569 = vst [vmem:[#allocation2 + $0x7c] sm:$0xf] %v1196_v15  ;;  %2814 = vmatpush.bf16.msrb.mxu2 %v4521_v21  ;;  %2445 = vmatpush.bf16.msrb.mxu0 %v4556_v2 }
  0xed   : > { %v957_v8 = vsel %vm897_vm10, %v867_v60, %v927_v58  ;;  %v5576_v38 = vrot.slane %v1285_v20, 7  ;;  %v1629_v9 = vrot.slane %v1288_v27, 5  ;;  %v1631_v39 = vrot.slane %v1285_v20, 4  ;;  %2744 = vmatpush.bf16.msrb.mxu1 %v4514_v50  ;;  %v5608_v50 = vld [vmem:[#allocation2 + $0x5c] sm:$0xf] }
  0xee   : > { %v1167_v63 = vmul.f32 %v1052_v17, %v957_v8  ;;  %v772_v37 = vpop.f32.mrf.mxu2  ;;  %v2018_v21 = vunpack.c.l.b16 %v5608_v50 }
  0xef   : > { %v834_v51 = vadd.f32 %v772_v37, %v660_v28  ;;  %v1290_v47 = vor.u32 %v1288_v27, %v5576_v38  ;;  %v1630_v48 = vsel %vm5390_vm8, %v1628_v33, %v1629_v9  ;;  %v1632_v12 = vor.u32 %v1631_v39, %v1629_v9  ;;  %v5595_v59 = vld [vmem:[#allocation2 + $0x68] sm:$0xf]  ;;  %v4555_v33 = vld [vmem:[%s6857_s4 + $0x140] sm:$0xff] }
  0xf0   : > { %v1197_v43 = vpack.c.bf16 %v1167_v63, %v1167_v63  ;;  %v504_v55 = vpop.f32.mrf.mxu0  ;;  %1787 = vst [vmem:[#allocation2 + $0x74] sm:$0xf] %v1630_v48  ;;  %v4512_v63 = vld [vmem:[%s6857_s4] sm:$0xff]  ;;  %v2021_v37 = vunpack.c.l.b16 %v5595_v59  ;;  %v1292_v9 = vrot.slane %v5576_v38, 4  ;;  %2815 = vmatpush.bf16.msrb.mxu2 %v4520_v16  ;;  %2446 = vmatpush.bf16.msrb.mxu0 %v4555_v33 }
  0xf1   : > { %v662_v40 = vpop.f32.mrf.mxu1  ;;  %v868_v52 = vadd.f32 %v5339_v25, %v834_v51  ;;  %v5598_v7 = vld [vmem:[#allocation2 + $0x6c] sm:$0xff]  ;;  %v1291_v14 = vsel %vm5414_vm12, %v1283_v41, %v1290_v47  ;;  %v1633_v15 = vrot.slane %v1632_v12, 4  ;;  %2745 = vmatpush.bf16.msrb.mxu1 %v4513_v46 }
  0xf2   : > { %v1294_v60 = vshrl.u32 %v1197_v43, 16  ;;  %v1297_v0 = vshll.u32 %v1197_v43, 16  ;;  %v663_v6 = vadd.f32 %v662_v40, %v504_v55  ;;  %1570 = vst [vmem:[#allocation2 + $0x88] sm:$0xf] %v1197_v43  ;;  %v6863_v58 = vunpack.c.l.b16 %v5598_v7 }
  0xf3   : > { %3947 = vmatmul.msk.bf16.gmra.mxu2 %vm420_vm1, %v4762_v56  ;;  %v6865_v61 = vunpack.c.h.b16 %v5598_v7  ;;  %1534 = vst [vmem:[#allocation2 + $0x78] sm:$0xf] %v1291_v14  ;;  %vm898_vm13 = vcmp.ge.f32.partialorder %v868_v52, 0.0  ;;  %3899 = vmatmul.msk.bf16.gmra.mxu0 %vm420_vm1, %v4877_v44  ;;  %v928_v8 = vmul.f32 0.01, %v868_v52  ;;  %v5645_v2 = vpack.c.b16 %v2021_v37, %v2018_v21 }
  0xf4   : > { %v5610_v17 = vrot.slane %v1294_v60, 7  ;;  %v1634_v20 = vrot.slane %v1297_v0, 5  ;;  %v1636_v27 = vrot.slane %v1294_v60, 4  ;;  %3922 = vmatmul.msk.bf16.gmra.mxu1 %vm420_vm1, %v5369_v54  ;;  %v2088_v28 = vpack.c.b16 %v6863_v58, %v6866_v45  ;;  %v4509_v58 = vld [vmem:[#allocation2 + $0x28] sm:$0xf] }
  0xf5   : > { %v5630_v54 = vpack.c.b16 %v6865_v61, %v2020_v57  ;;  %v958_v41 = vsel %vm898_vm13, %v868_v52, %v928_v8  ;;  %2746 = vmatpush.bf16.msrb.mxu1 %v4512_v63 }
  0xf6   : > { %v1299_v39 = vor.u32 %v1297_v0, %v5610_v17  ;;  %v1635_v51 = vsel %vm5390_vm8, %v1633_v15, %v1634_v20  ;;  %v775_v56 = vpop.f32.mrf.mxu2  ;;  %2314 = vmatmul.bf16.gmra.mxu3 %v2088_v28  ;;  %v1168_v38 = vmul.f32 %v5309_v11, %v958_v41  ;;  %v1637_v46 = vor.u32 %v1636_v27, %v1634_v20 }
  0xf7   : > { %1788 = vst [vmem:[#allocation2 + $0x80] sm:$0xf] %v1635_v51  ;;  %v835_v43 = vadd.f32 %v775_v56, %v663_v6  ;;  %v1301_v33 = vrot.slane %v5610_v17, 4  ;;  %v5656_v51 = vld [vmem:[#allocation2 + $0x74] sm:$0xf] }
  0xf8   : > { %v1300_v44 = vsel %vm5414_vm12, %v1292_v9, %v1299_v39  ;;  %v506_v48 = vpop.f32.mrf.mxu0  ;;  %v1198_v55 = vpack.c.bf16 %v1168_v38, %v1168_v38  ;;  %v1638_v52 = vrot.slane %v1637_v46, 4  ;;  %v4505_v9 = vld [vmem:[%s5207_s19 + $0x88] sm:$0xff] }
  0xf9   : > { %1535 = vst [vmem:[#allocation2 + $0x84] sm:$0xf] %v1300_v44  ;;  %v869_v47 = vadd.f32 %v5339_v25, %v835_v43  ;;  %v664_v12 = vpop.f32.mrf.mxu1  ;;  %v4878_v44 = vld [vmem:[%s5207_s19 + $0x7c] sm:$0xff]   ;;  %s3773_s19 = sshll.u32 %s6629_s13, 4  ;;  %s3774_s19 = int_to_ptr.vmem [resolvable:$true] %s3773_s19 }
  0xfa   : > { %v1303_v60 = vshrl.u32 %v1198_v55, 16  ;;  %v1306_v0 = vshll.u32 %v1198_v55, 16  ;;  %1571 = vst [vmem:[#allocation2 + $0x94] sm:$0xf] %v1198_v55  ;;  %v5648_v11 = vld [vmem:[#allocation2 + $0x78] sm:$0xff]  ;;  %v665_v14 = vadd.f32 %v664_v12, %v506_v48 }
  0xfb   : > { %vm899_vm14 = vcmp.ge.f32.partialorder %v869_v47, 0.0  ;;  %v929_v40 = vmul.f32 0.01, %v869_v47  ;;  %v6862_v39 = vunpack.c.l.b16 %v5648_v11 }
  0xfc   : > { %v1305_v15 = vrot.slane %v1303_v60, 7  ;;  %v1639_v16 = vrot.slane %v1306_v0, 5  ;;  %v1641_v20 = vrot.slane %v1303_v60, 4 }
  0xfd   : > { %v959_v6 = vsel %vm899_vm14, %v869_v47, %v929_v40  ;;  %v4552_v40 = vld [vmem:[%s6857_s4 + $0x128] sm:$0xff] }
  0xfe   : > { %v1169_v27 = vmul.f32 %v5278_v62, %v959_v6  ;;  %v777_v8 = vpop.f32.mrf.mxu2  ;;  %v5651_v28 = vld [vmem:[#allocation2 + $0x80] sm:$0xf]  ;;  %v1308_v56 = vor.u32 %v1306_v0, %v1305_v15  ;;  %v1640_v41 = vsel %vm5390_vm8, %v1638_v52, %v1639_v16  ;;  %v1642_v43 = vor.u32 %v1641_v20, %v1639_v16  ;;  %2372 = vmatpush.bf16.msrb.mxu3 %v4552_v40 }
  0xff   : > { %v836_v63 = vadd.f32 %v777_v8, %v665_v14  ;;  %v6868_v62 = vunpack.c.l.b16 %v5651_v28  ;;  %1789 = vst [vmem:[#allocation2 + $0x8c] sm:$0xf] %v1640_v41  ;;  %v6864_v52 = vunpack.c.h.b16 %v5648_v11  ;;  %v2024_v6 = vunpack.c.l.b16 %v5656_v51 }
 0x100   : > { %v5661_v38 = vld [vmem:[#allocation2 + $0x84] sm:$0xff]  ;;  %v1199_v46 = vpack.c.bf16 %v1169_v27, %v1169_v27  ;;  %v509_v47 = vpop.f32.mrf.mxu0  ;;  %v1309_v60 = vsel %vm5414_vm12, %v1301_v33, %v1308_v56 }
 0x101   : > { %v870_v17 = vadd.f32 %v5339_v25, %v836_v63  ;;  %v667_v48 = vpop.f32.mrf.mxu1  ;;  %v6860_v12 = vunpack.c.l.b16 %v5661_v38  ;;  %v6861_v55 = vunpack.c.h.b16 %v5661_v38  ;;  %1536 = vst [vmem:[#allocation2 + $0x90] sm:$0xf] %v1309_v60  ;;  %v5692_v33 = vpack.c.b16 %v6868_v62, %v2024_v6 }
 0x102   : > { %v668_v0 = vadd.f32 %v667_v48, %v509_v47  ;;  %v1312_v14 = vshrl.u32 %v1199_v46, 16  ;;  %v1315_v16 = vshll.u32 %v1199_v46, 16  ;;  %1572 = vst [vmem:[#allocation2 + $0xa0] sm:$0xf] %v1199_v46  ;;  %v1643_v63 = vrot.slane %v1642_v43, 4  ;;  %v1067_v47 = vpop.permute.xlu0 %1066 }
 0x103   : > { %vm900_vm15 = vcmp.ge.f32.partialorder %v870_v17, 0.0  ;;  %3948 = vmatmul.msk.bf16.gmra.mxu2 %vm420_vm1, %v4505_v9  ;;  %v2091_v20 = vpack.c.b16 %v6860_v12, %v6862_v39  ;;  %v930_v27 = vmul.f32 0.01, %v870_v17  ;;  %3900 = vmatmul.msk.bf16.gmra.mxu0 %vm420_vm1, %v4878_v44  ;;  %v5686_v8 = vpack.c.b16 %v6861_v55, %v6864_v52  ;;  %v5698_v52 = vld [vmem:[#allocation2 + $0x50] sm:$0xf] }
 0x104   : > { %3923 = vmatmul.msk.bf16.gmra.mxu1 %vm420_vm1, %v5442_v34  ;;  %v1314_v9 = vrot.slane %v1312_v14, 7  ;;  %v1644_v56 = vrot.slane %v1315_v16, 5  ;;  %v1646_v41 = vrot.slane %v1312_v14, 4  ;;  %v1310_v34 = vrot.slane %v1305_v15, 4 }
 0x105   : > { %v960_v44 = vsel %vm900_vm15, %v870_v17, %v930_v27  ;;  %v4510_v27 = vld [vmem:[#allocation2 + $0x2c] sm:$0xf0] }
 0x106   : > { %v780_v46 = vpop.f32.mrf.mxu2  ;;  %v1317_v48 = vor.u32 %v1315_v16, %v1314_v9  ;;  %v1645_v40 = vsel %vm5390_vm8, %v1643_v63, %v1644_v56  ;;  %2319 = vmatmul.bf16.gmra.mxu3 %v2091_v20  ;;  %v1170_v60 = vmul.f32 %v1067_v47, %v960_v44  ;;  %v1647_v17 = vor.u32 %v1646_v41, %v1644_v56  ;;  %v4107_v16 = vld [vmem:[#allocation2 + $0x24] sm:$0xf]  ;;  %v4109_v63 = vld [vmem:[#allocation2 + $0x30] sm:$0xf0] }
 0x107   : > { %1790 = vst [vmem:[#allocation2 + $0x98] sm:$0xf] %v1645_v40  ;;  %v837_v12 = vadd.f32 %v780_v46, %v668_v0  ;;  %v4112_v0 = vor.u32 %v4509_v58, %v4109_v63  ;;  %v1319_v45 = vrot.slane %v1314_v9, 4 }
 0x108   : > { %v1318_v55 = vsel %vm5414_vm12, %v1310_v34, %v1317_v48  ;;  %v511_v39 = vpop.f32.mrf.mxu0  ;;  %v1200_v14 = vpack.c.bf16 %v1170_v60, %v1170_v60  ;;  %v5701_v47 = vld [vmem:[#allocation2 + $0x90] sm:$0xff]  ;;  %v6869_v34 = vunpack.c.l.b16 %v5698_v52  ;;  %v4108_v48 = vor.u32 %v4510_v27, %v4107_v16 }
 0x109   : > { %v669_v43 = vpop.f32.mrf.mxu1  ;;  %1537 = vst [vmem:[#allocation2 + $0x9c] sm:$0xf] %v1318_v55  ;;  %v871_v15 = vadd.f32 %v5339_v25, %v837_v12  ;;  %v5704_v55 = vld [vmem:[#allocation2 + $0x8c] sm:$0xf]  ;;  %v1648_v56 = vrot.slane %v1647_v17, 4  ;;  %v6871_v17 = vunpack.c.l.b16 %v5701_v47  ;;  %v6873_v50 = vunpack.c.h.b16 %v5701_v47 }
 0x10a   : > { %v1321_v20 = vshrl.u32 %v1200_v14, 16  ;;  %v1324_v40 = vshll.u32 %v1200_v14, 16  ;;  %1573 = vst [vmem:[#allocation2 + $0xac] sm:$0xf] %v1200_v14  ;;  %v670_v46 = vadd.f32 %v669_v43, %v511_v39  ;;  %v2087_v58 = vpack.c.b16 %v2018_v21, %v6869_v34 }
 0x10b   : > { %vm901_vm1 = vcmp.ge.f32.partialorder %v871_v15, 0.0  ;;  %v931_v44 = vmul.f32 0.01, %v871_v15  ;;  %v2030_v16 = vunpack.c.l.b16 %v5704_v55 }
 0x10c   : > { %v1323_v41 = vrot.slane %v1321_v20, 7  ;;  %v1649_v12 = vrot.slane %v1324_v40, 5  ;;  %v1651_v60 = vrot.slane %v1321_v20, 4 }
 0x10d   : > { %v961_v36 = vsel %vm901_vm1, %v871_v15, %v931_v44 }
 0x10e   : > { %v782_v61 = vpop.f32.mrf.mxu2  ;;  %v5710_v39 = vld [vmem:[#allocation2 + $0x98] sm:$0xf]  ;;  %v1326_v43 = vor.u32 %v1324_v40, %v1323_v41  ;;  %v1650_v14 = vsel %vm5390_vm8, %v1648_v56, %v1649_v12  ;;  %v1171_v9 = vmul.f32 %v5328_v19, %v961_v36  ;;  %v1652_v40 = vor.u32 %v1651_v60, %v1649_v12 }
 0x10f   : > { %v838_v62 = vadd.f32 %v782_v61, %v670_v46  ;;  %1791 = vst [vmem:[#allocation2 + $0xa4] sm:$0xf] %v1650_v14  ;;  %v6874_v21 = vunpack.c.l.b16 %v5710_v39  ;;  %v1328_v34 = vrot.slane %v1323_v41, 4 }
 0x110   : > { %v514_v15 = vpop.f32.mrf.mxu0  ;;  %v5718_v63 = vld [vmem:[#allocation2 + $0x9c] sm:$0xff]  ;;  %v1327_v20 = vsel %vm5414_vm12, %v1319_v45, %v1326_v43  ;;  %v1201_v56 = vpack.c.bf16 %v1171_v9, %v1171_v9  ;;  %v1653_v43 = vrot.slane %v1652_v40, 4 }
 0x111   : > { %v872_v61 = vadd.f32 %v5339_v25, %v838_v62  ;;  %v672_v27 = vpop.f32.mrf.mxu1  ;;  %v6870_v46 = vunpack.c.l.b16 %v5718_v63  ;;  %1538 = vst [vmem:[#allocation2 + $0xa8] sm:$0xf] %v1327_v20  ;;  %v6872_v25 = vunpack.c.h.b16 %v5718_v63  ;;  %v5734_v45 = vpack.c.b16 %v6874_v21, %v2030_v16 }
 0x112   : > { %v673_v44 = vadd.f32 %v672_v27, %v514_v15  ;;  %v1330_v62 = vshrl.u32 %v1201_v56, 16  ;;  %v1333_v12 = vshll.u32 %v1201_v56, 16  ;;  %1574 = vst [vmem:[#allocation2 + $0xb8] sm:$0xf] %v1201_v56 }
 0x113   : > { %vm902_vm0 = vcmp.ge.f32.partialorder %v872_v61, 0.0  ;;  %v932_v19 = vmul.f32 0.01, %v872_v61  ;;  %2816 = vmatmul.bf16.vlgmr.msrb.gmra.mxu2 %v4112_v0  ;;  %v2094_v36 = vpack.c.b16 %v6870_v46, %v6871_v17  ;;  %2447 = vmatmul.bf16.vlgmr.msrb.gmra.mxu0 %v2087_v58  ;;  %v5740_v0 = vpack.c.b16 %v6872_v25, %v6873_v50 }
 0x114   : > { %2747 = vmatmul.bf16.vlgmr.msrb.gmra.mxu1 %v4108_v48  ;;  %v1332_v14 = vrot.slane %v1330_v62, 7  ;;  %v1654_v9 = vrot.slane %v1333_v12, 5  ;;  %v1656_v15 = vrot.slane %v1330_v62, 4  ;;  %v4551_v62 = vld [vmem:[%s6857_s4 + $0x120] sm:$0xff] }
 0x115   : > { %v962_v60 = vsel %vm902_vm0, %v872_v61, %v932_v19  ;;  %2373 = vmatpush.bf16.msrb.mxu3 %v4551_v62 }
 0x116   : > { %v1172_v58 = vmul.f32 %v5284_v1, %v962_v60  ;;  %v785_v48 = vpop.f32.mrf.mxu2  ;;  %2324 = vmatmul.bf16.gmra.mxu3 %v2094_v36  ;;  %v1335_v46 = vor.u32 %v1333_v12, %v1332_v14  ;;  %v1655_v61 = vsel %vm5390_vm8, %v1653_v43, %v1654_v9  ;;  %v1657_v56 = vor.u32 %v1656_v15, %v1654_v9  ;;  %v5748_v1 = vld [vmem:[%s6856_s3] ss:$0 sm:$0xff] }
 0x117   : > { %v839_v27 = vadd.f32 %v785_v48, %v673_v44  ;;  %1792 = vst [vmem:[#allocation2 + $0xb0] sm:$0xf] %v1655_v61  ;;  %v1818_v44 = vld [vmem:[#allocation2 + $0x3c] sm:$0xff]  ;;  %v1337_v15 = vrot.slane %v1332_v14, 4 }
 0x118   : > { %v1202_v20 = vpack.c.bf16 %v1172_v58, %v1172_v58  ;;  %v516_v19 = vpop.f32.mrf.mxu0  ;;  %v1336_v41 = vsel %vm5414_vm12, %v1328_v34, %v1335_v46  ;;  %v1658_v12 = vrot.slane %v1657_v56, 4  ;;  %v2521_v56 = vunpack.c.h.b16 %v1818_v44  ;;  %v5761_v50 = vld [vmem:[#allocation2 + $0xa8] sm:$0xff] }
 0x119   : > { %v674_v17 = vpop.f32.mrf.mxu1  ;;  %v873_v36 = vadd.f32 %v5748_v1, %v839_v27  ;;  %1539 = vst [vmem:[#allocation2 + $0xb4] sm:$0xf] %v1336_v41  ;;  %v2520_v21 = vunpack.c.l.b16 %v1818_v44 }
 0x11a   : > { %v1339_v25 = vshrl.u32 %v1202_v20, 16  ;;  %v1342_v40 = vshll.u32 %v1202_v20, 16  ;;  %1575 = vst [vmem:[#allocation2 + $0xc4] sm:$0xf] %v1202_v20  ;;  %v675_v9 = vadd.f32 %v674_v17, %v516_v19  ;;  %v1082_v20 = vpop.permute.xlu0 %1081  ;;  %v5765_v19 = vld [vmem:[#allocation2 + $0xa4] sm:$0xf] }
 0x11b   : > { %vm903_vm2 = vcmp.ge.f32.partialorder %v873_v36, 0.0  ;;  %v933_v48 = vmul.f32 0.01, %v873_v36  ;;  %v2036_v49 = vunpack.c.l.b16 %v5765_v19 }
 0x11c   : > { %v5756_v60 = vrot.slane %v1339_v25, 7  ;;  %v1659_v43 = vrot.slane %v1342_v40, 5  ;;  %v1661_v58 = vrot.slane %v1339_v25, 4 }
 0x11d   : > { %v963_v61 = vsel %vm903_vm2, %v873_v36, %v933_v48  ;;  %v2527_v36 = vpack.c.b16 %v2014_v24, %v2521_v56  ;;  %v2526_v48 = vpack.c.b16 %v2013_v3, %v2520_v21 }
 0x11e   : > { %v1344_v27 = vor.u32 %v1342_v40, %v5756_v60  ;;  %v1660_v34 = vsel %vm5390_vm8, %v1658_v12, %v1659_v43  ;;  %v787_v46 = vpop.f32.mrf.mxu2  ;;  %v1173_v17 = vmul.f32 %v1082_v20, %v963_v61  ;;  %v1662_v14 = vor.u32 %v1661_v58, %v1659_v43 }
 0x11f   : > { %1793 = vst [vmem:[#allocation2 + $0xbc] sm:$0xf] %v1660_v34  ;;  %v840_v41 = vadd.f32 %v787_v46, %v675_v9  ;;  %v5772_v9 = vld [vmem:[#allocation2 + $0xb0] sm:$0xf]  ;;  %v2090_v43 = vpack.c.b16 %v2024_v6, %v2021_v37  ;;  %v2038_v6 = vunpack.c.h.b16 %v5761_v50 }
 0x120   : > { %v1345_v25 = vsel %vm5414_vm12, %v1337_v15, %v1344_v27  ;;  %v519_v62 = vpop.f32.mrf.mxu0  ;;  %v1203_v44 = vpack.c.bf16 %v1173_v17, %v1173_v17  ;;  %v6888_v15 = vunpack.c.l.b16 %v5761_v50  ;;  %v2039_v58 = vunpack.c.l.b16 %v5772_v9  ;;  %v5780_v24 = vld [vmem:[#allocation2 + $0xb4] sm:$0xff] }
 0x121   : > { %1540 = vst [vmem:[#allocation2 + $0xc0] sm:$0xf] %v1345_v25  ;;  %v874_v40 = vadd.f32 %v5748_v1, %v840_v41  ;;  %v677_v12 = vpop.f32.mrf.mxu1  ;;  %v6875_v46 = vunpack.c.l.b16 %v5780_v24  ;;  %v6876_v59 = vunpack.c.h.b16 %v5780_v24  ;;  %v1663_v37 = vrot.slane %v1662_v14, 4 }
 0x122   : > { %v678_v34 = vadd.f32 %v677_v12, %v519_v62  ;;  %v1348_v3 = vshrl.u32 %v1203_v44, 16  ;;  %v1351_v21 = vshll.u32 %v1203_v44, 16  ;;  %1576 = vst [vmem:[#allocation2 + $0xd0] sm:$0xf] %v1203_v44  ;;  %v5790_v20 = vpack.c.b16 %v2039_v58, %v2036_v49 }
 0x123   : > { %vm904_vm3 = vcmp.ge.f32.partialorder %v874_v40, 0.0  ;;  %v934_v27 = vmul.f32 0.01, %v874_v40  ;;  %2821 = vmatmul.bf16.gmra.mxu2 %v2527_v36  ;;  %2452 = vmatmul.bf16.gmra.mxu0 %v2090_v43  ;;  %v2097_v14 = vpack.c.b16 %v6875_v46, %v6888_v15  ;;  %v5801_v62 = vpack.c.b16 %v6876_v59, %v2038_v6 }
 0x124   : > { %2752 = vmatmul.bf16.gmra.mxu1 %v2526_v48  ;;  %v1350_v61 = vrot.slane %v1348_v3, 7  ;;  %v1664_v41 = vrot.slane %v1351_v21, 5  ;;  %v1666_v56 = vrot.slane %v1348_v3, 4  ;;  %v1346_v12 = vrot.slane %v5756_v60, 4 }
 0x125   : > { %v964_v51 = vsel %vm904_vm3, %v874_v40, %v934_v27 }
 0x126   : > { %v1174_v25 = vmul.f32 %v5348_v32, %v964_v51  ;;  %v790_v17 = vpop.f32.mrf.mxu2  ;;  %v1353_v36 = vor.u32 %v1351_v21, %v1350_v61  ;;  %v1665_v48 = vsel %vm5390_vm8, %v1663_v37, %v1664_v41  ;;  %v1667_v32 = vor.u32 %v1666_v56, %v1664_v41  ;;  %2329 = vmatmul.bf16.gmra.mxu3 %v2097_v14 }
 0x127   : > { %v841_v40 = vadd.f32 %v790_v17, %v678_v34  ;;  %1794 = vst [vmem:[#allocation2 + $0xc8] sm:$0xf] %v1665_v48  ;;  %v5813_v48 = vld [vmem:[#allocation2 + $0xbc] sm:$0xf]  ;;  %v1355_v59 = vrot.slane %v1350_v61, 4  ;;  %v6923_v61 = vunpack.c.l.b16 %v5513_v13 }
 0x128   : > { %v1204_v44 = vpack.c.bf16 %v1174_v25, %v1174_v25  ;;  %v521_v27 = vpop.f32.mrf.mxu0  ;;  %v1354_v3 = vsel %vm5414_vm12, %v1346_v12, %v1353_v36  ;;  %v1668_v21 = vrot.slane %v1667_v32, 4  ;;  %v2530_v32 = vpack.c.b16 %v2020_v57, %v2017_v5 }
 0x129   : > { %v875_v43 = vadd.f32 %v5748_v1, %v841_v40  ;;  %v679_v34 = vpop.f32.mrf.mxu1  ;;  %1541 = vst [vmem:[#allocation2 + $0xcc] sm:$0xf] %v1354_v3  ;;  %v5811_v40 = vld [vmem:[#allocation2 + $0xc0] sm:$0xff]  ;;  %v6924_v3 = vunpack.c.l.b16 %v5574_v29 }
 0x12a   : > { %v1357_v51 = vshrl.u32 %v1204_v44, 16  ;;  %v1360_v17 = vshll.u32 %v1204_v44, 16  ;;  %1577 = vst [vmem:[#allocation2 + $0xdc] sm:$0xf] %v1204_v44  ;;  %v680_v25 = vadd.f32 %v679_v34, %v521_v27  ;;  %v6922_v27 = vunpack.c.l.b16 %v5651_v28 }
 0x12b   : > { %vm905_vm5 = vcmp.ge.f32.partialorder %v875_v43, 0.0  ;;  %v935_v60 = vmul.f32 0.01, %v875_v43 }
 0x12c   : > { %v5809_v46 = vrot.slane %v1357_v51, 7  ;;  %v1669_v37 = vrot.slane %v1360_v17, 5  ;;  %v1671_v41 = vrot.slane %v1357_v51, 4  ;;  %v2093_v34 = vpack.c.b16 %v2030_v16, %v6922_v27 }
 0x12d   : > { %v965_v56 = vsel %vm905_vm5, %v875_v43, %v935_v60  ;;  %v2529_v51 = vpack.c.b16 %v6924_v3, %v6923_v61 }
 0x12e   : > { %v792_v14 = vpop.f32.mrf.mxu2  ;;  %v1362_v12 = vor.u32 %v1360_v17, %v5809_v46  ;;  %v1670_v36 = vsel %vm5390_vm8, %v1668_v21, %v1669_v37  ;;  %v1175_v44 = vmul.f32 %v5295_v4, %v965_v56  ;;  %v5831_v17 = vld [vmem:[#allocation2 + $0xc8] sm:$0xf]  ;;  %v6880_v4 = vunpack.c.l.b16 %v5811_v40 }
 0x12f   : > { %1795 = vst [vmem:[#allocation2 + $0xd4] sm:$0xf] %v1670_v36  ;;  %v842_v43 = vadd.f32 %v792_v14, %v680_v25  ;;  %v2042_v21 = vunpack.c.l.b16 %v5813_v48  ;;  %v6877_v28 = vunpack.c.l.b16 %v5831_v17  ;;  %v1672_v55 = vor.u32 %v1671_v41, %v1669_v37 }
 0x130   : > { %v1363_v60 = vsel %vm5414_vm12, %v1355_v59, %v1362_v12  ;;  %v524_v5 = vpop.f32.mrf.mxu0  ;;  %v1205_v16 = vpack.c.bf16 %v1175_v44, %v1175_v44  ;;  %v5839_v29 = vld [vmem:[#allocation2 + $0xcc] sm:$0xff]  ;;  %v6881_v56 = vunpack.c.h.b16 %v5811_v40  ;;  %v4550_v12 = vld [vmem:[%s6857_s4 + $0x118] sm:$0xff] }
 0x131   : > { %v682_v57 = vpop.f32.mrf.mxu1  ;;  %1542 = vst [vmem:[#allocation2 + $0xd8] sm:$0xf] %v1363_v60  ;;  %v876_v13 = vadd.f32 %v5748_v1, %v842_v43  ;;  %v6878_v59 = vunpack.c.l.b16 %v5839_v29  ;;  %v6879_v14 = vunpack.c.h.b16 %v5839_v29  ;;  %v5851_v37 = vpack.c.b16 %v6877_v28, %v2042_v21  ;;  %2374 = vmatpush.bf16.msrb.mxu3 %v4550_v12 }
 0x132   : > { %v683_v25 = vadd.f32 %v682_v57, %v524_v5  ;;  %v1366_v41 = vshrl.u32 %v1205_v16, 16  ;;  %v1369_v36 = vshll.u32 %v1205_v16, 16  ;;  %1578 = vst [vmem:[#allocation2 + $0xe8] sm:$0xf] %v1205_v16  ;;  %v1673_v27 = vrot.slane %v1672_v55, 4  ;;  %v1097_v57 = vpop.permute.xlu0 %1096 }
 0x133   : > { %2826 = vmatmul.bf16.gmra.mxu2 %v2530_v32  ;;  %vm906_vm6 = vcmp.ge.f32.partialorder %v876_v13, 0.0  ;;  %2457 = vmatmul.bf16.gmra.mxu0 %v2093_v34  ;;  %v936_v32 = vmul.f32 0.01, %v876_v13  ;;  %v2100_v44 = vpack.c.b16 %v6878_v59, %v6880_v4  ;;  %v5861_v43 = vpack.c.b16 %v6879_v14, %v6881_v56 }
 0x134   : > { %2757 = vmatmul.bf16.gmra.mxu1 %v2529_v51  ;;  %v1368_v61 = vrot.slane %v1366_v41, 7  ;;  %v1674_v3 = vrot.slane %v1369_v36, 5  ;;  %v1676_v60 = vrot.slane %v1366_v41, 4  ;;  %v1364_v16 = vrot.slane %v5809_v46, 4 }
 0x135   : > { %v966_v34 = vsel %vm906_vm6, %v876_v13, %v936_v32 }
 0x136   : > { %v795_v5 = vpop.f32.mrf.mxu2  ;;  %v1371_v28 = vor.u32 %v1369_v36, %v1368_v61  ;;  %v1675_v12 = vsel %vm5390_vm8, %v1673_v27, %v1674_v3  ;;  %v1176_v59 = vmul.f32 %v1097_v57, %v966_v34  ;;  %2334 = vmatmul.bf16.gmra.mxu3 %v2100_v44  ;;  %v1677_v56 = vor.u32 %v1676_v60, %v1674_v3 }
 0x137   : > { %v843_v51 = vadd.f32 %v795_v5, %v683_v25  ;;  %1796 = vst [vmem:[#allocation2 + $0xe0] sm:$0xf] %v1675_v12  ;;  %v6925_v57 = vunpack.c.h.b16 %v5598_v7  ;;  %v6928_v60 = vunpack.c.l.b16 %v5648_v11 }
 0x138   : > { %v526_v4 = vpop.f32.mrf.mxu0  ;;  %v1372_v41 = vsel %vm5414_vm12, %v1364_v16, %v1371_v28  ;;  %v1206_v13 = vpack.c.bf16 %v1176_v59, %v1176_v59  ;;  %v5869_v5 = vld [vmem:[#allocation2 + $0xd8] sm:$0xff]  ;;  %v1678_v44 = vrot.slane %v1677_v56, 4  ;;  %v6926_v28 = vunpack.c.h.b16 %v5648_v11 }
 0x139   : > { %v877_v14 = vadd.f32 %v5748_v1, %v843_v51  ;;  %v684_v55 = vpop.f32.mrf.mxu1  ;;  %1543 = vst [vmem:[#allocation2 + $0xe4] sm:$0xf] %v1372_v41  ;;  %v6927_v59 = vunpack.c.l.b16 %v5598_v7  ;;  %v6885_v56 = vunpack.c.l.b16 %v5869_v5 }
 0x13a   : > { %v1375_v46 = vshrl.u32 %v1206_v13, 16  ;;  %v1378_v36 = vshll.u32 %v1206_v13, 16  ;;  %1579 = vst [vmem:[#allocation2 + $0xf4] sm:$0xf] %v1206_v13  ;;  %v685_v27 = vadd.f32 %v684_v55, %v526_v4  ;;  %v2533_v3 = vpack.c.b16 %v6926_v28, %v6925_v57 }
 0x13b   : > { %vm907_vm7 = vcmp.ge.f32.partialorder %v877_v14, 0.0  ;;  %v937_v25 = vmul.f32 0.01, %v877_v14  ;;  %v2532_v16 = vpack.c.b16 %v6928_v60, %v6927_v59  ;;  %v1373_v55 = vrot.slane %v1368_v61, 4  ;;  %v5897_v60 = vld [vmem:[#allocation2 + $0xd4] sm:$0xf] }
 0x13c   : > { %v1377_v12 = vrot.slane %v1375_v46, 7  ;;  %v1679_v41 = vrot.slane %v1378_v36, 5  ;;  %v6884_v59 = vunpack.c.h.b16 %v5869_v5 }
 0x13d   : > { %v967_v32 = vsel %vm907_vm7, %v877_v14, %v937_v25  ;;  %v1681_v14 = vrot.slane %v1375_v46, 4  ;;  %vm1557_vm7 = vcmask 1040384  }
 0x13e   : > { %v1177_v34 = vmul.f32 %v5361_v42, %v967_v32  ;;  %v797_v51 = vpop.f32.mrf.mxu2  ;;  %v6929_v42 = vunpack.c.l.b16 %v5710_v39  ;;  %v1380_v32 = vor.u32 %v1378_v36, %v1377_v12  ;;  %v1680_v7 = vsel %vm5390_vm8, %v1678_v44, %v1679_v41  ;;  %v5888_v46 = vld [vmem:[#allocation2 + $0xe0] sm:$0xf] }
 0x13f   : > { %v844_v4 = vadd.f32 %v797_v51, %v685_v27  ;;  %v1682_v57 = vor.u32 %v1681_v14, %v1679_v41  ;;  %1797 = vst [vmem:[#allocation2 + $0xec] sm:$0xf] %v1680_v7 }
 0x140   : > { %v1207_v13 = vpack.c.bf16 %v1177_v34, %v1177_v34  ;;  %v2096_v25 = vpack.c.b16 %v2036_v49, %v6929_v42  ;;  %v529_v11 = vpop.f32.mrf.mxu0  ;;  %v5891_v51 = vld [vmem:[#allocation2 + $0xe4] sm:$0xff]  ;;  %v1381_v19 = vsel %vm5414_vm12, %v1373_v55, %v1380_v32  ;;  %v6886_v55 = vunpack.c.l.b16 %v5888_v46 }
 0x141   : > { %v687_v28 = vpop.f32.mrf.mxu1  ;;  %v878_v34 = vadd.f32 %v5748_v1, %v844_v4  ;;  %v1683_v49 = vrot.slane %v1682_v57, 4  ;;  %v6882_v36 = vunpack.c.l.b16 %v5891_v51  ;;  %v6883_v44 = vunpack.c.h.b16 %v5891_v51  ;;  %1544 = vst [vmem:[#allocation2 + $0xf0] sm:$0xf] %v1381_v19 }
 0x142   : > { %v1384_v61 = vshrl.u32 %v1207_v13, 16  ;;  %v1387_v27 = vshll.u32 %v1207_v13, 16  ;;  %v688_v39 = vadd.f32 %v687_v28, %v529_v11  ;;  %1580 = vst [vmem:[#allocation2 + $0x100] sm:$0xf] %v1207_v13  ;;  %v1382_v32 = vrot.slane %v1377_v12, 4 }
 0x143   : > { %2831 = vmatmul.bf16.gmra.mxu2 %v2533_v3  ;;  %vm908_vm9 = vcmp.ge.f32.partialorder %v878_v34, 0.0  ;;  %2462 = vmatmul.bf16.gmra.mxu0 %v2096_v25  ;;  %v938_v42 = vmul.f32 0.01, %v878_v34  ;;  %v2103_v3 = vpack.c.b16 %v6882_v36, %v6885_v56  ;;  %v5910_v13 = vpack.c.b16 %v6883_v44, %v6884_v59 }
 0x144   : > { %v5899_v41 = vrot.slane %v1384_v61, 7  ;;  %v1684_v14 = vrot.slane %v1387_v27, 5  ;;  %v1686_v4 = vrot.slane %v1384_v61, 4  ;;  %2762 = vmatmul.bf16.gmra.mxu1 %v2532_v16  ;;  %v6887_v57 = vunpack.c.l.b16 %v5897_v60 }
 0x145   : > { %v968_v11 = vsel %vm908_vm9, %v878_v34, %v938_v42  ;;  %vm1558_vm9 = vmand %vm1557_vm7, %vm1219_vm4 }
 0x146   : > { %v1389_v7 = vor.u32 %v1387_v27, %v5899_v41  ;;  %v1685_v16 = vsel %vm5390_vm8, %v1683_v49, %v1684_v14  ;;  %v800_v25 = vpop.f32.mrf.mxu2  ;;  %v1178_v19 = vmul.f32 %v5307_v10, %v968_v11  ;;  %v5923_v12 = vpack.c.b16 %v6886_v55, %v6887_v57  ;;  %2339 = vmatmul.bf16.gmra.mxu3 %v2103_v3  ;;  %v4549_v10 = vld [vmem:[%s6857_s4 + $0x110] sm:$0xff] }
 0x147   : > { %1798 = vst [vmem:[#allocation2 + $0xf8] sm:$0xf] %v1685_v16  ;;  %v845_v28 = vadd.f32 %v800_v25, %v688_v39  ;;  %v1687_v27 = vor.u32 %v1686_v4, %v1684_v14  ;;  %v6930_v14 = vunpack.c.h.b16 %v5661_v38  ;;  %v6931_v4 = vunpack.c.h.b16 %v5701_v47  ;;  %2375 = vmatpush.bf16.msrb.mxu3 %v4549_v10 }
 0x148   : > { %v1390_v61 = vsel %vm5414_vm12, %v1382_v32, %v1389_v7  ;;  %v531_v36 = vpop.f32.mrf.mxu0  ;;  %v1208_v34 = vpack.c.bf16 %v1178_v19, %v1178_v19  ;;  %v1112_v7 = vpop.permute.xlu0 %1111  ;;  %v1391_v55 = vrot.slane %v5899_v41, 4  ;;  %v5936_v15 = vld [vmem:[#allocation2 + $0xf0] sm:$0xff] }
 0x149   : > { %1545 = vst [vmem:[#allocation2 + $0xfc] sm:$0xf] %v1390_v61  ;;  %v879_v49 = vadd.f32 %v5748_v1, %v845_v28  ;;  %v689_v16 = vpop.f32.mrf.mxu1  ;;  %v1688_v25 = vrot.slane %v1687_v27, 4  ;;  %v2536_v3 = vpack.c.b16 %v6931_v4, %v6930_v14  ;;  %v6932_v27 = vunpack.c.l.b16 %v5661_v38 }
 0x14a   : > { %v1393_v42 = vshrl.u32 %v1208_v34, 16  ;;  %v1396_v32 = vshll.u32 %v1208_v34, 16  ;;  %1581 = vst [vmem:[#allocation2 + $0x10c] sm:$0xf] %v1208_v34  ;;  %v690_v61 = vadd.f32 %v689_v16, %v531_v36  ;;  %v2099_v36 = vpack.c.b16 %v2042_v21, %v2039_v58 }
 0x14b   : > { %vm909_vm10 = vcmp.ge.f32.partialorder %v879_v49, 0.0  ;;  %v939_v39 = vmul.f32 0.01, %v879_v49 }
 0x14c   : > { %v1395_v28 = vrot.slane %v1393_v42, 7  ;;  %v1689_v19 = vrot.slane %v1396_v32, 5  ;;  %v1691_v44 = vrot.slane %v1393_v42, 4 }
 0x14d   : > { %v969_v11 = vsel %vm909_vm10, %v879_v49, %v939_v39  ;;  %v6933_v49 = vunpack.c.l.b16 %v5701_v47  ;;  %v5946_v39 = vld [vmem:[#allocation2 + $0xec] sm:$0xf] }
 0x14e   : > { %v1179_v59 = vmul.f32 %v1112_v7, %v969_v11  ;;  %v802_v56 = vpop.f32.mrf.mxu2  ;;  %v5933_v34 = vld [vmem:[#allocation2 + $0xf8] sm:$0xf]  ;;  %v1398_v42 = vor.u32 %v1396_v32, %v1395_v28  ;;  %v1690_v10 = vsel %vm5390_vm8, %v1688_v25, %v1689_v19  ;;  %v1692_v41 = vor.u32 %v1691_v44, %v1689_v19 }
 0x14f   : > { %v846_v57 = vadd.f32 %v802_v56, %v690_v61  ;;  %v2535_v16 = vpack.c.b16 %v6933_v49, %v6932_v27  ;;  %v6905_v7 = vunpack.c.l.b16 %v5933_v34  ;;  %1799 = vst [vmem:[#allocation2 + $0x104] sm:$0xf] %v1690_v10  ;;  %v6895_v25 = vunpack.c.l.b16 %v5936_v15 }
 0x150   : > { %v5950_v56 = vld [vmem:[#allocation2 + $0xfc] sm:$0xff]  ;;  %v1209_v9 = vpack.c.bf16 %v1179_v59, %v1179_v59  ;;  %v534_v48 = vpop.f32.mrf.mxu0  ;;  %v1399_v32 = vsel %vm5414_vm12, %v1391_v55, %v1398_v42  ;;  %v6890_v44 = vunpack.c.h.b16 %v5936_v15  ;;  %v2054_v11 = vunpack.c.l.b16 %v5946_v39 }
 0x151   : > { %v880_v58 = vadd.f32 %v5748_v1, %v846_v57  ;;  %v692_v38 = vpop.f32.mrf.mxu1  ;;  %v6891_v47 = vunpack.c.l.b16 %v5950_v56  ;;  %v6889_v21 = vunpack.c.h.b16 %v5950_v56  ;;  %1546 = vst [vmem:[#allocation2 + $0x108] sm:$0xf] %v1399_v32  ;;  %v1693_v19 = vrot.slane %v1692_v41, 4 }
 0x152   : > { %v1402_v61 = vshrl.u32 %v1209_v9, 16  ;;  %v1405_v59 = vshll.u32 %v1209_v9, 16  ;;  %v693_v57 = vadd.f32 %v692_v38, %v534_v48  ;;  %1582 = vst [vmem:[#allocation2 + $0x118] sm:$0xf] %v1209_v9  ;;  %v5971_v4 = vpack.c.b16 %v6905_v7, %v2054_v11 }
 0x153   : > { %vm910_vm13 = vcmp.ge.f32.partialorder %v880_v58, 0.0  ;;  %2836 = vmatmul.bf16.gmra.mxu2 %v2536_v3  ;;  %v940_v14 = vmul.f32 0.01, %v880_v58  ;;  %2467 = vmatmul.bf16.gmra.mxu0 %v2099_v36  ;;  %v5965_v55 = vpack.c.b16 %v6889_v21, %v6890_v44  ;;  %v2106_v3 = vpack.c.b16 %v6891_v47, %v6895_v25 }
 0x154   : > { %2767 = vmatmul.bf16.gmra.mxu1 %v2535_v16  ;;  %v1404_v27 = vrot.slane %v1402_v61, 7  ;;  %v1694_v49 = vrot.slane %v1405_v59, 5  ;;  %v1696_v36 = vrot.slane %v1402_v61, 4  ;;  %v1400_v10 = vrot.slane %v1395_v28, 4 }
 0x155   : > { %v970_v16 = vsel %vm910_vm13, %v880_v58, %v940_v14 }
 0x156   : > { %v805_v42 = vpop.f32.mrf.mxu2  ;;  %v1407_v9 = vor.u32 %v1405_v59, %v1404_v27  ;;  %v1695_v48 = vsel %vm5390_vm8, %v1693_v19, %v1694_v49  ;;  %v1180_v38 = vmul.f32 %v5387_v22, %v970_v16  ;;  %2344 = vmatmul.bf16.gmra.mxu3 %v2106_v3  ;;  %v1697_v47 = vor.u32 %v1696_v36, %v1694_v49 }
 0x157   : > { %1800 = vst [vmem:[#allocation2 + $0x110] sm:$0xf] %v1695_v48  ;;  %v847_v32 = vadd.f32 %v805_v42, %v693_v57  ;;  %v6934_v22 = vunpack.c.h.b16 %v5718_v63  ;;  %v6935_v3 = vunpack.c.l.b16 %v5718_v63  ;;  %v6936_v49 = vunpack.c.l.b16 %v5761_v50  ;;  %v5993_v42 = vld [vmem:[#allocation2 + $0x104] sm:$0xf] }
 0x158   : > { %v1408_v41 = vsel %vm5414_vm12, %v1400_v10, %v1407_v9  ;;  %v536_v21 = vpop.f32.mrf.mxu0  ;;  %v1210_v61 = vpack.c.bf16 %v1180_v38, %v1180_v38  ;;  %v5987_v16 = vld [vmem:[#allocation2 + $0x108] sm:$0xff]  ;;  %v1698_v10 = vrot.slane %v1697_v47, 4 }
 0x159   : > { %v694_v44 = vpop.f32.mrf.mxu1  ;;  %1547 = vst [vmem:[#allocation2 + $0x114] sm:$0xf] %v1408_v41  ;;  %v881_v58 = vadd.f32 %v5748_v1, %v847_v32  ;;  %v2539_v57 = vpack.c.b16 %v2038_v6, %v6934_v22  ;;  %v2538_v36 = vpack.c.b16 %v6936_v49, %v6935_v3  ;;  %v6937_v6 = vunpack.c.l.b16 %v5831_v17 }
 0x15a   : > { %v1411_v28 = vshrl.u32 %v1210_v61, 16  ;;  %v1414_v59 = vshll.u32 %v1210_v61, 16  ;;  %1583 = vst [vmem:[#allocation2 + $0x124] sm:$0xf] %v1210_v61  ;;  %v695_v19 = vadd.f32 %v694_v44, %v536_v21  ;;  %v1409_v44 = vrot.slane %v1404_v27, 4 }
 0x15b   : > { %vm911_vm14 = vcmp.ge.f32.partialorder %v881_v58, 0.0  ;;  %v941_v14 = vmul.f32 0.01, %v881_v58  ;;  %v6938_v61 = vunpack.c.l.b16 %v5897_v60  ;;  %v6893_v3 = vunpack.c.l.b16 %v5987_v16 }
 0x15c   : > { %v5995_v9 = vrot.slane %v1411_v28, 7  ;;  %v1699_v48 = vrot.slane %v1414_v59, 5  ;;  %v1701_v38 = vrot.slane %v1411_v28, 4  ;;  %v6896_v28 = vunpack.c.l.b16 %v5993_v42 }
 0x15d   : > { %v971_v32 = vsel %vm911_vm14, %v881_v58, %v941_v14  ;;  %v2102_v22 = vpack.c.b16 %v6938_v61, %v6937_v6 }
 0x15e   : > { %v807_v21 = vpop.f32.mrf.mxu2  ;;  %v6001_v63 = vld [vmem:[#allocation2 + $0x110] sm:$0xf]  ;;  %v1416_v50 = vor.u32 %v1414_v59, %v5995_v9  ;;  %v1700_v47 = vsel %vm5390_vm8, %v1698_v10, %v1699_v48  ;;  %v1181_v27 = vmul.f32 %v5326_v18, %v971_v32  ;;  %v1702_v10 = vor.u32 %v1701_v38, %v1699_v48  ;;  %v4548_v18 = vld [vmem:[%s6857_s4 + $0x108] sm:$0xff]  ;;  %v1127_v38 = vpop.permute.xlu0 %1126 }
 0x15f   : > { %v848_v41 = vadd.f32 %v807_v21, %v695_v19  ;;  %1801 = vst [vmem:[#allocation2 + $0x11c] sm:$0xf] %v1700_v47  ;;  %v6903_v19 = vunpack.c.h.b16 %v5987_v16  ;;  %v6894_v59 = vunpack.c.l.b16 %v6001_v63  ;;  %2376 = vmatpush.bf16.msrb.mxu3 %v4548_v18  ;;  %v1418_v25 = vrot.slane %v5995_v9, 4 }
 0x160   : > { %v539_v17 = vpop.f32.mrf.mxu0  ;;  %v6010_v60 = vld [vmem:[#allocation2 + $0x114] sm:$0xff]  ;;  %v1417_v49 = vsel %vm5414_vm12, %v1409_v44, %v1416_v50  ;;  %v1211_v32 = vpack.c.bf16 %v1181_v27, %v1181_v27 }
 0x161   : > { %v882_v58 = vadd.f32 %v5748_v1, %v848_v41  ;;  %v697_v14 = vpop.f32.mrf.mxu1  ;;  %v6892_v6 = vunpack.c.l.b16 %v6010_v60  ;;  %1548 = vst [vmem:[#allocation2 + $0x120] sm:$0xf] %v1417_v49  ;;  %v6897_v61 = vunpack.c.h.b16 %v6010_v60  ;;  %v6029_v48 = vpack.c.b16 %v6894_v59, %v6896_v28 }
 0x162   : > { %v698_v21 = vadd.f32 %v697_v14, %v539_v17  ;;  %v1420_v50 = vshrl.u32 %v1211_v32, 16  ;;  %v1423_v47 = vshll.u32 %v1211_v32, 16  ;;  %1584 = vst [vmem:[#allocation2 + $0x130] sm:$0xf] %v1211_v32 }
 0x163   : > { %vm912_vm15 = vcmp.ge.f32.partialorder %v882_v58, 0.0  ;;  %v942_v41 = vmul.f32 0.01, %v882_v58  ;;  %2841 = vmatmul.bf16.gmra.mxu2 %v2539_v57  ;;  %v2109_v44 = vpack.c.b16 %v6892_v6, %v6893_v3  ;;  %2472 = vmatmul.bf16.gmra.mxu0 %v2102_v22  ;;  %6939 = vst [vmem:[#allocation6_spill] sm:$0xff] %v6029_v48  ;;  %v6035_v27 = vpack.c.b16 %v6897_v61, %v6903_v19 }
 0x164   : > { %2772 = vmatmul.bf16.gmra.mxu1 %v2538_v36  ;;  %v1703_v22 = vrot.slane %v1702_v10, 4  ;;  %v1422_v14 = vrot.slane %v1420_v50, 7  ;;  %v1704_v49 = vrot.slane %v1423_v47, 5  ;;  %v1706_v6 = vrot.slane %v1420_v50, 4 }
 0x165   : > { %v972_v57 = vsel %vm912_vm15, %v882_v58, %v942_v41 }
 0x166   : > { %v1182_v36 = vmul.f32 %v1127_v38, %v972_v57  ;;  %v810_v17 = vpop.f32.mrf.mxu2  ;;  %v1425_v28 = vor.u32 %v1423_v47, %v1422_v14  ;;  %v1705_v58 = vsel %vm5390_vm8, %v1703_v22, %v1704_v49  ;;  %v1707_v18 = vor.u32 %v1706_v6, %v1704_v49  ;;  %2349 = vmatmul.bf16.gmra.mxu3 %v2109_v44 }
 0x167   : > { %v849_v3 = vadd.f32 %v810_v17, %v698_v21  ;;  %1802 = vst [vmem:[#allocation2 + $0x128] sm:$0xf] %v1705_v58 }
 0x168   : > { %v1212_v59 = vpack.c.bf16 %v1182_v36, %v1182_v36  ;;  %v541_v32 = vpop.f32.mrf.mxu0  ;;  %v6041_v57 = vpop.f32.mrf.mxu3  ;;  %v1426_v21 = vsel %vm5414_vm12, %v1418_v25, %v1425_v28  ;;  %v1708_v9 = vrot.slane %v1707_v18, 4  ;;  %v1427_v36 = vrot.slane %v1422_v14, 4  ;;  %v6050_v28 = vld [vmem:[#allocation2 + $0x120] sm:$0xff] }
 0x169   : > { %v699_v41 = vpop.f32.mrf.mxu1  ;;  %v883_v38 = vadd.f32 %v5748_v1, %v849_v3  ;;  %1549 = vst [vmem:[#allocation2 + $0x12c] sm:$0xf] %v1426_v21  ;;  %v6940_v21 = vunpack.c.h.b16 %v5780_v24 }
 0x16a   : > { %v1429_v61 = vshrl.u32 %v1212_v59, 16  ;;  %v1432_v10 = vshll.u32 %v1212_v59, 16  ;;  %1585 = vst [vmem:[#allocation2 + $0x13c] sm:$0xf] %v1212_v59  ;;  %v700_v22 = vadd.f32 %v699_v41, %v541_v32 }
 0x16b   : > { %vm913_vm1 = vcmp.ge.f32.partialorder %v883_v38, 0.0  ;;  %v943_v44 = vmul.f32 0.01, %v883_v38 }
 0x16c   : > { %v6045_v50 = vrot.slane %v1429_v61, 7  ;;  %v1709_v47 = vrot.slane %v1432_v10, 5  ;;  %v1711_v6 = vrot.slane %v1429_v61, 4  ;;  %v6055_v61 = vld [vmem:[#allocation2 + $0x11c] sm:$0xf] }
 0x16d   : > { %v973_v58 = vsel %vm913_vm1, %v883_v38, %v943_v44  ;;  %v6941_v38 = vunpack.c.h.b16 %v5811_v40  ;;  %v6942_v44 = vunpack.c.l.b16 %v5780_v24 }
 0x16e   : > { %v1434_v17 = vor.u32 %v1432_v10, %v6045_v50  ;;  %v1710_v3 = vsel %vm5390_vm8, %v1708_v9, %v1709_v47  ;;  %v812_v49 = vpop.f32.mrf.mxu2  ;;  %v1183_v18 = vmul.f32 %v5427_v53, %v973_v58  ;;  %v1712_v14 = vor.u32 %v1711_v6, %v1709_v47 }
 0x16f   : > { %1803 = vst [vmem:[#allocation2 + $0x134] sm:$0xf] %v1710_v3  ;;  %v850_v25 = vadd.f32 %v812_v49, %v700_v22  ;;  %v2542_v9 = vpack.c.b16 %v6941_v38, %v6940_v21  ;;  %v6943_v22 = vunpack.c.l.b16 %v5811_v40  ;;  %v6901_v47 = vunpack.c.l.b16 %v6050_v28 }
 0x170   : > { %v1435_v59 = vsel %vm5414_vm12, %v1427_v36, %v1434_v17  ;;  %v544_v41 = vpop.f32.mrf.mxu0  ;;  %v6066_v17 = vld [vmem:[#allocation2 + $0x128] sm:$0xf]  ;;  %v1213_v53 = vpack.c.bf16 %v1183_v18, %v1183_v18  ;;  %v6068_v3 = vpop.f32.mrf.mxu3  ;;  %v6944_v6 = vunpack.c.l.b16 %v5888_v46  ;;  %v6076_v40 = vld [vmem:[#allocation2 + $0x12c] sm:$0xff]  ;;  %v1713_v39 = vrot.slane %v1712_v14, 4 }
 0x171   : > { %1550 = vst [vmem:[#allocation2 + $0x138] sm:$0xf] %v1435_v59  ;;  %v884_v32 = vadd.f32 %v5748_v1, %v850_v25  ;;  %v702_v10 = vpop.f32.mrf.mxu1  ;;  %v2541_v36 = vpack.c.b16 %v6943_v22, %v6942_v44  ;;  %v6898_v58 = vunpack.c.l.b16 %v6066_v17  ;;  %v6904_v59 = vunpack.c.l.b16 %v6055_v61 }
 0x172   : > { %v2105_v49 = vpack.c.b16 %v2054_v11, %v6944_v6  ;;  %v703_v24 = vadd.f32 %v702_v10, %v544_v41  ;;  %v1438_v18 = vshrl.u32 %v1213_v53, 16  ;;  %v1441_v21 = vshll.u32 %v1213_v53, 16  ;;  %1586 = vst [vmem:[#allocation2 + $0x148] sm:$0xf] %v1213_v53 }
 0x173   : > { %vm914_vm0 = vcmp.ge.f32.partialorder %v884_v32, 0.0  ;;  %v944_v25 = vmul.f32 0.01, %v884_v32  ;;  %2846 = vmatmul.bf16.gmra.mxu2 %v2542_v9  ;;  %v6899_v38 = vunpack.c.l.b16 %v6076_v40  ;;  %v6900_v46 = vunpack.c.h.b16 %v6076_v40 }
 0x174   : > { %2477 = vmatmul.bf16.gmra.mxu0 %v2105_v49  ;;  %2777 = vmatmul.bf16.gmra.mxu1 %v2541_v36  ;;  %v6902_v44 = vunpack.c.h.b16 %v6050_v28  ;;  %v6086_v41 = vpack.c.b16 %v6898_v58, %v6904_v59  ;;  %v1440_v10 = vrot.slane %v1438_v18, 7  ;;  %v1714_v9 = vrot.slane %v1441_v21, 5 }
 0x175   : > { %v974_v11 = vsel %vm914_vm0, %v884_v32, %v944_v25  ;;  %v1716_v22 = vrot.slane %v1438_v18, 4  ;;  %v2112_v14 = vpack.c.b16 %v6899_v38, %v6901_v47  ;;  %v1436_v49 = vrot.slane %v6045_v50, 4 }
 0x176   : > { %6945 = vst [vmem:[#allocation7_spill] sm:$0xff] %v6086_v41  ;;  %v1184_v53 = vmul.f32 %v5346_v31, %v974_v11  ;;  %v815_v6 = vpop.f32.mrf.mxu2  ;;  %v6097_v36 = vpack.c.b16 %v6900_v46, %v6902_v44  ;;  %v1443_v25 = vor.u32 %v1441_v21, %v1440_v10  ;;  %v1715_v18 = vsel %vm5390_vm8, %v1713_v39, %v1714_v9 }
 0x177   : > { %v851_v32 = vadd.f32 %v815_v6, %v703_v24  ;;  %v1717_v31 = vor.u32 %v1716_v22, %v1714_v9  ;;  %1804 = vst [vmem:[#allocation2 + $0x140] sm:$0xf] %v1715_v18  ;;  %2354 = vmatmul.bf16.gmra.mxu3 %v2112_v14  ;;  %v4547_v6 = vld [vmem:[%s6857_s4 + $0x100] sm:$0xff] }
 0x178   : > { %v1214_v11 = vpack.c.bf16 %v1184_v53, %v1184_v53  ;;  %v546_v38 = vpop.f32.mrf.mxu0  ;;  %v1444_v46 = vsel %vm5414_vm12, %v1436_v49, %v1443_v25  ;;  %2377 = vmatpush.bf16.msrb.mxu3 %v4547_v6  ;;  %v6112_v59 = vld [vmem:[#allocation2 + $0x138] sm:$0xff]  ;;  %v6114_v49 = vld [vmem:[#allocation2 + $0x134] sm:$0xf]  ;;  %v6948_v6 = vunpack.c.l.b16 %v5869_v5 }
 0x179   : > { %v885_v58 = vadd.f32 %v5748_v1, %v851_v32  ;;  %v704_v24 = vpop.f32.mrf.mxu1  ;;  %v6108_v50 = vpop.f32.mrf.mxu3  ;;  %1551 = vst [vmem:[#allocation2 + $0x144] sm:$0xf] %v1444_v46  ;;  %v1718_v22 = vrot.slane %v1717_v31, 4  ;;  %v1445_v46 = vrot.slane %v1440_v10, 4  ;;  %v6947_v31 = vunpack.c.l.b16 %v5839_v29 }
 0x17a   : > { %6946 = vst [vmem:[#allocation8_spill] sm:$0xff] %v6108_v50  ;;  %v1447_v21 = vshrl.u32 %v1214_v11, 16  ;;  %v1450_v39 = vshll.u32 %v1214_v11, 16  ;;  %v1142_v32 = vpop.permute.xlu0 %1141  ;;  %v705_v44 = vadd.f32 %v704_v24, %v546_v38  ;;  %v6949_v38 = vunpack.c.h.b16 %v5839_v29 }
 0x17b   : > { %vm915_vm2 = vcmp.ge.f32.partialorder %v885_v58, 0.0  ;;  %1587 = vst [vmem:[#allocation2 + $0x154] sm:$0xf] %v1214_v11  ;;  %v945_v9 = vmul.f32 0.01, %v885_v58  ;;  %v2544_v7 = vpack.c.b16 %v6948_v6, %v6947_v31  ;;  %v6950_v24 = vunpack.c.h.b16 %v5869_v5 }
 0x17c   : > { %v6110_v53 = vrot.slane %v1447_v21, 7  ;;  %v1719_v14 = vrot.slane %v1450_v39, 5  ;;  %v1721_v18 = vrot.slane %v1447_v21, 4  ;;  %v6951_v10 = vunpack.c.l.b16 %v5933_v34 }
 0x17d   : > { %v975_v47 = vsel %vm915_vm2, %v885_v58, %v945_v9  ;;  %v2545_v9 = vpack.c.b16 %v6950_v24, %v6949_v38 }
 0x17e   : > { %v817_v19 = vpop.f32.mrf.mxu2  ;;  %v1452_v25 = vor.u32 %v1450_v39, %v6110_v53  ;;  %v1720_v11 = vsel %vm5390_vm8, %v1718_v22, %v1719_v14  ;;  %v1185_v21 = vmul.f32 %v1142_v32, %v975_v47  ;;  %v6952_v39 = vunpack.c.l.b16 %v5993_v42  ;;  %v6131_v48 = vld [vmem:[#allocation2 + $0x140] sm:$0xf] }
 0x17f   : > { %1805 = vst [vmem:[#allocation2 + $0x14c] sm:$0xf] %v1720_v11  ;;  %v852_v58 = vadd.f32 %v817_v19, %v705_v44  ;;  %v6907_v47 = vunpack.c.l.b16 %v6112_v59  ;;  %v6909_v19 = vunpack.c.l.b16 %v6114_v49  ;;  %v6906_v29 = vunpack.c.l.b16 %v6131_v48 }
 0x180   : > { %v2108_v41 = vpack.c.b16 %v6952_v39, %v6951_v10  ;;  %v1453_v22 = vsel %vm5414_vm12, %v1445_v46, %v1452_v25  ;;  %v549_v50 = vpop.f32.mrf.mxu0  ;;  %v1722_v5 = vor.u32 %v1721_v18, %v1719_v14  ;;  %v1215_v44 = vpack.c.bf16 %v1185_v21, %v1185_v21  ;;  %v1910_v32 = vld [vmem:[#allocation2 + $0x144] sm:$0xff] }
 0x181   : > { %v707_v31 = vpop.f32.mrf.mxu1  ;;  %1552 = vst [vmem:[#allocation2 + $0x150] sm:$0xf] %v1453_v22  ;;  %v886_v34 = vadd.f32 %v5748_v1, %v852_v58  ;;  %v6139_v42 = vpop.f32.mrf.mxu3  ;;  %v6908_v11 = vunpack.c.h.b16 %v6112_v59  ;;  %v2076_v46 = vunpack.c.l.b16 %v1910_v32  ;;  %v2077_v25 = vunpack.c.h.b16 %v1910_v32 }
 0x182   : > { %v708_v6 = vadd.f32 %v707_v31, %v549_v50  ;;  %v6146_v38 = vpack.c.b16 %v6906_v29, %v6909_v19  ;;  %v1456_v24 = vshrl.u32 %v1215_v44, 16  ;;  %v1459_v14 = vshll.u32 %v1215_v44, 16  ;;  %1588 = vst [vmem:[#allocation2 + $0x160] sm:$0xf] %v1215_v44  ;;  %v1147_v29 = vpop.permute.xlu0 %1146 }
 0x183   : > { %2851 = vmatmul.bf16.gmra.mxu2 %v2545_v9  ;;  %vm916_vm3 = vcmp.ge.f32.partialorder %v886_v34, 0.0  ;;  %v946_v18 = vmul.f32 0.01, %v886_v34  ;;  %v2115_v21 = vpack.c.b16 %v2076_v46, %v6907_v47  ;;  %v6152_v50 = vpack.c.b16 %v2077_v25, %v6908_v11 }
 0x184   : > { %2482 = vmatmul.bf16.gmra.mxu0 %v2108_v41  ;;  %2782 = vmatmul.bf16.gmra.mxu1 %v2544_v7  ;;  %v1723_v58 = vrot.slane %v1722_v5, 4  ;;  %v1458_v9 = vrot.slane %v1456_v24, 7  ;;  %v1724_v10 = vrot.slane %v1459_v14, 5  ;;  %v1726_v39 = vrot.slane %v1456_v24, 4  ;;  %v4535_v5 = vld [vmem:[%s6857_s4 + $0xb8] sm:$0xff] }
 0x185   : > { %v976_v31 = vsel %vm916_vm3, %v886_v34, %v946_v18  ;;  %v1454_v44 = vrot.slane %v6110_v53, 4  ;;  %v4622_v34 = vld [vmem:[%s6857_s4 + $0x238] sm:$0xff]  ;;  %2877 = vmatpush.bf16.msra.mxu3 %v4535_v5  ;;  %v6955_v19 = vunpack.c.l.b16 %v5891_v51 }
 0x186   : > { %v820_v22 = vpop.f32.mrf.mxu2  ;;  %v1461_v41 = vor.u32 %v1459_v14, %v1458_v9  ;;  %v1725_v7 = vsel %vm5390_vm8, %v1723_v58, %v1724_v10  ;;  %v1186_v46 = vmul.f32 %v1147_v29, %v976_v31  ;;  %3517 = vmatpush.bf16.msra.mxu2 %v4622_v34  ;;  %v4614_v58 = vld [vmem:[%s6857_s4 + $0x1f8] sm:$0xff] }
 0x187   : > { %v853_v32 = vadd.f32 %v820_v22, %v708_v6  ;;  %1806 = vst [vmem:[#allocation2 + $0x158] sm:$0xf] %v1725_v7  ;;  %2359 = vmatmul.bf16.gmra.mxu3 %v2115_v21  ;;  %v1727_v6 = vor.u32 %v1726_v39, %v1724_v10  ;;  %v4606_v21 = vld [vmem:[%s6857_s4 + $0x1b8] sm:$0xff]  ;;  %v1152_v22 = vpop.permute.xlu1 %1151  ;;  %3448 = vmatpush.bf16.msra.mxu1 %v4614_v58 }
 0x188   : > { %v551_v47 = vpop.f32.mrf.mxu0  ;;  %v1462_v53 = vsel %vm5414_vm12, %v1454_v44, %v1461_v41  ;;  %v1216_v29 = vpack.c.bf16 %v1186_v46, %v1186_v46  ;;  %3379 = vmatpush.bf16.msra.mxu0 %v4606_v21 }
 0x189   : > { %v887_v25 = vadd.f32 %v5748_v1, %v853_v32  ;;  %v6166_v24 = vpop.f32.mrf.mxu3  ;;  %v709_v14 = vpop.f32.mrf.mxu1  ;;  %1553 = vst [vmem:[#allocation2 + $0x15c] sm:$0xf] %v1462_v53  ;;  %v1728_v32 = vrot.slane %v1727_v6, 4  ;;  %v6953_v53 = vunpack.c.h.b16 %v5891_v51  ;;  %v1463_v6 = vrot.slane %v1458_v9, 4 }
 0x18a   : > { %v710_v18 = vadd.f32 %v709_v14, %v551_v47  ;;  %v1465_v10 = vshrl.u32 %v1216_v29, 16  ;;  %v1468_v39 = vshll.u32 %v1216_v29, 16  ;;  %1589 = vst [vmem:[#allocation2 + $0x16c] sm:$0xf] %v1216_v29  ;;  %v6954_v14 = vunpack.c.h.b16 %v5936_v15 }
 0x18b   : > { %vm917_vm5 = vcmp.ge.f32.partialorder %v887_v25, 0.0  ;;  %v947_v1 = vmul.f32 0.01, %v887_v25  ;;  %v6956_v29 = vunpack.c.l.b16 %v5936_v15  ;;  %v6957_v51 = vunpack.c.l.b16 %v6001_v63 }
 0x18c   : > { %v1467_v47 = vrot.slane %v1465_v10, 7  ;;  %v1729_v7 = vrot.slane %v1468_v39, 5  ;;  %v1731_v46 = vrot.slane %v1465_v10, 4  ;;  %v2548_v11 = vpack.c.b16 %v6954_v14, %v6953_v53  ;;  %v4965_v10 = vld [vmem:[%s6856_s3] ss:$0 sm:$0xff] }
 0x18d   : > { %v977_v31 = vsel %vm917_vm5, %v887_v25, %v947_v1  ;;  %v2547_v25 = vpack.c.b16 %v6956_v29, %v6955_v19  ;;  %v6958_v15 = vunpack.c.l.b16 %v6055_v61  ;;  %v3999_v14 = vld [vmem:[#allocation2 + $0x150] sm:$0xf]  ;;  %v1157_v29 = vpop.permute.xlu2 %1156 }
 0x18e   : > { %v1187_v44 = vmul.f32 %v1152_v22, %v977_v31  ;;  %v822_v41 = vpop.f32.mrf.mxu2  ;;  %v1470_v1 = vor.u32 %v1468_v39, %v1467_v47  ;;  %v1730_v21 = vsel %vm5390_vm8, %v1728_v32, %v1729_v7  ;;  %v1732_v58 = vor.u32 %v1731_v46, %v1729_v7 }
 0x18f   : > { %v854_v5 = vadd.f32 %v822_v41, %v710_v18  ;;  %1807 = vst [vmem:[#allocation2 + $0x164] sm:$0xf] %v1730_v21  ;;  %v2111_v19 = vpack.c.b16 %v6958_v15, %v6957_v51  ;;  %v4613_v15 = vld [vmem:[%s6857_s4 + $0x1f0] sm:$0xff] }
 0x190   : > { %v1217_v34 = vpack.c.bf16 %v1187_v44, %v1187_v44  ;;  %v1471_v9 = vsel %vm5414_vm12, %v1463_v6, %v1470_v1  ;;  %v4537_v39 = vld [vmem:[#allocation2 + $0x158] sm:$0xf0]  ;;  %v1733_v32 = vrot.slane %v1732_v58, 4  ;;  %3449 = vmatpush.bf16.msra.mxu1 %v4613_v15 }
 0x191   : > { %v888_v31 = vadd.f32 %v4965_v10, %v854_v5  ;;  %v6187_v44 = vpop.f32.mrf.mxu3  ;;  %1554 = vst [vmem:[#allocation2 + $0x168] sm:$0xf] %v1471_v9  ;;  %v1472_v5 = vrot.slane %v1467_v47, 4  ;;  %v4605_v10 = vld [vmem:[%s6857_s4 + $0x1b0] sm:$0xff] }
 0x192   : > { %v1474_v22 = vshrl.u32 %v1217_v34, 16  ;;  %v1477_v18 = vshll.u32 %v1217_v34, 16  ;;  %1590 = vst [vmem:[#allocation2 + $0x178] sm:$0xf] %v1217_v34  ;;  %3380 = vmatpush.bf16.msra.mxu0 %v4605_v10 }
 0x193   : > { %2856 = vmatmul.bf16.gmra.mxu2 %v2548_v11  ;;  %vm918_vm6 = vcmp.ge.f32.partialorder %v888_v31, 0.0  ;;  %v948_v46 = vmul.f32 0.01, %v888_v31  ;;  %v4000_v11 = vor.u32 %v4537_v39, %v3999_v14  ;;  %v4612_v14 = vld [vmem:[%s6857_s4 + $0x1e8] sm:$0xff] }
 0x194   : > { %v1476_v41 = vrot.slane %v1474_v22, 7  ;;  %v1734_v7 = vrot.slane %v1477_v18, 5  ;;  %2487 = vmatmul.bf16.gmra.mxu0 %v2111_v19  ;;  %2787 = vmatmul.bf16.gmra.mxu1 %v2547_v25  ;;  %v1736_v61 = vrot.slane %v1474_v22, 4  ;;  %v4621_v22 = vld [vmem:[%s6857_s4 + $0x230] sm:$0xff] }
 0x195   : > { %v978_v34 = vsel %vm918_vm6, %v888_v31, %v948_v46  ;;  %v6207_v31 = vpop.f32.mrf.mxu0  ;;  %v4534_v19 = vld [vmem:[%s6857_s4 + $0xb0] sm:$0xff]  ;;  %v6217_v46 = vpop.f32.mrf.mxu1  ;;  %3518 = vmatpush.bf16.msra.mxu2 %v4621_v22  ;;  %v6962_v22 = vunpack.c.l.b16 %v5987_v16  ;;  %3450 = vmatpush.bf16.msra.mxu1 %v4612_v14 }
 0x196   : > { %v1479_v53 = vor.u32 %v1477_v18, %v1476_v41  ;;  %v1735_v63 = vsel %vm5390_vm8, %v1733_v32, %v1734_v7  ;;  %v1188_v1 = vmul.f32 %v1157_v29, %v978_v34  ;;  %v1737_v21 = vor.u32 %v1736_v61, %v1734_v7  ;;  %v6209_v51 = vpop.f32.mrf.mxu2  ;;  %v1559_v61 = vld [vmem:[#allocation2 + $0x18c] sm:$0x1]  ;;  %2878 = vmatpush.bf16.msra.mxu3 %v4534_v19 }
 0x197   : > { %1808 = vst [vmem:[#allocation2 + $0x170] sm:$0xf] %v1735_v63  ;;  %2364 = vmatmul.bf16.gmra.mxu3 %v4000_v11  ;;  %v1481_v63 = vrot.slane %v1476_v41, 4  ;;  %v6959_v41 = vunpack.c.h.b16 %v5950_v56 }
 0x198   : > { %v1480_v6 = vsel %vm5414_vm12, %v1472_v5, %v1479_v53  ;;  %v1218_v25 = vpack.c.bf16 %v1188_v1, %v1188_v1  ;;  %v1738_v9 = vrot.slane %v1737_v21, 4  ;;  %v4620_v5 = vld [vmem:[%s6857_s4 + $0x228] sm:$0xff]  ;;  %v6960_v21 = vunpack.c.h.b16 %v5987_v16  ;;  %v4603_v16 = vld [vmem:[%s6857_s4 + $0x1a0] sm:$0xff] }
 0x199   : > { %1555 = vst [vmem:[#allocation2 + $0x174] sm:$0xf] %v1480_v6  ;;  %v6199_v58 = vpop.f32.mrf.mxu3  ;;  %v4604_v53 = vld [vmem:[%s6857_s4 + $0x1a8] sm:$0xff]  ;;  %3519 = vmatpush.bf16.msra.mxu2 %v4620_v5 }
 0x19a   : > { %v1483_v47 = vshrl.u32 %v1218_v25, 16  ;;  %v1486_v18 = vshll.u32 %v1218_v25, 16  ;;  %1591 = vst [vmem:[#allocation2 + $0x184] sm:$0xf] %v1218_v25  ;;  %v1811_v1 = vld [vmem:[#allocation2 + $0x188] sm:$0xf]  ;;  %v2551_v25 = vpack.c.b16 %v6960_v21, %v6959_v41  ;;  %3381 = vmatpush.bf16.msra.mxu0 %v4604_v53 }
 0x19b   : > { %v4602_v53 = vld [vmem:[%s6857_s4 + $0x198] sm:$0xff] }
 0x19c   : > { %v1485_v39 = vrot.slane %v1483_v47, 7  ;;  %v1739_v32 = vrot.slane %v1486_v18, 5  ;;  %v1741_v7 = vrot.slane %v1483_v47, 4  ;;  %v6961_v47 = vunpack.c.l.b16 %v5950_v56 }
 0x19d   : > { %3520 = vmatpush.bf16.msra.mxu2 %v4619_v35  ;;  %v6266_v5 = vpop.f32.mrf.mxu1  ;;  %v4615_v35 = vld [vmem:[%s6857_s4 + $0x200] sm:$0xff] }
 0x19e   : > { %v1488_v29 = vor.u32 %v1486_v18, %v1485_v39  ;;  %v1490_v34 = vrot.slane %v1485_v39, 4  ;;  %v1740_v11 = vsel %vm5390_vm8, %v1738_v9, %v1739_v32  ;;  %v1742_v6 = vor.u32 %v1741_v7, %v1739_v32  ;;  %3382 = vmatpush.bf16.msra.mxu0 %v4603_v16  ;;  %v6264_v7 = vpop.f32.mrf.mxu2 }
 0x19f   : > { %1809 = vst [vmem:[#allocation2 + $0x17c] sm:$0xf] %v1740_v11  ;;  %v2550_v10 = vpack.c.b16 %v6962_v22, %v6961_v47  ;;  %v6963_v9 = vunpack.c.l.b16 %v6066_v17  ;;  %v6964_v39 = vunpack.c.l.b16 %v6114_v49  ;;  %v4611_v17 = vld [vmem:[%s6857_s4 + $0x1e0] sm:$0xff]  ;;  %v6262_v49 = vpop.f32.mrf.mxu0  ;;  %v6966_v47 = vunpack.c.h.b16 %v6050_v28 }
 0x1a0   : > { %v1489_v18 = vsel %vm5414_vm12, %v1481_v63, %v1488_v29  ;;  %v1560_v15 = vsel %vm1558_vm9, %v1490_v34, %v1559_v61  ;;  %v1743_v19 = vrot.slane %v1742_v6, 4  ;;  %3451 = vmatpush.bf16.msra.mxu1 %v4611_v17  ;;  %v4610_v63 = vld [vmem:[%s6857_s4 + $0x1d8] sm:$0xff]  ;;  %v1911_v61 = vld [vmem:[#allocation2 + $0x14c] sm:$0xf]  ;;  %v4617_v29 = vld [vmem:[%s6857_s4 + $0x210] sm:$0xff] }
 0x1a1   : > { %v6242_v23 = vpop.f32.mrf.mxu3  ;;  %v2114_v32 = vpack.c.b16 %v6964_v39, %v6963_v9  ;;  %1556 = vst [vmem:[#allocation2 + $0x180] sm:$0xf] %v1489_v18  ;;  %3521 = vmatpush.bf16.msra.mxu2 %v4618_v30  ;;  %v4609_v34 = vld [vmem:[%s6857_s4 + $0x1d0] sm:$0xff]  ;;  %v2078_v11 = vunpack.c.l.b16 %v1911_v61  ;;  %v4616_v6 = vld [vmem:[%s6857_s4 + $0x208] sm:$0xff]  ;;  %v6968_v9 = vunpack.c.l.b16 %v6010_v60  ;;  %v6969_v39 = vunpack.c.l.b16 %v6050_v28 }
 0x1a2   : > { %1561 = vst [vmem:[#allocation2 + $0x18c] sm:$0x1] %v1560_v15  ;;  %v1812_v56 = vsel %vm5408_vm11, %v1743_v19, %v1811_v1  ;;  %3383 = vmatpush.bf16.msra.mxu0 %v4602_v53  ;;  %v4600_v1 = vld [vmem:[%s6857_s4 + $0x188] sm:$0xff]  ;;  %v6967_v15 = vunpack.c.l.b16 %v6131_v48  ;;  %v4599_v48 = vld [vmem:[%s6857_s4 + $0x180] sm:$0xff]  ;;  %v6972_v61 = vunpack.c.h.b16 %v6076_v40 }
 0x1a3   : > { %2861 = vmatmul.bf16.gmra.mxu2 %v2551_v25  ;;  %1813 = vst [vmem:[#allocation2 + $0x188] sm:$0xf] %v1812_v56  ;;  %v6965_v25 = vunpack.c.h.b16 %v6010_v60  ;;  %v4607_v60 = vld [vmem:[%s6857_s4 + $0x1c0] sm:$0xff]  ;;  %v4533_v28 = vld [vmem:[%s6857_s4 + $0xa8] sm:$0xff] }
 0x1a4   : > { %2492 = vmatmul.bf16.gmra.mxu0 %v2114_v32  ;;  %2792 = vmatmul.bf16.gmra.mxu1 %v2550_v10  ;;  %v4608_v10 = vld [vmem:[%s6857_s4 + $0x1c8] sm:$0xff]  ;;  %v2117_v19 = vpack.c.b16 %v2078_v11, %v6967_v15  ;;  %v2553_v32 = vpack.c.b16 %v6969_v39, %v6968_v9  ;;  %v6974_v11 = vunpack.c.l.b16 %v6076_v40  ;;  %v4532_v40 = vld [vmem:[%s6857_s4 + $0xa0] sm:$0xff]  ;;  %v4564_v39 = vld [vmem:[#allocation2 + $0x74] sm:$0xf0] }
 0x1a5   : > { %3452 = vmatpush.bf16.msra.mxu1 %v4610_v63  ;;  %3522 = vmatpush.bf16.msra.mxu2 %v4617_v29  ;;  %v2554_v22 = vpack.c.b16 %v6966_v47, %v6965_v25  ;;  %v6303_v18 = vpop.f32.mrf.mxu1  ;;  %v4538_v63 = vld [vmem:[#allocation2 + $0x160] sm:$0xf0]  ;;  %v6973_v29 = vunpack.c.h.b16 %v6112_v59 }
 0x1a6   : > { %v6294_v21 = vpop.f32.mrf.mxu2  ;;  %2879 = vmatpush.bf16.msra.mxu3 %v4533_v28  ;;  %v4263_v28 = vld [vmem:[#allocation2 + $0x6c] sm:$0xf] }
 0x1a7   : > { %2378 = vmatmul.bf16.vlgmr.msrb.gmra.mxu3 %v5540_v26  ;;  %v4601_v26 = vld [vmem:[%s6857_s4 + $0x190] sm:$0xff]  ;;  %v6292_v41 = vpop.f32.mrf.mxu0 }
 0x1a8   : > { %3384 = vmatpush.bf16.msra.mxu0 %v4601_v26  ;;  %v4007_v26 = vld [vmem:[#allocation2 + $0x158] sm:$0xf] }
 0x1a9   : > { %v6275_v14 = vpop.f32.mrf.mxu3  ;;  %3453 = vmatpush.bf16.msra.mxu1 %v4609_v34  ;;  %3523 = vmatpush.bf16.msra.mxu2 %v4616_v6  ;;  %v4008_v34 = vor.u32 %v4538_v63, %v4007_v26  ;;  %v6975_v6 = vunpack.c.l.b16 %v6112_v59  ;;  %v4565_v59 = vld [vmem:[#allocation2 + $0x7c] sm:$0xf0]  ;;  %v4264_v63 = vor.u32 %v4564_v39, %v4263_v28 }
 0x1aa   : > { %2880 = vmatpush.bf16.msra.mxu3 %v4532_v40  ;;  %v4277_v40 = vld [vmem:[#allocation2 + $0x90] sm:$0xf0] }
 0x1ac   : > { %3385 = vmatpush.bf16.msra.mxu0 %v4600_v1  ;;  %v2556_v1 = vpack.c.b16 %v6975_v6, %v6974_v11  ;;  %v4568_v6 = vld [vmem:[#allocation2 + $0x94] sm:$0xf0] }
 0x1ad   : > { %3454 = vmatpush.bf16.msra.mxu1 %v4608_v10  ;;  %3524 = vmatpush.bf16.msra.mxu2 %v4615_v35  ;;  %v6330_v30 = vpop.f32.mrf.mxu1 }
 0x1ae   : > { %v6328_v17 = vpop.f32.mrf.mxu2 }
 0x1af   : > { %v6326_v16 = vpop.f32.mrf.mxu0 }
 0x1b0   : > { %3386 = vmatpush.bf16.msra.mxu0 %v4599_v48  ;;  %v4271_v48 = vld [vmem:[#allocation2 + $0x74] sm:$0xf] }
 0x1b1   : > { %v6311_v56 = vpop.f32.mrf.mxu3  ;;  %3455 = vmatpush.bf16.msra.mxu1 %v4607_v60  ;;  %v4272_v60 = vor.u32 %v4565_v59, %v4271_v48  ;;  %v4283_v59 = vld [vmem:[#allocation2 + $0x8c] sm:$0xf]  ;;  %v4566_v48 = vld [vmem:[#allocation2 + $0x88] sm:$0xf] }
 0x1b2   : > { %6970 = vst [vmem:[#allocation9_spill] sm:$0xff] %v6311_v56  ;;  %v4284_v39 = vor.u32 %v4568_v6, %v4283_v59  ;;  %v4280_v28 = vor.u32 %v4566_v48, %v4277_v40  ;;  %v4531_v6 = vld [vmem:[%s6857_s4 + $0x98] sm:$0xff]  ;;  %v4570_v48 = vld [vmem:[#allocation2 + $0xa4] sm:$0xf0] }
 0x1b3   : > { %2866 = vmatmul.bf16.gmra.mxu2 %v2554_v22  ;;  %2881 = vmatpush.bf16.msra.mxu3 %v4531_v6 }
 0x1b4   : > { %2497 = vmatmul.bf16.gmra.mxu0 %v2117_v19  ;;  %2797 = vmatmul.bf16.gmra.mxu1 %v2553_v32  ;;  %v4265_v32 = vld [vmem:[#allocation2 + $0x78] sm:$0xf0] }
 0x1b5   : > { %v6348_v10 = vpop.f32.mrf.mxu1 }
 0x1b6   : > { %v6346_v22 = vpop.f32.mrf.mxu2 }
 0x1b7   : > { %2383 = vmatmul.bf16.gmra.mxu3 %v5630_v54  ;;  %v2557_v54 = vpack.c.b16 %v6973_v29, %v6972_v61  ;;  %v6344_v47 = vpop.f32.mrf.mxu0 }
 0x1b9   : > { %v6332_v53 = vpop.f32.mrf.mxu3 }
 0x1ba   : > { %6971 = vst [vmem:[#allocation10_spill] sm:$0xff] %v6332_v53 }
 0x1bd   : > { %v6360_v35 = vpop.f32.mrf.mxu1 }
 0x1be   : > { %v6358_v9 = vpop.f32.mrf.mxu2 }
 0x1bf   : > { %v6356_v19 = vpop.f32.mrf.mxu0 }
 0x1c1   : > { %v6342_v25 = vpop.f32.mrf.mxu3 }
 0x1c2   : > { %6976 = vst [vmem:[#allocation11_spill] sm:$0xff] %v6342_v25 }
 0x1c3   : > { %2871 = vmatmul.bf16.gmra.mxu2 %v2557_v54 }
 0x1c4   : > { %2502 = vmatmul.bf16.gmra.mxu0 %v4008_v34  ;;  %2802 = vmatmul.bf16.gmra.mxu1 %v2556_v1  ;;  %v4567_v1 = vld [vmem:[#allocation2 + $0x8c] sm:$0xf0] }
 0x1c5   : > { %v6369_v34 = vpop.f32.mrf.mxu1 }
 0x1c6   : > { %v6366_v26 = vpop.f32.mrf.mxu2 }
 0x1c7   : > { %2388 = vmatmul.bf16.gmra.mxu3 %v5686_v8  ;;  %v4563_v8 = vld [vmem:[#allocation2 + $0x70] sm:$0xf]  ;;  %v6364_v54 = vpop.f32.mrf.mxu0 }
 0x1c8   : > { %v4268_v61 = vor.u32 %v4563_v8, %v4265_v32  ;;  %v4275_v32 = vld [vmem:[#allocation2 + $0x84] sm:$0xf] }
 0x1c9   : > { %v6351_v15 = vpop.f32.mrf.mxu3 }
 0x1ca   : > { %6977 = vst [vmem:[#allocation12_spill] sm:$0xff] %v6351_v15 }
 0x1cf   : > { %v6373_v8 = vpop.f32.mrf.mxu0 }
 0x1d1   : > { %v6362_v29 = vpop.f32.mrf.mxu3 }
 0x1d2   : > { %6978 = vst [vmem:[#allocation13_spill] sm:$0xff] %v6362_v29 }
 0x1d3   : > { %3525 = vmatmul.bf16.vlgmr.msra.gmra.mxu2 %v4272_v60  ;;  %v4276_v60 = vor.u32 %v4567_v1, %v4275_v32  ;;  %v4571_v32 = vld [vmem:[#allocation2 + $0xac] sm:$0xf0] }
 0x1d4   : > { %3387 = vmatmul.bf16.vlgmr.msra.gmra.mxu0 %v4264_v63  ;;  %3456 = vmatmul.bf16.vlgmr.msra.gmra.mxu1 %v4268_v61  ;;  %v6375_v63 = vpop.f32.mrf.mxu2  ;;  %v6377_v61 = vpop.f32.mrf.mxu1 }
 0x1d5   : > { %6980 = vst [vmem:[#allocation15_spill] sm:$0xff] %v6375_v63 }
 0x1d6   : > { %6981 = vst [vmem:[#allocation16_spill] sm:$0xff] %v6377_v61 }
 0x1d7   : > { %2393 = vmatmul.bf16.gmra.mxu3 %v5740_v0  ;;  %v6387_v40 = vpop.f32.mrf.mxu0 }
 0x1d8   : > { %6984 = vst [vmem:[#allocation19_spill] sm:$0xff] %v6387_v40  ;;  %v1819_v40 = vld [vmem:[#allocation2 + $0x44] sm:$0xf] }
 0x1d9   : > { %v6371_v11 = vpop.f32.mrf.mxu3 }
 0x1da   : > { %6979 = vst [vmem:[#allocation14_spill] sm:$0xff] %v6371_v11  ;;  %v4287_v11 = vld [vmem:[#allocation2 + $0x9c] sm:$0xf] }
 0x1db   : > { %v4288_v29 = vor.u32 %v4570_v48, %v4287_v11  ;;  %v4530_v11 = vld [vmem:[%s6857_s4 + $0x90] sm:$0xff]  ;;  %v4301_v48 = vld [vmem:[#allocation2 + $0xc0] sm:$0xf0] }
 0x1dc   : > { %v6389_v59 = vpop.f32.mrf.mxu2  ;;  %2882 = vmatpush.bf16.msra.mxu3 %v4530_v11 }
 0x1dd   : > { %6985 = vst [vmem:[#allocation20_spill] sm:$0xff] %v6389_v59 }
 0x1df   : > { %v6395_v6 = vpop.f32.mrf.mxu0 }
 0x1e0   : > { %6988 = vst [vmem:[#allocation23_spill] sm:$0xff] %v6395_v6 }
 0x1e1   : > { %v6379_v0 = vpop.f32.mrf.mxu3 }
 0x1e2   : > { %6982 = vst [vmem:[#allocation17_spill] sm:$0xff] %v6379_v0  ;;  %v4289_v0 = vld [vmem:[#allocation2 + $0xa8] sm:$0xf0] }
 0x1e3   : > { %3530 = vmatmul.bf16.gmra.mxu2 %v4284_v39  ;;  %v6391_v39 = vpop.f32.mrf.mxu1 }
 0x1e4   : > { %3392 = vmatmul.bf16.gmra.mxu0 %v4276_v60  ;;  %3461 = vmatmul.bf16.gmra.mxu1 %v4280_v28  ;;  %6986 = vst [vmem:[#allocation21_spill] sm:$0xff] %v6391_v39  ;;  %v4295_v60 = vld [vmem:[#allocation2 + $0xa4] sm:$0xf] }
 0x1e5   : > { %v4296_v28 = vor.u32 %v4571_v32, %v4295_v60  ;;  %v4573_v32 = vld [vmem:[#allocation2 + $0xbc] sm:$0xf0] }
 0x1e7   : > { %2398 = vmatmul.bf16.gmra.mxu3 %v5801_v62  ;;  %v4569_v62 = vld [vmem:[#allocation2 + $0xa0] sm:$0xf] }
 0x1e8   : > { %v4292_v15 = vor.u32 %v4569_v62, %v4289_v0  ;;  %v4574_v0 = vld [vmem:[#allocation2 + $0xc4] sm:$0xf0]  ;;  %v4299_v62 = vld [vmem:[#allocation2 + $0xb4] sm:$0xf] }
 0x1e9   : > { %v6385_v1 = vpop.f32.mrf.mxu3 }
 0x1ea   : > { %6983 = vst [vmem:[#allocation18_spill] sm:$0xff] %v6385_v1  ;;  %v6397_v1 = vpop.f32.mrf.mxu2 }
 0x1eb   : > { %6989 = vst [vmem:[#allocation24_spill] sm:$0xff] %v6397_v1  ;;  %v6399_v53 = vpop.f32.mrf.mxu1 }
 0x1ec   : > { %6990 = vst [vmem:[#allocation25_spill] sm:$0xff] %v6399_v53 }
 0x1f1   : > { %v6393_v25 = vpop.f32.mrf.mxu3 }
 0x1f2   : > { %6987 = vst [vmem:[#allocation22_spill] sm:$0xff] %v6393_v25  ;;  %v6409_v60 = vpop.f32.mrf.mxu2  ;;  %v4572_v25 = vld [vmem:[#allocation2 + $0xb8] sm:$0xf] }
 0x1f3   : > { %3535 = vmatmul.bf16.gmra.mxu2 %v4296_v28  ;;  %6993 = vst [vmem:[#allocation28_spill] sm:$0xff] %v6409_v60  ;;  %v6411_v1 = vpop.f32.mrf.mxu1  ;;  %v4576_v60 = vld [vmem:[#allocation2 + $0xd4] sm:$0xf0] }
 0x1f4   : > { %3397 = vmatmul.bf16.gmra.mxu0 %v4288_v29  ;;  %3466 = vmatmul.bf16.gmra.mxu1 %v4292_v15  ;;  %v4307_v29 = vld [vmem:[#allocation2 + $0xbc] sm:$0xf]  ;;  %v6407_v15 = vpop.f32.mrf.mxu0  ;;  %6994 = vst [vmem:[#allocation29_spill] sm:$0xff] %v6411_v1 }
 0x1f5   : > { %6992 = vst [vmem:[#allocation27_spill] sm:$0xff] %v6407_v15  ;;  %v4308_v28 = vor.u32 %v4574_v0, %v4307_v29  ;;  %v4577_v29 = vld [vmem:[#allocation2 + $0xdc] sm:$0xf0]  ;;  %v4313_v1 = vld [vmem:[#allocation2 + $0xd8] sm:$0xf0] }
 0x1f7   : > { %2403 = vmatmul.bf16.gmra.mxu3 %v5861_v43  ;;  %v4300_v43 = vor.u32 %v4573_v32, %v4299_v62  ;;  %v4319_v32 = vld [vmem:[#allocation2 + $0xd4] sm:$0xf] }
 0x1fa   : > { %v6402_v59 = vpop.f32.mrf.mxu3  ;;  %v6418_v6 = vpop.f32.mrf.mxu2 }
 0x1fb   : > { %6991 = vst [vmem:[#allocation26_spill] sm:$0xff] %v6402_v59  ;;  %v4304_v59 = vor.u32 %v4572_v25, %v4301_v48  ;;  %v6420_v15 = vpop.f32.mrf.mxu1  ;;  %v4320_v25 = vor.u32 %v4577_v29, %v4319_v32  ;;  %v4311_v48 = vld [vmem:[#allocation2 + $0xcc] sm:$0xf] }
 0x1fc   : > { %v6416_v11 = vpop.f32.mrf.mxu0  ;;  %6997 = vst [vmem:[#allocation32_spill] sm:$0xff] %v6418_v6  ;;  %v4312_v62 = vor.u32 %v4576_v60, %v4311_v48  ;;  %v4529_v29 = vld [vmem:[%s6857_s4 + $0x88] sm:$0xff]  ;;  %v4579_v48 = vld [vmem:[#allocation2 + $0xec] sm:$0xf0] }
 0x1fd   : > { %6996 = vst [vmem:[#allocation31_spill] sm:$0xff] %v6416_v11  ;;  %2883 = vmatpush.bf16.msra.mxu3 %v4529_v29  ;;  %v4536_v11 = vld [vmem:[#allocation2 + $0x154] sm:$0xf] }
 0x1fe   : > { %6998 = vst [vmem:[#allocation33_spill] sm:$0xff] %v6420_v15  ;;  %v4361_v15 = vld [vmem:[#allocation2 + $0x138] sm:$0xf0] }
 0x202   : > { %v6413_v53 = vpop.f32.mrf.mxu3 }
 0x203   : > { %3540 = vmatmul.bf16.gmra.mxu2 %v4308_v28  ;;  %6995 = vst [vmem:[#allocation30_spill] sm:$0xff] %v6413_v53  ;;  %v4575_v28 = vld [vmem:[#allocation2 + $0xd0] sm:$0xf]  ;;  %v6428_v53 = vpop.f32.mrf.mxu2  ;;  %v6430_v6 = vpop.f32.mrf.mxu1 }
 0x204   : > { %3402 = vmatmul.bf16.gmra.mxu0 %v4300_v43  ;;  %3471 = vmatmul.bf16.gmra.mxu1 %v4304_v59  ;;  %v4316_v43 = vor.u32 %v4575_v28, %v4313_v1  ;;  %7002 = vst [vmem:[#allocation37_spill] sm:$0xff] %v6428_v53  ;;  %v4580_v1 = vld [vmem:[#allocation2 + $0xf4] sm:$0xf0]  ;;  %v4325_v28 = vld [vmem:[#allocation2 + $0xf0] sm:$0xf0] }
 0x205   : > { %7003 = vst [vmem:[#allocation38_spill] sm:$0xff] %v6430_v6 }
 0x207   : > { %2408 = vmatmul.bf16.gmra.mxu3 %v5910_v13  ;;  %v6426_v13 = vpop.f32.mrf.mxu0 }
 0x208   : > { %7001 = vst [vmem:[#allocation36_spill] sm:$0xff] %v6426_v13 }
 0x20a   : > { %v6422_v0 = vpop.f32.mrf.mxu3 }
 0x20b   : > { %6999 = vst [vmem:[#allocation34_spill] sm:$0xff] %v6422_v0  ;;  %v4323_v0 = vld [vmem:[#allocation2 + $0xe4] sm:$0xf] }
 0x20c   : > { %v4324_v53 = vor.u32 %v4579_v48, %v4323_v0  ;;  %v4528_v0 = vld [vmem:[%s6857_s4 + $0x80] sm:$0xff] }
 0x20d   : > { %v4581_v48 = vld [vmem:[#allocation2 + $0x100] sm:$0xf]  ;;  %2884 = vmatpush.bf16.msra.mxu3 %v4528_v0 }
 0x20f   : > { %v6438_v32 = vpop.f32.mrf.mxu0 }
 0x210   : > { %7005 = vst [vmem:[#allocation40_spill] sm:$0xff] %v6438_v32  ;;  %v4337_v32 = vld [vmem:[#allocation2 + $0x108] sm:$0xf0] }
 0x212   : > { %v6424_v59 = vpop.f32.mrf.mxu3 }
 0x213   : > { %3545 = vmatmul.bf16.gmra.mxu2 %v4320_v25  ;;  %7000 = vst [vmem:[#allocation35_spill] sm:$0xff] %v6424_v59  ;;  %v6440_v25 = vpop.f32.mrf.mxu2 }
 0x214   : > { %3407 = vmatmul.bf16.gmra.mxu0 %v4312_v62  ;;  %3476 = vmatmul.bf16.gmra.mxu1 %v4316_v43  ;;  %7006 = vst [vmem:[#allocation41_spill] sm:$0xff] %v6440_v25  ;;  %v6442_v62 = vpop.f32.mrf.mxu1  ;;  %v4331_v43 = vld [vmem:[#allocation2 + $0xec] sm:$0xf] }
 0x215   : > { %7007 = vst [vmem:[#allocation42_spill] sm:$0xff] %v6442_v62  ;;  %v4332_v59 = vor.u32 %v4580_v1, %v4331_v43  ;;  %v4583_v1 = vld [vmem:[#allocation2 + $0x10c] sm:$0xf0]  ;;  %v4582_v43 = vld [vmem:[#allocation2 + $0x104] sm:$0xf0] }
 0x217   : > { %2413 = vmatmul.bf16.gmra.mxu3 %v5965_v55  ;;  %v4578_v55 = vld [vmem:[#allocation2 + $0xe8] sm:$0xf]  ;;  %v6446_v29 = vpop.f32.mrf.mxu0 }
 0x218   : > { %v4328_v6 = vor.u32 %v4578_v55, %v4325_v28  ;;  %7009 = vst [vmem:[#allocation44_spill] sm:$0xff] %v6446_v29  ;;  %v4340_v55 = vor.u32 %v4581_v48, %v4337_v32 }
 0x21a   : > { %v6436_v60 = vpop.f32.mrf.mxu3 }
 0x21b   : > { %7004 = vst [vmem:[#allocation39_spill] sm:$0xff] %v6436_v60  ;;  %v6448_v60 = vpop.f32.mrf.mxu2 }
 0x21c   : > { %7010 = vst [vmem:[#allocation45_spill] sm:$0xff] %v6448_v60  ;;  %v6451_v25 = vpop.f32.mrf.mxu1 }
 0x21d   : > { %7011 = vst [vmem:[#allocation46_spill] sm:$0xff] %v6451_v25 }
 0x222   : > { %v6444_v13 = vpop.f32.mrf.mxu3 }
 0x223   : > { %3550 = vmatmul.bf16.gmra.mxu2 %v4332_v59  ;;  %7008 = vst [vmem:[#allocation43_spill] sm:$0xff] %v6444_v13  ;;  %v4343_v59 = vld [vmem:[#allocation2 + $0x104] sm:$0xf]  ;;  %v6458_v13 = vpop.f32.mrf.mxu0 }
 0x224   : > { %3412 = vmatmul.bf16.gmra.mxu0 %v4324_v53  ;;  %3481 = vmatmul.bf16.gmra.mxu1 %v4328_v6  ;;  %v4344_v53 = vor.u32 %v4583_v1, %v4343_v59  ;;  %v4335_v6 = vld [vmem:[#allocation2 + $0xfc] sm:$0xf]  ;;  %7012 = vst [vmem:[#allocation47_spill] sm:$0xff] %v6458_v13  ;;  %v6462_v60 = vpop.f32.mrf.mxu1  ;;  %v4585_v59 = vld [vmem:[#allocation2 + $0x11c] sm:$0xf0] }
 0x225   : > { %v4336_v28 = vor.u32 %v4582_v43, %v4335_v6  ;;  %7014 = vst [vmem:[#allocation49_spill] sm:$0xff] %v6462_v60  ;;  %v4586_v43 = vld [vmem:[#allocation2 + $0x124] sm:$0xf0]  ;;  %v4349_v6 = vld [vmem:[#allocation2 + $0x120] sm:$0xf0] }
 0x226   : > { %v4584_v60 = vld [vmem:[#allocation2 + $0x118] sm:$0xf] }
 0x227   : > { %2418 = vmatmul.bf16.gmra.mxu3 %v6035_v27  ;;  %v6460_v27 = vpop.f32.mrf.mxu2 }
 0x228   : > { %7013 = vst [vmem:[#allocation48_spill] sm:$0xff] %v6460_v27  ;;  %v4347_v27 = vld [vmem:[#allocation2 + $0x114] sm:$0xf] }
 0x229   : > { %v4348_v13 = vor.u32 %v4585_v59, %v4347_v27  ;;  %v4367_v27 = vld [vmem:[#allocation2 + $0x134] sm:$0xf] }
 0x22a   : > { %v6453_v62 = vpop.f32.mrf.mxu3 }
 0x22b   : > { %v6469_v1 = vpop.f32.mrf.mxu0 }
 0x22c   : > { %7015 = vst [vmem:[#allocation50_spill] sm:$0xff] %v6469_v1  ;;  %v6473_v32 = vpop.f32.mrf.mxu1 }
 0x22d   : > { %7017 = vst [vmem:[#allocation52_spill] sm:$0xff] %v6473_v32 }
 0x22f   : > { %v6471_v0 = vpop.f32.mrf.mxu2 }
 0x230   : > { %7016 = vst [vmem:[#allocation51_spill] sm:$0xff] %v6471_v0 }
 0x232   : > { %v6464_v25 = vpop.f32.mrf.mxu3 }
 0x233   : > { %3555 = vmatmul.bf16.gmra.mxu2 %v4344_v53  ;;  %v4355_v53 = vld [vmem:[#allocation2 + $0x11c] sm:$0xf] }
 0x234   : > { %3417 = vmatmul.bf16.gmra.mxu0 %v4336_v28  ;;  %3486 = vmatmul.bf16.gmra.mxu1 %v4340_v55  ;;  %v4356_v48 = vor.u32 %v4586_v43, %v4355_v53  ;;  %v4352_v28 = vor.u32 %v4584_v60, %v4349_v6  ;;  %v6481_v0 = vpop.f32.mrf.mxu1  ;;  %v4589_v43 = vld [vmem:[#allocation2 + $0x13c] sm:$0xf0]  ;;  %v4588_v53 = vld [vmem:[#allocation2 + $0x134] sm:$0xf0]  ;;  %v4359_v6 = vld [vmem:[#allocation2 + $0x12c] sm:$0xf] }
 0x235   : > { %7020 = vst [vmem:[#allocation55_spill] sm:$0xff] %v6481_v0 }
 0x237   : > { %2423 = vmatmul.bf16.gmra.mxu3 %v6097_v36  ;;  %v6477_v36 = vpop.f32.mrf.mxu0  ;;  %v6479_v1 = vpop.f32.mrf.mxu2 }
 0x238   : > { %7018 = vst [vmem:[#allocation53_spill] sm:$0xff] %v6477_v36 }
 0x239   : > { %7019 = vst [vmem:[#allocation54_spill] sm:$0xff] %v6479_v1  ;;  %v4360_v1 = vor.u32 %v4588_v53, %v4359_v6  ;;  %v4591_v53 = vld [vmem:[#allocation2 + $0x14c] sm:$0xf0] }
 0x23a   : > { %v6467_v29 = vpop.f32.mrf.mxu3 }
 0x23f   : > { %v6486_v60 = vpop.f32.mrf.mxu0  ;;  %v6488_v59 = vpop.f32.mrf.mxu2 }
 0x240   : > { %7021 = vst [vmem:[#allocation56_spill] sm:$0xff] %v6486_v60 }
 0x241   : > { %7022 = vst [vmem:[#allocation57_spill] sm:$0xff] %v6488_v59  ;;  %v4592_v59 = vld [vmem:[#allocation2 + $0x154] sm:$0xf0] }
 0x242   : > { %v6475_v55 = vpop.f32.mrf.mxu3 }
 0x243   : > { %3560 = vmatmul.bf16.gmra.mxu2 %v4356_v48  ;;  %v4587_v48 = vld [vmem:[#allocation2 + $0x130] sm:$0xf] }
 0x244   : > { %3422 = vmatmul.bf16.gmra.mxu0 %v4348_v13  ;;  %3491 = vmatmul.bf16.gmra.mxu1 %v4352_v28  ;;  %v4368_v13 = vor.u32 %v4589_v43, %v4367_v27  ;;  %v6490_v28 = vpop.f32.mrf.mxu1  ;;  %v4364_v36 = vor.u32 %v4587_v48, %v4361_v15  ;;  %v4373_v15 = vld [vmem:[#allocation2 + $0x150] sm:$0xf0]  ;;  %v4371_v48 = vld [vmem:[#allocation2 + $0x144] sm:$0xf] }
 0x245   : > { %7023 = vst [vmem:[#allocation58_spill] sm:$0xff] %v6490_v28  ;;  %v4590_v28 = vld [vmem:[#allocation2 + $0x148] sm:$0xf] }
 0x247   : > { %2428 = vmatmul.bf16.gmra.mxu3 %v6152_v50  ;;  %v4001_v50 = vld [vmem:[#allocation2 + $0x15c] sm:$0xf0]  ;;  %v6494_v56 = vpop.f32.mrf.mxu0  ;;  %v6496_v60 = vpop.f32.mrf.mxu2 }
 0x248   : > { %v4004_v39 = vor.u32 %v4536_v11, %v4001_v50  ;;  %7024 = vst [vmem:[#allocation59_spill] sm:$0xff] %v6494_v56  ;;  %v4511_v56 = vld [vmem:[#allocation2 + $0x34] sm:$0xf0] }
 0x249   : > { %7025 = vst [vmem:[#allocation60_spill] sm:$0xff] %v6496_v60 }
 0x24a   : > { %v6484_v32 = vpop.f32.mrf.mxu3 }
 0x24c   : > { %v6498_v43 = vpop.f32.mrf.mxu1 }
 0x24d   : > { %7026 = vst [vmem:[#allocation61_spill] sm:$0xff] %v6498_v43 }
 0x24f   : > { %v6504_v50 = vpop.f32.mrf.mxu0  ;;  %v6506_v60 = vpop.f32.mrf.mxu2 }
 0x250   : > { %7027 = vst [vmem:[#allocation62_spill] sm:$0xff] %v6504_v50  ;;  %v4383_v50 = vld [vmem:[#allocation2 + $0x15c] sm:$0xf] }
 0x251   : > { %7028 = vst [vmem:[#allocation63_spill] sm:$0xff] %v6506_v60  ;;  %v4593_v60 = vld [vmem:[#allocation2 + $0x160] sm:$0xf] }
 0x252   : > { %v6492_v0 = vpop.f32.mrf.mxu3 }
 0x253   : > { %3565 = vmatmul.bf16.gmra.mxu2 %v4368_v13  ;;  %v4379_v13 = vld [vmem:[#allocation2 + $0x14c] sm:$0xf] }
 0x254   : > { %3427 = vmatmul.bf16.gmra.mxu0 %v4360_v1  ;;  %3496 = vmatmul.bf16.gmra.mxu1 %v4364_v36  ;;  %v4380_v6 = vor.u32 %v4592_v59, %v4379_v13  ;;  %v4372_v1 = vor.u32 %v4591_v53, %v4371_v48  ;;  %v4376_v36 = vor.u32 %v4590_v28, %v4373_v15  ;;  %v6508_v43 = vpop.f32.mrf.mxu1  ;;  %v4595_v13 = vld [vmem:[#allocation2 + $0x16c] sm:$0xf0]  ;;  %v4594_v15 = vld [vmem:[#allocation2 + $0x164] sm:$0xf0] }
 0x255   : > { %7029 = vst [vmem:[#allocation64_spill] sm:$0xff] %v6508_v43  ;;  %v4384_v43 = vor.u32 %v4594_v15, %v4383_v50  ;;  %v4598_v50 = vld [vmem:[#allocation2 + $0x184] sm:$0xf0]  ;;  %v4397_v15 = vld [vmem:[#allocation2 + $0x180] sm:$0xf0] }
 0x257   : > { %2433 = vmatmul.bf16.gmra.mxu3 %v4004_v39  ;;  %v4115_v39 = vld [vmem:[#allocation2 + $0x2c] sm:$0xf]  ;;  %v6512_v53 = vpop.f32.mrf.mxu0  ;;  %v6514_v28 = vpop.f32.mrf.mxu2 }
 0x258   : > { %v4116_v63 = vor.u32 %v4511_v56, %v4115_v39  ;;  %7031 = vst [vmem:[#allocation66_spill] sm:$0xff] %v6512_v53  ;;  %v7035_v39 = vunpack.c.l.b16 %v5698_v52 }
 0x259   : > { %7032 = vst [vmem:[#allocation67_spill] sm:$0xff] %v6514_v28 }
 0x25a   : > { %v6500_v27 = vpop.f32.mrf.mxu3 }
 0x25c   : > { %v6516_v48 = vpop.f32.mrf.mxu1 }
 0x25d   : > { %7033 = vst [vmem:[#allocation68_spill] sm:$0xff] %v6516_v48 }
 0x25f   : > { %v6522_v53 = vpop.f32.mrf.mxu0 }
 0x260   : > { %7036 = vst [vmem:[#allocation70_spill] sm:$0xff] %v6522_v53 }
 0x262   : > { %v6502_v11 = vpop.f32.mrf.mxu3 }
 0x263   : > { %3570 = vmatmul.bf16.gmra.mxu2 %v4380_v6  ;;  %v4385_v6 = vld [vmem:[#allocation2 + $0x168] sm:$0xf0] }
 0x264   : > { %3432 = vmatmul.bf16.gmra.mxu0 %v4372_v1  ;;  %3501 = vmatmul.bf16.gmra.mxu1 %v4376_v36  ;;  %v4391_v1 = vld [vmem:[#allocation2 + $0x164] sm:$0xf]  ;;  %v4388_v61 = vor.u32 %v4593_v60, %v4385_v6  ;;  %v4597_v60 = vld [vmem:[#allocation2 + $0x17c] sm:$0xf0]  ;;  %v4403_v6 = vld [vmem:[#allocation2 + $0x17c] sm:$0xf] }
 0x265   : > { %v4392_v36 = vor.u32 %v4595_v13, %v4391_v1  ;;  %v6526_v13 = vpop.f32.mrf.mxu1 }
 0x266   : > { %7038 = vst [vmem:[#allocation72_spill] sm:$0xff] %v6526_v13 }
 0x267   : > { %2885 = vmatmul.bf16.vlgmr.msra.gmra.mxu3 %v4116_v63  ;;  %v2522_v63 = vunpack.c.l.b16 %v1819_v40  ;;  %v6530_v52 = vpop.f32.mrf.mxu0 }
 0x268   : > { %7040 = vst [vmem:[#allocation74_spill] sm:$0xff] %v6530_v52 }
 0x269   : > { %v2528_v28 = vpack.c.b16 %v7035_v39, %v2522_v63 }
 0x26a   : > { %v6510_v59 = vpop.f32.mrf.mxu3 }
 0x26b   : > { %7030 = vst [vmem:[#allocation65_spill] sm:$0xff] %v6510_v59  ;;  %v6524_v59 = vpop.f32.mrf.mxu2 }
 0x26c   : > { %7037 = vst [vmem:[#allocation71_spill] sm:$0xff] %v6524_v59 }
 0x26d   : > { %v6534_v39 = vpop.f32.mrf.mxu1 }
 0x26e   : > { %7042 = vst [vmem:[#allocation76_spill] sm:$0xff] %v6534_v39 }
 0x272   : > { %v6518_v56 = vpop.f32.mrf.mxu3 }
 0x273   : > { %3575 = vmatmul.bf16.gmra.mxu2 %v4392_v36  ;;  %7034 = vst [vmem:[#allocation69_spill] sm:$0xff] %v6518_v56  ;;  %v4404_v36 = vor.u32 %v4598_v50, %v4403_v6  ;;  %v6532_v63 = vpop.f32.mrf.mxu2  ;;  %v7056_v56 = vld [vmem:[#allocation8_spill] sm:$0xff] }
 0x274   : > { %3437 = vmatmul.bf16.gmra.mxu0 %v4384_v43  ;;  %3506 = vmatmul.bf16.gmra.mxu1 %v4388_v61  ;;  %v4395_v43 = vld [vmem:[#allocation2 + $0x174] sm:$0xf]  ;;  %v4596_v61 = vld [vmem:[#allocation2 + $0x178] sm:$0xf]  ;;  %7041 = vst [vmem:[#allocation75_spill] sm:$0xff] %v6532_v63 }
 0x275   : > { %v4396_v40 = vor.u32 %v4597_v60, %v4395_v43  ;;  %v4400_v48 = vor.u32 %v4596_v61, %v4397_v15  ;;  %v3388_v43 = vpop.f32.mrf.mxu0 }
 0x277   : > { %2890 = vmatmul.bf16.gmra.mxu3 %v2528_v28 }
 0x27a   : > { %v6528_v1 = vpop.f32.mrf.mxu3 }
 0x27b   : > { %7039 = vst [vmem:[#allocation73_spill] sm:$0xff] %v6528_v1 }
 0x282   : > { %v6536_v28 = vpop.f32.mrf.mxu3 }
 0x283   : > { %3580 = vmatmul.bf16.gmra.mxu2 %v4404_v36  ;;  %7043 = vst [vmem:[#allocation77_spill] sm:$0xff] %v6536_v28 }
 0x284   : > { %3442 = vmatmul.bf16.gmra.mxu0 %v4396_v40  ;;  %3511 = vmatmul.bf16.gmra.mxu1 %v4400_v48  ;;  %v3526_v48 = vpop.f32.mrf.mxu2  ;;  %v3390_v40 = vpop.f32.mrf.mxu0 }
 0x287   : > { %2895 = vmatmul.bf16.gmra.mxu3 %v5645_v2  ;;  %v3457_v2 = vpop.f32.mrf.mxu1 }
 0x28a   : > { %v6539_v59 = vpop.f32.mrf.mxu3 }
 0x28b   : > { %7044 = vst [vmem:[#allocation78_spill] sm:$0xff] %v6539_v59 }
 0x28c   : > { %v3528_v39 = vpop.f32.mrf.mxu2 }
 0x28f   : > { %v3459_v63 = vpop.f32.mrf.mxu1 }
 0x292   : > { %v6541_v50 = vpop.f32.mrf.mxu3 }
 0x293   : > { %7045 = vst [vmem:[#allocation79_spill] sm:$0xff] %v6541_v50 }
 0x294   : > { %v3531_v53 = vpop.f32.mrf.mxu2 }
 0x297   : > { %2900 = vmatmul.bf16.gmra.mxu3 %v5692_v33  ;;  %v3462_v13 = vpop.f32.mrf.mxu1 }
 0x29a   : > { %v6544_v60 = vpop.f32.mrf.mxu3 }
 0x29b   : > { %7046 = vst [vmem:[#allocation80_spill] sm:$0xff] %v6544_v60 }
 0x2a2   : > { %v6546_v15 = vpop.f32.mrf.mxu3 }
 0x2a3   : > { %7047 = vst [vmem:[#allocation81_spill] sm:$0xff] %v6546_v15 }
 0x2a7   : > { %2905 = vmatmul.bf16.gmra.mxu3 %v5734_v45  ;;  %v3393_v45 = vpop.f32.mrf.mxu0 }
 0x2aa   : > { %v6549_v6 = vpop.f32.mrf.mxu3 }
 0x2ab   : > { %7048 = vst [vmem:[#allocation82_spill] sm:$0xff] %v6549_v6 }
 0x2af   : > { %v6563_v6 = vpop.f32.mrf.mxu0 }
 0x2b2   : > { %v6551_v36 = vpop.f32.mrf.mxu3 }
 0x2b3   : > { %7049 = vst [vmem:[#allocation83_spill] sm:$0xff] %v6551_v36 }
 0x2b7   : > { %2910 = vmatmul.bf16.gmra.mxu3 %v5790_v20  ;;  %v6565_v20 = vpop.f32.mrf.mxu1 }
 0x2ba   : > { %v6554_v61 = vpop.f32.mrf.mxu3 }
 0x2bb   : > { %7050 = vst [vmem:[#allocation84_spill] sm:$0xff] %v6554_v61  ;;  %v6568_v61 = vpop.f32.mrf.mxu2 }
 0x2c2   : > { %v6556_v33 = vpop.f32.mrf.mxu3 }
 0x2c3   : > { %7051 = vst [vmem:[#allocation85_spill] sm:$0xff] %v6556_v33  ;;  %v6574_v33 = vpop.f32.mrf.mxu0 }
 0x2c7   : > { %2915 = vmatmul.bf16.gmra.mxu3 %v5851_v37  ;;  %v2380_v37 = vadd.f32 %v6453_v62, %v6041_v57 }
 0x2c9   : > { %v2449_v60 = vadd.f32 %v6207_v31, %v2380_v37  ;;  %v3458_v37 = vadd.f32 %v3457_v2, %v3388_v43 }
 0x2ca   : > { %v6559_v52 = vpop.f32.mrf.mxu3 }
 0x2cb   : > { %7052 = vst [vmem:[#allocation86_spill] sm:$0xff] %v6559_v52  ;;  %v6576_v52 = vpop.f32.mrf.mxu1  ;;  %v2749_v59 = vadd.f32 %v6217_v46, %v2449_v60  ;;  %v6588_v57 = vpop.f32.mrf.mxu0  ;;  %v3527_v46 = vadd.f32 %v3526_v48, %v3458_v37 }
 0x2cd   : > { %v2818_v62 = vadd.f32 %v6209_v51, %v2749_v59  ;;  %v3460_v59 = vadd.f32 %v3459_v63, %v3390_v40 }
 0x2cf   : > { %v3529_v2 = vadd.f32 %v3528_v39, %v3460_v59  ;;  %v7057_v39 = vld [vmem:[#allocation6_spill] sm:$0xff] }
 0x2d2   : > { %v6561_v36 = vpop.f32.mrf.mxu3 }
 0x2d3   : > { %7053 = vst [vmem:[#allocation87_spill] sm:$0xff] %v6561_v36  ;;  %v6579_v36 = vpop.f32.mrf.mxu2  ;;  %v6591_v28 = vpop.f32.mrf.mxu1 }
 0x2d7   : > { %2920 = vmatmul.bf16.gmra.mxu3 %v5923_v12  ;;  %v2382_v12 = vadd.f32 %v6464_v25, %v6068_v3  ;;  %v2385_v3 = vadd.f32 %v6467_v29, %v7056_v56 }
 0x2d9   : > { %v2454_v51 = vadd.f32 %v6292_v41, %v2385_v3 }
 0x2da   : > { %v6570_v15 = vpop.f32.mrf.mxu3 }
 0x2db   : > { %7054 = vst [vmem:[#allocation88_spill] sm:$0xff] %v6570_v15  ;;  %v2451_v15 = vadd.f32 %v6262_v49, %v2382_v12  ;;  %v6601_v49 = vld [vmem:[%s6858_s5] ss:$0 sm:$0xff]  ;;  %v6605_v12 = vpop.f32.mrf.mxu0  ;;  %v2754_v48 = vadd.f32 %v6303_v18, %v2454_v51 }
 0x2e2   : > { %v6581_v50 = vpop.f32.mrf.mxu3 }
 0x2e3   : > { %7055 = vst [vmem:[#allocation89_spill] sm:$0xff] %v6581_v50  ;;  %v6593_v50 = vpop.f32.mrf.mxu2  ;;  %v6624_v51 = vpop.f32.mrf.mxu0 }
 0x2e7   : > { %2925 = vmatmul.bf16.gmra.mxu3 %v5971_v4  ;;  %v2751_v4 = vadd.f32 %v6266_v5, %v2451_v15  ;;  %v6608_v5 = vpop.f32.mrf.mxu1 }
 0x2e9   : > { %v2820_v60 = vadd.f32 %v6264_v7, %v2751_v4  ;;  %v2390_v4 = vadd.f32 %v6484_v32, %v6166_v24 }
 0x2ea   : > { %v2886_v31 = vpop.f32.mrf.mxu3 }
 0x2eb   : > { %v2887_v1 = vadd.f32 %v2886_v31, %v2818_v62  ;;  %v6614_v41 = vpop.f32.mrf.mxu2  ;;  %v2823_v31 = vadd.f32 %v6294_v21, %v2754_v48  ;;  %v3468_v48 = vadd.f32 %v6576_v52, %v6574_v33 }
 0x2ed   : > { %v3586_v25 = vadd.f32 %v3527_v46, %v2887_v1  ;;  %v2387_v1 = vadd.f32 %v6475_v55, %v6139_v42  ;;  %v3463_v55 = vadd.f32 %v3462_v13, %v3393_v45  ;;  %v2459_v13 = vadd.f32 %v6344_v47, %v2390_v4 }
 0x2ee   : > { %v3465_v45 = vadd.f32 %v6565_v20, %v6563_v6  ;;  %v7058_v6 = vld [vmem:[#allocation7_spill] sm:$0xff] }
 0x2ef   : > { %v3614_v29 = vadd.f32 %v6601_v49, %v3586_v25  ;;  %v2456_v40 = vadd.f32 %v6326_v16, %v2387_v1  ;;  %v3532_v25 = vadd.f32 %v3531_v53, %v3463_v55  ;;  %v6643_v1 = vpop.f32.mrf.mxu0  ;;  %v3470_v55 = vadd.f32 %v6591_v28, %v6588_v57 }
 0x2f0   : > { %v3534_v53 = vadd.f32 %v6568_v61, %v3465_v45 }
 0x2f1   : > { %v3662_v63 = vmul.f32 0.01, %v3614_v29  ;;  %vm3638_vm4 = vcmp.ge.f32.partialorder %v3614_v29, 0.0  ;;  %v2756_v59 = vadd.f32 %v6330_v30, %v2456_v40 }
 0x2f2   : > { %v2888_v43 = vpop.f32.mrf.mxu3 }
 0x2f3   : > { %v2889_v56 = vadd.f32 %v2888_v43, %v2820_v60  ;;  %v3686_v37 = vsel %vm3638_vm4, %v3614_v29, %v3662_v63  ;;  %v6627_v60 = vpop.f32.mrf.mxu1  ;;  %v6632_v16 = vpop.f32.mrf.mxu2  ;;  %v2825_v24 = vadd.f32 %v6328_v17, %v2756_v59 }
 0x2f5   : > { %v3587_v15 = vadd.f32 %v3529_v2, %v2889_v56  ;;  %v2392_v2 = vadd.f32 %v6492_v0, %v6187_v44  ;;  %v2759_v56 = vadd.f32 %v6348_v10, %v2459_v13 }
 0x2f7   : > { %v3615_v7 = vadd.f32 %v6601_v49, %v3587_v15  ;;  %2930 = vmatmul.bf16.gmra.mxu3 %v7057_v39  ;;  %v2461_v61 = vadd.f32 %v6356_v19, %v2392_v2  ;;  %v2828_v44 = vadd.f32 %v6346_v22, %v2759_v56  ;;  %v7062_v2 = vld [vmem:[#allocation15_spill] sm:$0xff] }
 0x2f9   : > { %vm3639_vm8 = vcmp.ge.f32.partialorder %v3615_v7, 0.0  ;;  %v3663_v62 = vmul.f32 0.01, %v3615_v7  ;;  %v2761_v19 = vadd.f32 %v6360_v35, %v2461_v61 }
 0x2fa   : > { %v2891_v42 = vpop.f32.mrf.mxu3 }
 0x2fb   : > { %v3687_v18 = vsel %vm3639_vm8, %v3615_v7, %v3663_v62  ;;  %v2892_v3 = vadd.f32 %v2891_v42, %v2823_v31  ;;  %v6647_v17 = vpop.f32.mrf.mxu1  ;;  %v6651_v0 = vpop.f32.mrf.mxu2  ;;  %v2395_v62 = vadd.f32 %v6500_v27, %v6199_v58  ;;  %v3537_v31 = vadd.f32 %v6579_v36, %v3468_v48 }
 0x2fc   : > { %v4690_v46 = vpack.c.bf16 %v3687_v18, %v3686_v37  ;;  %v6663_v37 = vpop.f32.mrf.mxu0  ;;  %v2830_v52 = vadd.f32 %v6358_v9, %v2761_v19  ;;  %v3539_v58 = vadd.f32 %v6593_v50, %v3470_v55 }
 0x2fd   : > { %v3588_v21 = vadd.f32 %v3532_v25, %v2892_v3  ;;  %v2464_v22 = vadd.f32 %v6364_v54, %v2395_v62  ;;  %v2397_v54 = vadd.f32 %v6502_v11, %v6242_v23  ;;  %v3473_v23 = vadd.f32 %v6608_v5, %v6605_v12  ;;  %v7067_v62 = vld [vmem:[#allocation20_spill] sm:$0xff] }
 0x2fe   : > { %4691 = vst [vmem:[%s6629_s13] sm:$0xff] %v4690_v46   ;;  %v3475_v5 = vadd.f32 %v6627_v60, %v6624_v51  ;;  %v7066_v60 = vld [vmem:[#allocation23_spill] sm:$0xff] }
 0x2ff   : > { %v3616_v30 = vadd.f32 %v6601_v49, %v3588_v21  ;;  %v2764_v28 = vadd.f32 %v6369_v34, %v2464_v22  ;;  %v2466_v9 = vadd.f32 %v6373_v8, %v2397_v54  ;;  %v3542_v8 = vadd.f32 %v6614_v41, %v3473_v23  ;;  %v7063_v41 = vld [vmem:[#allocation9_spill] sm:$0xff] }
 0x301   : > { %v3664_v47 = vmul.f32 0.01, %v3616_v30  ;;  %vm3640_vm11 = vcmp.ge.f32.partialorder %v3616_v30, 0.0  ;;  %v2833_v4 = vadd.f32 %v6366_v26, %v2764_v28 }
 0x302   : > { %v2893_v32 = vpop.f32.mrf.mxu3 }
 0x303   : > { %v2894_v43 = vadd.f32 %v2893_v32, %v2825_v24  ;;  %v3688_v63 = vsel %vm3640_vm11, %v3616_v30, %v3664_v47  ;;  %v6666_v33 = vpop.f32.mrf.mxu1  ;;  %v6670_v35 = vpop.f32.mrf.mxu2  ;;  %v7060_v32 = vld [vmem:[#allocation16_spill] sm:$0xff]  ;;  %v3544_v47 = vadd.f32 %v6632_v16, %v3475_v5 }
 0x304   : > { %v6681_v11 = vpop.f32.mrf.mxu0 }
 0x305   : > { %v3589_v29 = vadd.f32 %v3534_v53, %v2894_v43  ;;  %v2766_v53 = vadd.f32 %v7060_v32, %v2466_v9  ;;  %v7061_v43 = vld [vmem:[#allocation19_spill] sm:$0xff]  ;;  %v7075_v32 = vld [vmem:[#allocation29_spill] sm:$0xff] }
 0x307   : > { %v3617_v15 = vadd.f32 %v6601_v49, %v3589_v29  ;;  %2935 = vmatmul.bf16.gmra.mxu3 %v7058_v6  ;;  %v2835_v29 = vadd.f32 %v7062_v2, %v2766_v53  ;;  %v7064_v6 = vld [vmem:[#allocation69_spill] sm:$0xff] }
 0x308   : > { %v2402_v61 = vadd.f32 %v7064_v6, %v7063_v41 }
 0x309   : > { %vm3641_vm12 = vcmp.ge.f32.partialorder %v3617_v15, 0.0  ;;  %v3665_v20 = vmul.f32 0.01, %v3617_v15 }
 0x30a   : > { %v2896_v10 = vpop.f32.mrf.mxu3 }
 0x30b   : > { %v3689_v7 = vsel %vm3641_vm12, %v3617_v15, %v3665_v20  ;;  %v2897_v39 = vadd.f32 %v2896_v10, %v2828_v44  ;;  %v3482_v13 = vpop.f32.mrf.mxu1  ;;  %v6687_v30 = vpop.f32.mrf.mxu2  ;;  %v7065_v10 = vld [vmem:[#allocation21_spill] sm:$0xff] }
 0x30c   : > { %v4695_v40 = vpack.c.bf16 %v3689_v7, %v3688_v63  ;;  %v3415_v20 = vpop.f32.mrf.mxu0 }
 0x30d   : > { %v3590_v42 = vadd.f32 %v3537_v31, %v2897_v39 }
 0x30e   : > { %4763 = vst [vmem:[%s6629_s13 + $0x8] sm:$0xff] %v4695_v40   ;;  %v2471_v40 = vadd.f32 %v7066_v60, %v2402_v61 }
 0x30f   : > { %v3618_v27 = vadd.f32 %v6601_v49, %v3590_v42  ;;  %v3478_v42 = vadd.f32 %v6647_v17, %v6643_v1  ;;  %v3480_v1 = vadd.f32 %v6666_v33, %v6663_v37  ;;  %v7072_v17 = vld [vmem:[#allocation24_spill] sm:$0xff]  ;;  %v7076_v37 = vld [vmem:[#allocation31_spill] sm:$0xff] }
 0x311   : > { %v3666_v57 = vmul.f32 0.01, %v3618_v27  ;;  %vm3642_vm10 = vcmp.ge.f32.partialorder %v3618_v27, 0.0  ;;  %v3547_v54 = vadd.f32 %v6651_v0, %v3478_v42 }
 0x312   : > { %v2898_v18 = vpop.f32.mrf.mxu3 }
 0x313   : > { %v2899_v36 = vadd.f32 %v2898_v18, %v2830_v52  ;;  %v3690_v34 = vsel %vm3642_vm10, %v3618_v27, %v3666_v57  ;;  %v3484_v63 = vpop.f32.mrf.mxu1  ;;  %v3553_v51 = vpop.f32.mrf.mxu2  ;;  %v7069_v27 = vld [vmem:[#allocation73_spill] sm:$0xff] }
 0x314   : > { %v3418_v57 = vpop.f32.mrf.mxu0 }
 0x315   : > { %v3591_v3 = vadd.f32 %v3539_v58, %v2899_v36  ;;  %v7068_v58 = vld [vmem:[#allocation10_spill] sm:$0xff] }
 0x316   : > { %v2405_v36 = vadd.f32 %v7069_v27, %v7068_v58  ;;  %v7083_v58 = vld [vmem:[#allocation13_spill] sm:$0xff]  ;;  %v7084_v27 = vld [vmem:[#allocation79_spill] sm:$0xff] }
 0x317   : > { %v3619_v46 = vadd.f32 %v6601_v49, %v3591_v3  ;;  %2940 = vmatmul.bf16.gmra.mxu3 %v6146_v38  ;;  %v7059_v38 = vld [vmem:[#allocation65_spill] sm:$0xff] }
 0x318   : > { %v2400_v24 = vadd.f32 %v7059_v38, %v6275_v14  ;;  %v7070_v3 = vld [vmem:[#allocation25_spill] sm:$0xff] }
 0x319   : > { %vm3643_vm13 = vcmp.ge.f32.partialorder %v3619_v46, 0.0  ;;  %v3667_v50 = vmul.f32 0.01, %v3619_v46  ;;  %v2771_v28 = vadd.f32 %v7070_v3, %v2471_v40  ;;  %v7074_v38 = vld [vmem:[#allocation77_spill] sm:$0xff] }
 0x31a   : > { %v2901_v25 = vpop.f32.mrf.mxu3  ;;  %v2469_v12 = vadd.f32 %v7061_v43, %v2400_v24 }
 0x31b   : > { %v3691_v59 = vsel %vm3643_vm13, %v3619_v46, %v3667_v50  ;;  %v2902_v21 = vadd.f32 %v2901_v25, %v2833_v4  ;;  %v3487_v9 = vpop.f32.mrf.mxu1  ;;  %v7071_v50 = vld [vmem:[#allocation27_spill] sm:$0xff]  ;;  %v2840_v25 = vadd.f32 %v7072_v17, %v2771_v28  ;;  %v3556_v23 = vpop.f32.mrf.mxu2 }
 0x31c   : > { %v4700_v45 = vpack.c.bf16 %v3691_v59, %v3690_v34  ;;  %v2769_v48 = vadd.f32 %v7065_v10, %v2469_v12  ;;  %v2474_v4 = vadd.f32 %v7071_v50, %v2405_v36  ;;  %v3549_v59 = vadd.f32 %v6670_v35, %v3480_v1  ;;  %v3420_v12 = vpop.f32.mrf.mxu0  ;;  %v7077_v35 = vld [vmem:[#allocation28_spill] sm:$0xff]  ;;  %v7079_v10 = vld [vmem:[#allocation78_spill] sm:$0xff] }
 0x31d   : > { %v3592_v26 = vadd.f32 %v3542_v8, %v2902_v21  ;;  %v2412_v36 = vadd.f32 %v7084_v27, %v7083_v58  ;;  %v7098_v58 = vld [vmem:[#allocation18_spill] sm:$0xff] }
 0x31e   : > { %4764 = vst [vmem:[%s6629_s13 + $0x10] sm:$0xff] %v4700_v45   ;;  %v2838_v31 = vadd.f32 %v7067_v62, %v2769_v48  ;;  %v7073_v45 = vld [vmem:[#allocation11_spill] sm:$0xff]  ;;  %v2774_v53 = vadd.f32 %v7075_v32, %v2474_v4  ;;  %v7087_v4 = vld [vmem:[#allocation37_spill] sm:$0xff]  ;;  %v7099_v27 = vld [vmem:[#allocation82_spill] sm:$0xff] }
 0x31f   : > { %v3620_v14 = vadd.f32 %v6601_v49, %v3592_v26  ;;  %v2407_v24 = vadd.f32 %v7074_v38, %v7073_v45  ;;  %v7088_v45 = vld [vmem:[#allocation14_spill] sm:$0xff]  ;;  %v7089_v38 = vld [vmem:[#allocation80_spill] sm:$0xff] }
 0x320   : > { %v2843_v2 = vadd.f32 %v7077_v35, %v2774_v53  ;;  %v7090_v53 = vld [vmem:[#allocation42_spill] sm:$0xff] }
 0x321   : > { %v3668_v7 = vmul.f32 0.01, %v3620_v14  ;;  %vm3644_vm14 = vcmp.ge.f32.partialorder %v3620_v14, 0.0  ;;  %v2476_v33 = vadd.f32 %v7076_v37, %v2407_v24  ;;  %v2415_v24 = vadd.f32 %v7089_v38, %v7088_v45  ;;  %v7105_v38 = vld [vmem:[#allocation52_spill] sm:$0xff] }
 0x322   : > { %v2903_v56 = vpop.f32.mrf.mxu3 }
 0x323   : > { %v2904_v15 = vadd.f32 %v2903_v56, %v2835_v29  ;;  %v3692_v22 = vsel %vm3644_vm14, %v3620_v14, %v3668_v7  ;;  %v3489_v29 = vpop.f32.mrf.mxu1  ;;  %v3558_v6 = vpop.f32.mrf.mxu2 }
 0x325   : > { %v3593_v44 = vadd.f32 %v3544_v47, %v2904_v15  ;;  %v3483_v47 = vadd.f32 %v3482_v13, %v6681_v11 }
 0x327   : > { %v3621_v39 = vadd.f32 %v6601_v49, %v3593_v44  ;;  %v7078_v44 = vld [vmem:[#allocation12_spill] sm:$0xff]  ;;  %v3552_v7 = vadd.f32 %v6687_v30, %v3483_v47 }
 0x328   : > { %v2410_v48 = vadd.f32 %v7079_v10, %v7078_v44  ;;  %v7095_v10 = vld [vmem:[#allocation46_spill] sm:$0xff] }
 0x329   : > { %vm3645_vm15 = vcmp.ge.f32.partialorder %v3621_v39, 0.0  ;;  %v3669_v16 = vmul.f32 0.01, %v3621_v39 }
 0x32a   : > { %v2906_v19 = vpop.f32.mrf.mxu3 }
 0x32b   : > { %v3693_v55 = vsel %vm3645_vm15, %v3621_v39, %v3669_v16  ;;  %v2907_v52 = vadd.f32 %v2906_v19, %v2838_v31  ;;  %v7080_v39 = vld [vmem:[#allocation33_spill] sm:$0xff]  ;;  %v7081_v16 = vld [vmem:[#allocation36_spill] sm:$0xff]  ;;  %v3485_v31 = vadd.f32 %v3484_v63, %v3415_v20  ;;  %v3561_v28 = vpop.f32.mrf.mxu2 }
 0x32c   : > { %v4705_v18 = vpack.c.bf16 %v3693_v55, %v3692_v22  ;;  %v2776_v60 = vadd.f32 %v7080_v39, %v2476_v33  ;;  %v2479_v62 = vadd.f32 %v7081_v16, %v2410_v48  ;;  %v7082_v19 = vld [vmem:[#allocation32_spill] sm:$0xff]  ;;  %v3423_v22 = vpop.f32.mrf.mxu0  ;;  %v7097_v16 = vld [vmem:[#allocation45_spill] sm:$0xff] }
 0x32d   : > { %v3594_v46 = vadd.f32 %v3547_v54, %v2907_v52  ;;  %v3554_v13 = vadd.f32 %v3553_v51, %v3485_v31  ;;  %v7085_v54 = vld [vmem:[#allocation38_spill] sm:$0xff]  ;;  %v7086_v20 = vld [vmem:[#allocation40_spill] sm:$0xff] }
 0x32e   : > { %4765 = vst [vmem:[%s6629_s13 + $0x18] sm:$0xff] %v4705_v18   ;;  %v2845_v42 = vadd.f32 %v7082_v19, %v2776_v60  ;;  %v3492_v18 = vpop.f32.mrf.mxu1  ;;  %v2779_v3 = vadd.f32 %v7085_v54, %v2479_v62  ;;  %v2481_v63 = vadd.f32 %v7086_v20, %v2412_v36  ;;  %v2420_v36 = vadd.f32 %v7099_v27, %v7098_v58  ;;  %v7100_v54 = vld [vmem:[#allocation49_spill] sm:$0xff] }
 0x32f   : > { %v3622_v21 = vadd.f32 %v6601_v49, %v3594_v46 }
 0x330   : > { %v2848_v1 = vadd.f32 %v7087_v4, %v2779_v3  ;;  %v7102_v4 = vld [vmem:[#allocation48_spill] sm:$0xff] }
 0x331   : > { %v3670_v26 = vmul.f32 0.01, %v3622_v21  ;;  %vm3646_vm1 = vcmp.ge.f32.partialorder %v3622_v21, 0.0 }
 0x332   : > { %v2908_v34 = vpop.f32.mrf.mxu3 }
 0x333   : > { %v2909_v0 = vadd.f32 %v2908_v34, %v2840_v25  ;;  %v3694_v14 = vsel %vm3646_vm1, %v3622_v21, %v3670_v26  ;;  %v3488_v25 = vadd.f32 %v3487_v9, %v3418_v57  ;;  %v2781_v26 = vadd.f32 %v7090_v53, %v2481_v63  ;;  %v3563_v33 = vpop.f32.mrf.mxu2 }
 0x334   : > { %v3425_v32 = vpop.f32.mrf.mxu0 }
 0x335   : > { %v3595_v8 = vadd.f32 %v3549_v59, %v2909_v0 }
 0x337   : > { %v3623_v43 = vadd.f32 %v6601_v49, %v3595_v8  ;;  %v3557_v8 = vadd.f32 %v3556_v23, %v3488_v25 }
 0x339   : > { %vm3647_vm0 = vcmp.ge.f32.partialorder %v3623_v43, 0.0  ;;  %v3671_v5 = vmul.f32 0.01, %v3623_v43 }
 0x33a   : > { %v2911_v56 = vpop.f32.mrf.mxu3 }
 0x33b   : > { %v3695_v15 = vsel %vm3647_vm0, %v3623_v43, %v3671_v5  ;;  %v2912_v41 = vadd.f32 %v2911_v56, %v2843_v2  ;;  %v3494_v43 = vpop.f32.mrf.mxu1  ;;  %v7091_v5 = vld [vmem:[#allocation44_spill] sm:$0xff]  ;;  %v3490_v2 = vadd.f32 %v3489_v29, %v3420_v12  ;;  %v7092_v56 = vld [vmem:[#allocation41_spill] sm:$0xff]  ;;  %v7096_v12 = vld [vmem:[#allocation47_spill] sm:$0xff]  ;;  %v3566_v31 = vpop.f32.mrf.mxu2 }
 0x33c   : > { %v4710_v61 = vpack.c.bf16 %v3695_v15, %v3694_v14  ;;  %v2484_v35 = vadd.f32 %v7091_v5, %v2415_v24  ;;  %v2850_v57 = vadd.f32 %v7092_v56, %v2781_v26  ;;  %v3495_v63 = vadd.f32 %v3494_v43, %v3425_v32  ;;  %v7106_v32 = vld [vmem:[#allocation53_spill] sm:$0xff] }
 0x33d   : > { %v3596_v40 = vadd.f32 %v3552_v7, %v2912_v41  ;;  %v3559_v47 = vadd.f32 %v3558_v6, %v3490_v2  ;;  %v7093_v41 = vld [vmem:[#allocation17_spill] sm:$0xff]  ;;  %v3428_v7 = vpop.f32.mrf.mxu0 }
 0x33e   : > { %4766 = vst [vmem:[%s6629_s13 + $0x20] sm:$0xff] %v4710_v61   ;;  %v7094_v61 = vld [vmem:[#allocation81_spill] sm:$0xff]  ;;  %v2784_v48 = vadd.f32 %v7095_v10, %v2484_v35 }
 0x33f   : > { %v3624_v55 = vadd.f32 %v6601_v49, %v3596_v40  ;;  %v2417_v23 = vadd.f32 %v7094_v61, %v7093_v41  ;;  %v7109_v41 = vld [vmem:[#allocation84_spill] sm:$0xff] }
 0x340   : > { %v2853_v62 = vadd.f32 %v7097_v16, %v2784_v48 }
 0x341   : > { %v3672_v46 = vmul.f32 0.01, %v3624_v55  ;;  %vm3648_vm2 = vcmp.ge.f32.partialorder %v3624_v55, 0.0  ;;  %v2486_v29 = vadd.f32 %v7096_v12, %v2417_v23 }
 0x342   : > { %v2913_v11 = vpop.f32.mrf.mxu3 }
 0x343   : > { %v2914_v52 = vadd.f32 %v2913_v11, %v2845_v42  ;;  %v3696_v34 = vsel %vm3648_vm2, %v3624_v55, %v3672_v46  ;;  %v3497_v40 = vpop.f32.mrf.mxu1  ;;  %v3493_v42 = vadd.f32 %v3492_v18, %v3423_v22  ;;  %v2786_v3 = vadd.f32 %v7100_v54, %v2486_v29 }
 0x344   : > { %v3564_v18 = vadd.f32 %v3563_v33, %v3495_v63  ;;  %v3498_v35 = vadd.f32 %v3497_v40, %v3428_v7 }
 0x345   : > { %v3597_v30 = vadd.f32 %v3554_v13, %v2914_v52 }
 0x346   : > { %v3567_v23 = vadd.f32 %v3566_v31, %v3498_v35 }
 0x347   : > { %v3625_v50 = vadd.f32 %v6601_v49, %v3597_v30  ;;  %v3562_v30 = vadd.f32 %v3561_v28, %v3493_v42  ;;  %v7113_v42 = vld [vmem:[#allocation30_spill] sm:$0xff] }
 0x349   : > { %vm3649_vm3 = vcmp.ge.f32.partialorder %v3625_v50, 0.0  ;;  %v3673_v51 = vmul.f32 0.01, %v3625_v50 }
 0x34a   : > { %v2916_v17 = vpop.f32.mrf.mxu3 }
 0x34b   : > { %v3697_v59 = vsel %vm3649_vm3, %v3625_v50, %v3673_v51  ;;  %v2917_v21 = vadd.f32 %v2916_v17, %v2848_v1  ;;  %v7101_v50 = vld [vmem:[#allocation50_spill] sm:$0xff]  ;;  %v3430_v51 = vpop.f32.mrf.mxu0  ;;  %v2855_v1 = vadd.f32 %v7102_v4, %v2786_v3  ;;  %v3499_v17 = vpop.f32.mrf.mxu1  ;;  %v7116_v3 = vld [vmem:[#allocation59_spill] sm:$0xff] }
 0x34c   : > { %v4715_v0 = vpack.c.bf16 %v3697_v59, %v3696_v34  ;;  %v2489_v20 = vadd.f32 %v7101_v50, %v2420_v36  ;;  %v3568_v59 = vpop.f32.mrf.mxu2  ;;  %v3500_v29 = vadd.f32 %v3499_v17, %v3430_v51 }
 0x34d   : > { %v3598_v37 = vadd.f32 %v3557_v8, %v2917_v21  ;;  %v7103_v21 = vld [vmem:[#allocation22_spill] sm:$0xff] }
 0x34e   : > { %4767 = vst [vmem:[%s6629_s13 + $0x28] sm:$0xff] %v4715_v0   ;;  %v7104_v0 = vld [vmem:[#allocation83_spill] sm:$0xff]  ;;  %v2789_v24 = vadd.f32 %v7105_v38, %v2489_v20  ;;  %v3569_v16 = vadd.f32 %v3568_v59, %v3500_v29  ;;  %v7117_v20 = vld [vmem:[#allocation57_spill] sm:$0xff] }
 0x34f   : > { %v3626_v14 = vadd.f32 %v6601_v49, %v3598_v37  ;;  %v2422_v28 = vadd.f32 %v7104_v0, %v7103_v21  ;;  %v7107_v37 = vld [vmem:[#allocation51_spill] sm:$0xff]  ;;  %v7120_v0 = vld [vmem:[#allocation61_spill] sm:$0xff] }
 0x350   : > { %v2858_v33 = vadd.f32 %v7107_v37, %v2789_v24 }
 0x351   : > { %v3674_v39 = vmul.f32 0.01, %v3626_v14  ;;  %vm3650_vm5 = vcmp.ge.f32.partialorder %v3626_v14, 0.0  ;;  %v2491_v26 = vadd.f32 %v7106_v32, %v2422_v28 }
 0x352   : > { %v2918_v9 = vpop.f32.mrf.mxu3 }
 0x353   : > { %v2919_v15 = vadd.f32 %v2918_v9, %v2850_v57  ;;  %v3698_v11 = vsel %vm3650_vm5, %v3626_v14, %v3674_v39  ;;  %v3433_v2 = vpop.f32.mrf.mxu0 }
 0x354   : > { %v3571_v48 = vpop.f32.mrf.mxu2 }
 0x355   : > { %v3599_v44 = vadd.f32 %v3559_v47, %v2919_v15  ;;  %v3502_v47 = vpop.f32.mrf.mxu1  ;;  %v7108_v15 = vld [vmem:[#allocation26_spill] sm:$0xff] }
 0x356   : > { %v2425_v61 = vadd.f32 %v7109_v41, %v7108_v15  ;;  %v3503_v4 = vadd.f32 %v3502_v47, %v3433_v2 }
 0x357   : > { %v3627_v60 = vadd.f32 %v6601_v49, %v3599_v44  ;;  %v7110_v44 = vld [vmem:[#allocation55_spill] sm:$0xff] }
 0x358   : > { %v2791_v10 = vadd.f32 %v7110_v44, %v2491_v26  ;;  %v3572_v21 = vadd.f32 %v3571_v48, %v3503_v4  ;;  %v7122_v26 = vld [vmem:[#allocation60_spill] sm:$0xff] }
 0x359   : > { %vm3651_vm6 = vcmp.ge.f32.partialorder %v3627_v60, 0.0  ;;  %v3675_v6 = vmul.f32 0.01, %v3627_v60 }
 0x35a   : > { %v2921_v19 = vpop.f32.mrf.mxu3 }
 0x35b   : > { %v3699_v13 = vsel %vm3651_vm6, %v3627_v60, %v3675_v6  ;;  %v2922_v55 = vadd.f32 %v2921_v19, %v2853_v62  ;;  %v7111_v60 = vld [vmem:[#allocation56_spill] sm:$0xff]  ;;  %v7112_v6 = vld [vmem:[#allocation54_spill] sm:$0xff] }
 0x35c   : > { %v4720_v52 = vpack.c.bf16 %v3699_v13, %v3698_v11  ;;  %v2494_v12 = vadd.f32 %v7111_v60, %v2425_v61  ;;  %v2860_v7 = vadd.f32 %v7112_v6, %v2791_v10  ;;  %v7114_v11 = vld [vmem:[#allocation85_spill] sm:$0xff]  ;;  %v3573_v54 = vpop.f32.mrf.mxu2 }
 0x35d   : > { %v3600_v46 = vadd.f32 %v3562_v30, %v2922_v55  ;;  %v2427_v13 = vadd.f32 %v7114_v11, %v7113_v42  ;;  %v3435_v55 = vpop.f32.mrf.mxu0  ;;  %v3504_v27 = vpop.f32.mrf.mxu1  ;;  %v7128_v42 = vld [vmem:[#allocation39_spill] sm:$0xff]  ;;  %v7129_v11 = vld [vmem:[#allocation88_spill] sm:$0xff] }
 0x35e   : > { %4768 = vst [vmem:[%s6629_s13 + $0x30] sm:$0xff] %v4720_v52   ;;  %v7115_v52 = vld [vmem:[#allocation58_spill] sm:$0xff]  ;;  %v3505_v32 = vadd.f32 %v3504_v27, %v3435_v55 }
 0x35f   : > { %v3628_v25 = vadd.f32 %v6601_v49, %v3600_v46  ;;  %v2794_v58 = vadd.f32 %v7115_v52, %v2494_v12  ;;  %v2496_v46 = vadd.f32 %v7116_v3, %v2427_v13  ;;  %v2435_v13 = vadd.f32 %v7129_v11, %v7128_v42  ;;  %v7131_v27 = vld [vmem:[#allocation70_spill] sm:$0xff] }
 0x361   : > { %v3676_v8 = vmul.f32 0.01, %v3628_v25  ;;  %vm3652_vm7 = vcmp.ge.f32.partialorder %v3628_v25, 0.0  ;;  %v2863_v63 = vadd.f32 %v7117_v20, %v2794_v58  ;;  %v2796_v28 = vadd.f32 %v7120_v0, %v2496_v46 }
 0x362   : > { %v2923_v22 = vpop.f32.mrf.mxu3 }
 0x363   : > { %v2924_v34 = vadd.f32 %v2923_v22, %v2855_v1  ;;  %v3700_v56 = vsel %vm3652_vm7, %v3628_v25, %v3676_v8  ;;  %v7118_v25 = vld [vmem:[#allocation34_spill] sm:$0xff] }
 0x364   : > { %v7121_v8 = vld [vmem:[#allocation62_spill] sm:$0xff]  ;;  %v3576_v37 = vpop.f32.mrf.mxu2 }
 0x365   : > { %v3601_v45 = vadd.f32 %v3564_v18, %v2924_v34  ;;  %v7119_v34 = vld [vmem:[#allocation86_spill] sm:$0xff]  ;;  %v3507_v24 = vpop.f32.mrf.mxu1 }
 0x366   : > { %v2430_v59 = vadd.f32 %v7119_v34, %v7118_v25  ;;  %v7135_v25 = vld [vmem:[#allocation72_spill] sm:$0xff] }
 0x367   : > { %v3629_v53 = vadd.f32 %v6601_v49, %v3601_v45  ;;  %v3438_v45 = vpop.f32.mrf.mxu0 }
 0x368   : > { %v3508_v6 = vadd.f32 %v3507_v24, %v3438_v45  ;;  %v7137_v24 = vld [vmem:[#allocation71_spill] sm:$0xff] }
 0x369   : > { %vm3653_vm9 = vcmp.ge.f32.partialorder %v3629_v53, 0.0  ;;  %v3677_v43 = vmul.f32 0.01, %v3629_v53 }
 0x36a   : > { %v2926_v5 = vpop.f32.mrf.mxu3  ;;  %v3577_v55 = vadd.f32 %v3576_v37, %v3508_v6 }
 0x36b   : > { %v3701_v57 = vsel %vm3653_vm9, %v3629_v53, %v3677_v43  ;;  %v2927_v9 = vadd.f32 %v2926_v5, %v2858_v33  ;;  %v2499_v53 = vadd.f32 %v7121_v8, %v2430_v59  ;;  %v2865_v43 = vadd.f32 %v7122_v26, %v2796_v28  ;;  %v7136_v28 = vld [vmem:[#allocation74_spill] sm:$0xff] }
 0x36c   : > { %v4725_v14 = vpack.c.bf16 %v3701_v57, %v3700_v56  ;;  %v3574_v5 = vadd.f32 %v3573_v54, %v3505_v32  ;;  %v7123_v56 = vld [vmem:[#allocation35_spill] sm:$0xff] }
 0x36d   : > { %v3602_v39 = vadd.f32 %v3567_v23, %v2927_v9  ;;  %v7124_v57 = vld [vmem:[#allocation87_spill] sm:$0xff]  ;;  %v7126_v23 = vld [vmem:[#allocation66_spill] sm:$0xff]  ;;  %v3509_v12 = vpop.f32.mrf.mxu1 }
 0x36e   : > { %4769 = vst [vmem:[%s6629_s13 + $0x38] sm:$0xff] %v4725_v14   ;;  %v2432_v9 = vadd.f32 %v7124_v57, %v7123_v56  ;;  %v7125_v14 = vld [vmem:[#allocation64_spill] sm:$0xff]  ;;  %v7132_v54 = vld [vmem:[#allocation67_spill] sm:$0xff] }
 0x36f   : > { %v3630_v62 = vadd.f32 %v6601_v49, %v3602_v39  ;;  %v2799_v15 = vadd.f32 %v7125_v14, %v2499_v53  ;;  %v3440_v10 = vpop.f32.mrf.mxu0  ;;  %v7127_v39 = vld [vmem:[#allocation63_spill] sm:$0xff] }
 0x370   : > { %v2501_v44 = vadd.f32 %v7126_v23, %v2432_v9 }
 0x371   : > { %v3678_v36 = vmul.f32 0.01, %v3630_v62  ;;  %vm3654_vm4 = vcmp.ge.f32.partialorder %v3630_v62, 0.0  ;;  %v2868_v60 = vadd.f32 %v7127_v39, %v2799_v15  ;;  %v7139_v15 = vld [vmem:[#allocation75_spill] sm:$0xff] }
 0x372   : > { %v2928_v40 = vpop.f32.mrf.mxu3 }
 0x373   : > { %v2929_v19 = vadd.f32 %v2928_v40, %v2860_v7  ;;  %v3702_v1 = vsel %vm3654_vm4, %v3630_v62, %v3678_v36  ;;  %v3578_v62 = vpop.f32.mrf.mxu2  ;;  %v2504_v36 = vadd.f32 %v7131_v27, %v2435_v13 }
 0x375   : > { %v3603_v31 = vadd.f32 %v3569_v16, %v2929_v19  ;;  %v3512_v4 = vpop.f32.mrf.mxu1  ;;  %v2804_v34 = vadd.f32 %v7135_v25, %v2504_v36 }
 0x377   : > { %v3631_v30 = vadd.f32 %v6601_v49, %v3603_v31  ;;  %v7130_v31 = vld [vmem:[#allocation68_spill] sm:$0xff]  ;;  %v2873_v8 = vadd.f32 %v7137_v24, %v2804_v34 }
 0x378   : > { %v2801_v52 = vadd.f32 %v7130_v31, %v2501_v44 }
 0x379   : > { %vm3655_vm8 = vcmp.ge.f32.partialorder %v3631_v30, 0.0  ;;  %v3679_v50 = vmul.f32 0.01, %v3631_v30 }
 0x37a   : > { %v2931_v51 = vpop.f32.mrf.mxu3  ;;  %v2870_v3 = vadd.f32 %v7132_v54, %v2801_v52 }
 0x37b   : > { %v3703_v17 = vsel %vm3655_vm8, %v3631_v30, %v3679_v50  ;;  %v2932_v22 = vadd.f32 %v2931_v51, %v2863_v63  ;;  %v3510_v30 = vadd.f32 %v3509_v12, %v3440_v10  ;;  %v3443_v51 = vpop.f32.mrf.mxu0  ;;  %v3581_v59 = vpop.f32.mrf.mxu2 }
 0x37c   : > { %v4730_v18 = vpack.c.bf16 %v3703_v17, %v3702_v1  ;;  %v7133_v1 = vld [vmem:[#allocation43_spill] sm:$0xff]  ;;  %v7134_v17 = vld [vmem:[#allocation89_spill] sm:$0xff]  ;;  %v3513_v32 = vadd.f32 %v3512_v4, %v3443_v51 }
 0x37d   : > { %v3604_v38 = vadd.f32 %v3572_v21, %v2932_v22  ;;  %v3579_v50 = vadd.f32 %v3578_v62, %v3510_v30  ;;  %v2437_v22 = vadd.f32 %v7134_v17, %v7133_v1  ;;  %v3514_v57 = vpop.f32.mrf.mxu1 }
 0x37e   : > { %4770 = vst [vmem:[%s6629_s13 + $0x40] sm:$0xff] %v4730_v18  }
 0x37f   : > { %v3632_v35 = vadd.f32 %v6601_v49, %v3604_v38  ;;  %v2506_v45 = vadd.f32 %v7136_v28, %v2437_v22 }
 0x381   : > { %v3680_v41 = vmul.f32 0.01, %v3632_v35  ;;  %vm3656_vm11 = vcmp.ge.f32.partialorder %v3632_v35, 0.0 }
 0x382   : > { %v2933_v33 = vpop.f32.mrf.mxu3 }
 0x383   : > { %v2934_v2 = vadd.f32 %v2933_v33, %v2865_v43  ;;  %v3704_v7 = vsel %vm3656_vm11, %v3632_v35, %v3680_v41  ;;  %v7138_v35 = vld [vmem:[#allocation76_spill] sm:$0xff]  ;;  %v3445_v56 = vpop.f32.mrf.mxu0 }
 0x384   : > { %v3515_v14 = vadd.f32 %v3514_v57, %v3445_v56 }
 0x385   : > { %v3605_v47 = vadd.f32 %v3574_v5, %v2934_v2  ;;  %v3582_v5 = vadd.f32 %v3581_v59, %v3513_v32  ;;  %v2806_v2 = vadd.f32 %v7138_v35, %v2506_v45 }
 0x387   : > { %v3633_v61 = vadd.f32 %v6601_v49, %v3605_v47  ;;  %v3583_v47 = vpop.f32.mrf.mxu2  ;;  %v2875_v41 = vadd.f32 %v7139_v15, %v2806_v2 }
 0x388   : > { %v3584_v23 = vadd.f32 %v3583_v47, %v3515_v14 }
 0x389   : > { %vm3657_vm12 = vcmp.ge.f32.partialorder %v3633_v61, 0.0  ;;  %v3681_v48 = vmul.f32 0.01, %v3633_v61 }
 0x38a   : > { %v2936_v29 = vpop.f32.mrf.mxu3 }
 0x38b   : > { %v3705_v40 = vsel %vm3657_vm12, %v3633_v61, %v3681_v48  ;;  %v2937_v16 = vadd.f32 %v2936_v29, %v2868_v60 }
 0x38c   : > { %v4735_v19 = vpack.c.bf16 %v3705_v40, %v3704_v7 }
 0x38d   : > { %v3606_v58 = vadd.f32 %v3577_v55, %v2937_v16 }
 0x38e   : > { %4771 = vst [vmem:[%s6629_s13 + $0x48] sm:$0xff] %v4735_v19  }
 0x38f   : > { %v3634_v20 = vadd.f32 %v6601_v49, %v3606_v58 }
 0x391   : > { %v3682_v21 = vmul.f32 0.01, %v3634_v20  ;;  %vm3658_vm10 = vcmp.ge.f32.partialorder %v3634_v20, 0.0 }
 0x392   : > { %v2938_v46 = vpop.f32.mrf.mxu3 }
 0x393   : > { %v2939_v63 = vadd.f32 %v2938_v46, %v2870_v3  ;;  %v3706_v26 = vsel %vm3658_vm10, %v3634_v20, %v3682_v21 }
 0x395   : > { %v3607_v18 = vadd.f32 %v3579_v50, %v2939_v63 }
 0x397   : > { %v3635_v0 = vadd.f32 %v6601_v49, %v3607_v18 }
 0x399   : > { %vm3659_vm13 = vcmp.ge.f32.partialorder %v3635_v0, 0.0  ;;  %v3683_v38 = vmul.f32 0.01, %v3635_v0 }
 0x39a   : > { %v2941_v53 = vpop.f32.mrf.mxu3 }
 0x39b   : > { %v3707_v43 = vsel %vm3659_vm13, %v3635_v0, %v3683_v38  ;;  %v2942_v37 = vadd.f32 %v2941_v53, %v2873_v8 }
 0x39c   : > { %v4740_v33 = vpack.c.bf16 %v3707_v43, %v3706_v26 }
 0x39d   : > { %v3608_v9 = vadd.f32 %v3582_v5, %v2942_v37 }
 0x39e   : > { %4772 = vst [vmem:[%s6629_s13 + $0x50] sm:$0xff] %v4740_v33  }
 0x39f   : > { %v3636_v44 = vadd.f32 %v6601_v49, %v3608_v9 }
 0x3a1   : > { %v3684_v39 = vmul.f32 0.01, %v3636_v44  ;;  %vm3660_vm14 = vcmp.ge.f32.partialorder %v3636_v44, 0.0 }
 0x3a2   : > { %v2943_v61 = vpop.f32.mrf.mxu3 }
 0x3a3   : > { %v2944_v10 = vadd.f32 %v2943_v61, %v2875_v41  ;;  %v3708_v29 = vsel %vm3660_vm14, %v3636_v44, %v3684_v39 }
 0x3a5   : > { %v3609_v48 = vadd.f32 %v3584_v23, %v2944_v10 }
 0x3a7   : > { %v3637_v60 = vadd.f32 %v6601_v49, %v3609_v48 }
 0x3a9   : > { %vm3661_vm15 = vcmp.ge.f32.partialorder %v3637_v60, 0.0  ;;  %v3685_v12 = vmul.f32 0.01, %v3637_v60 }
 0x3ab   : > { %v3709_v6 = vsel %vm3661_vm15, %v3637_v60, %v3685_v12 }
 0x3ac   : > { %v4745_v7 = vpack.c.bf16 %v3709_v6, %v3708_v29 }
 0x3ae   : > { %4773 = vst [vmem:[%s6629_s13 + $0x58] sm:$0xff] %v4745_v7  }
 0x3af   : > { %4993 = shalt.err (!%p4990_p7)
}
 0x3b0   : > { %s5063_s9 = smov 64   ;;  %s5064_s13 = smov 4  }
 0x3b1   : > { %4885 = dma.vmem_to_hbm [thread:$0]  (%p5151_p3), %s3774_s19, 1536, %s3776_s29, %s3759_s30, %s5063_s9, %s5063_s9, %s5064_s13  }
 0x3b2 PF: > { %p4891_p9 = scmp.ge.s32.totalorder %s5060_s28, 2  ;;  %s3790_s20 = sand.u32 1, %s5032_s21  }
 0x3b3   : > { %s3791_s16 = scalar_lea.sflag [#allocation4], %s3790_s20 }
 0x3b4   : > { %p4888_p10 = pnand %p4891_p9, %p5160_p8 }
 0x3b6   : > { %p4889_p11 = pneg %p4888_p10 }
 0x3b8   : > { %5027 = dma.done.wait (%p4889_p11), %s3791_s16, 1536  }
 0x3b9   : > { %5029 = vsyncadd (%p4889_p11), %s3791_s16, 4294965760  ;;  %s19_s28 = sadd.s32 1, %s5060_s28   ;;  %s7140_s21 = smov %s5036_s22 }
 0x3ba   : > { %p16_p12 = scmp.ge.s32.totalorder %s19_s28, 8   ;;  %s7141_s22 = smov %s5040_s23 }
 0x3bb   : > { %s7142_s23 = smov %s5169_s15  ;;  %s7143_s24 = smov %s5052_s26 }
 0x3bc   : > { %s7144_s25 = smov %s5056_s27  ;;  %s7145_s26 = smov %s7148_s7 }
 0x3bd   : > { %s7146_s27 = smov %s7152_s8  ;;  %18 = sbr.rel (!%p16_p12) target bundleno = 5 (0x5), region = 86 }
 0x3c2   :  { %3797 = vsyncpa [#allocation4], 1 }
 0x3c3   :  { %3799 = vsyncpa [#allocation4 + $0x1], 1 }

</bundles_post_ra>
